<compile_context>
chip_gen: v5e
topology: v5e:2x2
jax: 0.10.0
libtpu: 0.0.40
codegen_flags: <defaults>
</compile_context>

<pallas_src>
import math
import jax
import jax.numpy as jnp
from jax.experimental import pallas as pl
from jax.experimental.pallas import tpu as pltpu

# ----------------------- EcoPerceiverConfig (small, synthetic) ----------------
CONTEXT_LENGTH   = 8                                     # L
LATENT_DIM       = 32                                    # latent_space_dim (H)
NUM_HEADS        = 4
HEAD_DIM         = LATENT_DIM // NUM_HEADS
MLP_RATIO        = 2
MLP_DIM          = MLP_RATIO * LATENT_DIM
NUM_FREQUENCIES  = 8
INPUT_EMB_DIM    = 24
INPUT_HIDDEN_DIM = 2 * NUM_FREQUENCIES + INPUT_EMB_DIM   # kv dim of cross-attn = 40
LAYERS           = ("w", "c", "s", "c")                  # config.layers
WEIGHT_SHARING   = True
N_WINDOWED       = 8                                     # EC tokens per (B, L) step
N_AUX            = 8                                     # auxiliary tokens per batch
N_TARGETS        = 2                                     # flux outputs
BATCH            = 2
EPS              = 1e-5
SCALE            = 1.0 / math.sqrt(HEAD_DIM)
NEG_INF          = -1e9
OUT_PAD          = 128                                   # lane-dense output width

M_TOK      = BATCH * CONTEXT_LENGTH                      # 16 folded query tokens
N_WIN_KEYS = M_TOK * N_WINDOWED                          # 128 folded windowed keys
N_AUX_KEYS = BATCH * N_AUX                               # 16 folded aux keys

# bf16 matrix-slab slots (per parameter set), each padded to (64, 64)
MAT_WQ, MAT_WKV, MAT_WO, MAT_W1, MAT_W2 = range(5)
N_MATS  = 5
MAT_PAD = 64

# f32 vector-slab rows (per parameter set), (16, 128) tile-aligned
(ROW_LNQ_G, ROW_LNQ_B, ROW_LNKV_G, ROW_LNKV_B, ROW_LN2_G, ROW_LN2_B,
 ROW_BQ, ROW_BKV, ROW_BO, ROW_B1, ROW_B2) = range(11)
VEC_ROWS = 16
VEC_W    = 128

HEAD_ROWS = 48   # bf16 head slab: rows 0:32 weight, row 32 bias (tile boundary), pad to 48


def _build_layer_set_map():
    """Map each layer to a unique parameter-set index (weight sharing aware)."""
    set_idx, kv_dims, shared = [], [], {}
    for lt in LAYERS:
        if lt in ("w", "c"):
            if WEIGHT_SHARING:
                if lt not in shared:
                    shared[lt] = len(kv_dims)
                    kv_dims.append(INPUT_HIDDEN_DIM)
                set_idx.append(shared[lt])
            else:
                set_idx.append(len(kv_dims))
                kv_dims.append(INPUT_HIDDEN_DIM)
        else:  # latent self-attention
            set_idx.append(len(kv_dims))
            kv_dims.append(LATENT_DIM)
    return tuple(set_idx), tuple(kv_dims)


LAYER_SET_IDX, SET_KV_DIMS = _build_layer_set_map()
N_SETS = len(SET_KV_DIMS)


# ----------------------- fused Pallas kernel ----------------------------------
def _fused_forward_kernel(lat_ref, win_ref, winb_ref, aux_ref, auxb_ref, selfb_ref,
                          mats_ref, vecs_ref, head_ref, out_ref):
    """Whole forward (4 attention layers + flux head), all activations VMEM/vreg-resident."""
    H, NH, HD, DH = LATENT_DIM, NUM_HEADS, HEAD_DIM, MLP_DIM
    bf16, f32 = jnp.bfloat16, jnp.float32

    def mat(si, mi):                              # (64, 64) bf16 weight slot (static index)
        return mats_ref[si * N_MATS + mi]

    def layer_norm(x, g, b):                      # x: (N, D) f32, g/b: (1, D) f32
        mu = jnp.mean(x, axis=-1, keepdims=True)
        var = jnp.mean((x - mu) ** 2, axis=-1, keepdims=True)
        return (x - mu) * jax.lax.rsqrt(var + EPS) * g + b

    def project_kv(kv_src, si, dkv):              # kv_src: (Nk, dkv) f32
        vec = vecs_ref[si]                        # (16, 128) f32
        kvn = layer_norm(kv_src,
                         vec[ROW_LNKV_G:ROW_LNKV_G + 1, :dkv],
                         vec[ROW_LNKV_B:ROW_LNKV_B + 1, :dkv])
        wkv = mat(si, MAT_WKV)[:dkv, :2 * H]      # (dkv, 64) = [Wk || Wv], ONE matmul
        kv = jnp.dot(kvn.astype(bf16), wkv, preferred_element_type=f32)
        kv = kv + vec[ROW_BKV:ROW_BKV + 1, :2 * H]
        return kv[:, :H].astype(bf16), kv[:, H:2 * H].astype(bf16)   # (Nk,H) bf16 each

    def attn_block(x, k_bf, v_bf, bias, si):      # x: (M, H) f32, bias: (M, Nk) additive
        vec = vecs_ref[si]
        xn = layer_norm(x, vec[ROW_LNQ_G:ROW_LNQ_G + 1, :H],
                        vec[ROW_LNQ_B:ROW_LNQ_B + 1, :H])
        q = jnp.dot(xn.astype(bf16), mat(si, MAT_WQ)[:H, :H],
                    preferred_element_type=f32) + vec[ROW_BQ:ROW_BQ + 1, :H]
        q_bf = q.astype(bf16)
        ctx_heads = []
        for h in range(NH):                       # per-head score/ctx; projections stay fused
            lo, hi = h * HD, (h + 1) * HD
            s = jax.lax.dot_general(q_bf[:, lo:hi], k_bf[:, lo:hi],
                                    (((1,), (1,)), ((), ())),
                                    preferred_element_type=f32) * SCALE
            s = s + bias
            s = s - jnp.max(s, axis=-1, keepdims=True)
            p = jnp.exp(s)
            p = p / jnp.sum(p, axis=-1, keepdims=True)        # exact softmax
            ctx_heads.append(jnp.dot(p.astype(bf16), v_bf[:, lo:hi],
                                     preferred_element_type=f32))
        ctx = jnp.concatenate(ctx_heads, axis=-1)             # (M, H) f32
        attn = jnp.dot(ctx.astype(bf16), mat(si, MAT_WO)[:H, :H],
                       preferred_element_type=f32) + vec[ROW_BO:ROW_BO + 1, :H]
        x = x + attn                                          # residual 1
        xn2 = layer_norm(x, vec[ROW_LN2_G:ROW_LN2_G + 1, :H],
                         vec[ROW_LN2_B:ROW_LN2_B + 1, :H])
        h1 = jnp.dot(xn2.astype(bf16), mat(si, MAT_W1)[:H, :DH],
                     preferred_element_type=f32) + vec[ROW_B1:ROW_B1 + 1, :DH]
        h1 = jax.nn.gelu(h1, approximate=True)   # TODO(synk): torch GELU default is exact erf
        h2 = jnp.dot(h1.astype(bf16), mat(si, MAT_W2)[:DH, :H],
                     preferred_element_type=f32) + vec[ROW_B2:ROW_B2 + 1, :H]
        return x + h2                                         # residual 2

    hidden = lat_ref[...]            # (M, H) f32  latent embeddings, tiled per batch
    win    = win_ref[...]            # (M*Nw, Dkv) flattened windows (all batches)
    aux    = aux_ref[...]            # (B*Naux, Dkv)
    winb   = winb_ref[...]           # (M, M*Nw)  block-diag additive bias (window + mask)
    auxb   = auxb_ref[...]           # (M, B*Naux) batch block-diag + mask bias
    selfb  = selfb_ref[...]          # (M, M)     batch block-diag bias for self-attn

    kv_cache = {}                    # reuse K/V of weight-shared 'c' layers (bf16)
    for li, lt in enumerate(LAYERS):
        si = LAYER_SET_IDX[li]
        if lt == "w":
            key, kv_src, dkv, bias = ("w", si), win, INPUT_HIDDEN_DIM, winb
        elif lt == "c":
            key, kv_src, dkv, bias = ("c", si), aux, INPUT_HIDDEN_DIM, auxb
        else:                        # latent self-attention (kv = current hidden)
            key, kv_src, dkv, bias = None, hidden, LATENT_DIM, selfb
        if key is not None and key in kv_cache:
            k_bf, v_bf = kv_cache[key]
        else:
            k_bf, v_bf = project_kv(kv_src, si, dkv)
            if key is not None:
                kv_cache[key] = (k_bf, v_bf)
        hidden = attn_block(hidden, k_bf, v_bf, bias, si)

    # fused flux head -> 128-lane-dense store (real targets in columns [:N_TARGETS])
    hw = head_ref[:H, :]                                      # (32, 128) bf16
    hb = head_ref[H:H + 1, :].astype(f32)                     # (1, 128)
    out = jnp.dot(hidden.astype(bf16), hw, preferred_element_type=f32) + hb
    out_ref[...] = out.astype(out_ref.dtype)


# ----------------------- parameter init & packing -----------------------------
def _xavier(key, fan_in, fan_out):
    std = math.sqrt(2.0 / (fan_in + fan_out))
    return std * jax.random.normal(key, (fan_in, fan_out), jnp.float32)


def make_attention_params(key, kv_dim):
    """Natural (PyTorch-like) parameter layout for one AttentionLayer."""
    ks = jax.random.split(key, 6)
    H, dh = LATENT_DIM, MLP_DIM
    z = lambda n: jnp.zeros((n,), jnp.float32)
    return {
        "lnq_g": jnp.ones((H,), jnp.float32), "lnq_b": z(H),
        "lnkv_g": jnp.ones((kv_dim,), jnp.float32), "lnkv_b": z(kv_dim),
        "wq": _xavier(ks[0], H, H), "bq": z(H),
        "wk": _xavier(ks[1], kv_dim, H), "bk": z(H),
        "wv": _xavier(ks[2], kv_dim, H), "bv": z(H),
        "wo": _xavier(ks[3], H, H), "bo": z(H),
        "ln2_g": jnp.ones((H,), jnp.float32), "ln2_b": z(H),
        "w1": _xavier(ks[4], H, dh), "b1": z(dh),
        "w2": _xavier(ks[5], dh, H), "b2": z(H),
    }


def pack_attention_params(p, kv_dim):
    """Pack one layer into a bf16 (N_MATS,64,64) matrix slab + f32 (16,128) vector slab."""
    H, dh = LATENT_DIM, MLP_DIM
    mats = jnp.zeros((N_MATS, MAT_PAD, MAT_PAD), jnp.float32)
    mats = mats.at[MAT_WQ, :H, :H].set(p["wq"])
    mats = mats.at[MAT_WKV, :kv_dim, :H].set(p["wk"])          # fused [Wk || Wv]
    mats = mats.at[MAT_WKV, :kv_dim, H:2 * H].set(p["wv"])
    mats = mats.at[MAT_WO, :H, :H].set(p["wo"])
    mats = mats.at[MAT_W1, :H, :dh].set(p["w1"])
    mats = mats.at[MAT_W2, :dh, :H].set(p["w2"])
    vec = jnp.zeros((VEC_ROWS, VEC_W), jnp.float32)
    vec = vec.at[ROW_LNQ_G, :H].set(p["lnq_g"])
    vec = vec.at[ROW_LNQ_B, :H].set(p["lnq_b"])
    vec = vec.at[ROW_LNKV_G, :kv_dim].set(p["lnkv_g"])
    vec = vec.at[ROW_LNKV_B, :kv_dim].set(p["lnkv_b"])
    vec = vec.at[ROW_LN2_G, :H].set(p["ln2_g"])
    vec = vec.at[ROW_LN2_B, :H].set(p["ln2_b"])
    vec = vec.at[ROW_BQ, :H].set(p["bq"])
    vec = vec.at[ROW_BKV, :H].set(p["bk"])
    vec = vec.at[ROW_BKV, H:2 * H].set(p["bv"])
    vec = vec.at[ROW_BO, :H].set(p["bo"])
    vec = vec.at[ROW_B1, :dh].set(p["b1"])
    vec = vec.at[ROW_B2, :H].set(p["b2"])
    return mats.astype(jnp.bfloat16), vec


def init_params(key):
    ks = jax.random.split(key, 2 + N_SETS)
    latent = jax.random.normal(ks[0], (CONTEXT_LENGTH, LATENT_DIM), jnp.float32)
    mats_list, vec_list = [], []
    for i, kvd in enumerate(SET_KV_DIMS):
        m, v = pack_attention_params(make_attention_params(ks[2 + i], kvd), kvd)
        mats_list.append(m)
        vec_list.append(v)
    mats = jnp.concatenate(mats_list, axis=0)                  # (N_SETS*N_MATS, 64, 64) bf16
    vecs = jnp.stack(vec_list, axis=0)                         # (N_SETS, 16, 128) f32
    head_w = _xavier(ks[1], LATENT_DIM, N_TARGETS)
    head = jnp.zeros((HEAD_ROWS, OUT_PAD), jnp.float32)        # [W; bias-row; pad]
    head = head.at[:LATENT_DIM, :N_TARGETS].set(head_w)        # bias row (32) stays zero
    return {"latent": latent, "mats": mats, "vecs": vecs, "head": head.astype(jnp.bfloat16)}


# ----------------------- EcoPerceiver forward (single fused pallas_call) ------
def ecoperceiver_forward(params, windowed_input, windowed_mask, aux_input, aux_mask):
    B, Lc, Nw, Naux, Dkv = BATCH, CONTEXT_LENGTH, N_WINDOWED, N_AUX, INPUT_HIDDEN_DIM
    M = B * Lc

    # hidden init = latent embeddings repeated per batch, folded to (M, H)
    lat = jnp.tile(params["latent"], (B, 1))

    # 'w' layer: fold batch+timestep; each query row sees only its own window (+ mask).
    win = windowed_input.reshape(M * Nw, Dkv)
    wm = windowed_mask.reshape(M, Nw)
    inb = jnp.where(wm > 0.5, jnp.float32(NEG_INF), jnp.float32(0.0))          # (M, Nw)
    eye_m = jnp.eye(M, dtype=jnp.float32)
    win_bias = jnp.where(eye_m[:, :, None] > 0.5, inb[None, :, :],
                         jnp.float32(NEG_INF)).reshape(M, M * Nw)              # (16, 128)

    # 'c' layer: fold batch; queries of batch b see only aux tokens of batch b (+ mask).
    aux = aux_input.reshape(B * Naux, Dkv)
    auxm = jnp.where(aux_mask > 0.5, jnp.float32(NEG_INF), jnp.float32(0.0))   # (B, Lc, Naux)
    eye_b = jnp.eye(B, dtype=jnp.float32)
    aux_bias = jnp.where(eye_b[:, None, :, None] > 0.5, auxm[:, :, None, :],
                         jnp.float32(NEG_INF)).reshape(M, B * Naux)            # (16, 16)

    # 's' layer: batch block-diagonal bias so folded self-attention does not cross batches.
    bid = jnp.arange(M) // Lc
    self_bias = jnp.where(bid[:, None] == bid[None, :],
                          jnp.float32(0.0), jnp.float32(NEG_INF))              # (16, 16)

    inputs = [lat, win, win_bias, aux, aux_bias, self_bias,
              params["mats"], params["vecs"], params["head"]]
    in_specs = [pl.BlockSpec(x.shape, lambda i, nd=x.ndim: (0,) * nd) for x in inputs]

    out = pl.pallas_call(
        _fused_forward_kernel,
        out_shape=jax.ShapeDtypeStruct((M, OUT_PAD), jnp.float32),
        grid=(1,),                                   # single step: whole batch in one shot
        in_specs=in_specs,
        out_specs=pl.BlockSpec((M, OUT_PAD), lambda i: (0, 0)),
        compiler_params=pltpu.CompilerParams(dimension_semantics=("arbitrary",)),
    )(*inputs)
    return out[:, :N_TARGETS].reshape(B, Lc, N_TARGETS)


# ----------------------- main --------------------------------------------------
if __name__ == "__main__":
    key = jax.random.PRNGKey(0)
    kp, k1, k2, k3, k4 = jax.random.split(key, 5)
    params = init_params(kp)

    # Synthetic stand-ins for the (unavailable) input modules' outputs.
    windowed_input = jax.random.normal(
        k1, (BATCH * CONTEXT_LENGTH, N_WINDOWED, INPUT_HIDDEN_DIM), jnp.float32)
    windowed_mask = (jax.random.uniform(
        k2, (BATCH * CONTEXT_LENGTH, 1, N_WINDOWED)) < 0.2).astype(jnp.float32)
    aux_input = jax.random.normal(k3, (BATCH, N_AUX, INPUT_HIDDEN_DIM), jnp.float32)
    aux_mask = (jax.random.uniform(
        k4, (BATCH, CONTEXT_LENGTH, N_AUX)) < 0.2).astype(jnp.float32)

    out = jax.jit(ecoperceiver_forward)(
        params, windowed_input, windowed_mask, aux_input, aux_mask)
    jax.block_until_ready(out)
    assert out.shape == (BATCH, CONTEXT_LENGTH, N_TARGETS)
    assert bool(jnp.all(jnp.isfinite(out)))
    print("KERNEL_OK")
</pallas_src>

<mosaic_0001>
module attributes {stable_mosaic.version = 11 : i64} {
  func.func @_fused_forward_kernel(%arg0: i32, %arg1: memref<16x32xf32, #tpu.memory_space<vmem>>, %arg2: memref<128x40xf32, #tpu.memory_space<vmem>>, %arg3: memref<16x128xf32, #tpu.memory_space<vmem>>, %arg4: memref<16x40xf32, #tpu.memory_space<vmem>>, %arg5: memref<16x16xf32, #tpu.memory_space<vmem>>, %arg6: memref<16x16xf32, #tpu.memory_space<vmem>>, %arg7: memref<15x64x64xbf16, #tpu.memory_space<vmem>>, %arg8: memref<3x16x128xf32, #tpu.memory_space<vmem>>, %arg9: memref<48x128xbf16, #tpu.memory_space<vmem>>, %arg10: memref<16x128xf32, #tpu.memory_space<vmem>>) attributes {dimension_semantics = [#tpu.dimension_semantics<arbitrary>], iteration_bounds = array<i64: 1>, scalar_prefetch = 0 : i64, scratch_operands = 0 : i64, tpu.core_type = #tpu.core_type<tc>, window_params = [{pipeline_mode = #tpu.pipeline_mode<synchronous>, transform_indices = @transform_0, window_bounds = array<i64: 16, 32>}, {pipeline_mode = #tpu.pipeline_mode<synchronous>, transform_indices = @transform_1, window_bounds = array<i64: 128, 40>}, {pipeline_mode = #tpu.pipeline_mode<synchronous>, transform_indices = @transform_2, window_bounds = array<i64: 16, 128>}, {pipeline_mode = #tpu.pipeline_mode<synchronous>, transform_indices = @transform_3, window_bounds = array<i64: 16, 40>}, {pipeline_mode = #tpu.pipeline_mode<synchronous>, transform_indices = @transform_4, window_bounds = array<i64: 16, 16>}, {pipeline_mode = #tpu.pipeline_mode<synchronous>, transform_indices = @transform_5, window_bounds = array<i64: 16, 16>}, {pipeline_mode = #tpu.pipeline_mode<synchronous>, transform_indices = @transform_6, window_bounds = array<i64: 15, 64, 64>}, {pipeline_mode = #tpu.pipeline_mode<synchronous>, transform_indices = @transform_7, window_bounds = array<i64: 3, 16, 128>}, {pipeline_mode = #tpu.pipeline_mode<synchronous>, transform_indices = @transform_8, window_bounds = array<i64: 48, 128>}, {pipeline_mode = #tpu.pipeline_mode<synchronous>, transform_indices = @transform_9, window_bounds = array<i64: 16, 128>}]} {
    %c0 = arith.constant 0 : index
    %c0_0 = arith.constant 0 : index
    %0 = vector.load %arg1[%c0, %c0_0] : memref<16x32xf32, #tpu.memory_space<vmem>>, vector<16x32xf32>
    %c0_1 = arith.constant 0 : index
    %c0_2 = arith.constant 0 : index
    %1 = vector.load %arg2[%c0_1, %c0_2] : memref<128x40xf32, #tpu.memory_space<vmem>>, vector<128x40xf32>
    %c0_3 = arith.constant 0 : index
    %c0_4 = arith.constant 0 : index
    %2 = vector.load %arg4[%c0_3, %c0_4] : memref<16x40xf32, #tpu.memory_space<vmem>>, vector<16x40xf32>
    %c0_5 = arith.constant 0 : index
    %c0_6 = arith.constant 0 : index
    %3 = vector.load %arg3[%c0_5, %c0_6] : memref<16x128xf32, #tpu.memory_space<vmem>>, vector<16x128xf32>
    %c0_7 = arith.constant 0 : index
    %c0_8 = arith.constant 0 : index
    %4 = vector.load %arg5[%c0_7, %c0_8] : memref<16x16xf32, #tpu.memory_space<vmem>>, vector<16x16xf32>
    %c0_9 = arith.constant 0 : index
    %c0_10 = arith.constant 0 : index
    %5 = vector.load %arg6[%c0_9, %c0_10] : memref<16x16xf32, #tpu.memory_space<vmem>>, vector<16x16xf32>
    %c0_11 = arith.constant 0 : index
    %c0_12 = arith.constant 0 : index
    %c0_13 = arith.constant 0 : index
    %6 = vector.load %arg8[%c0_11, %c0_12, %c0_13] : memref<3x16x128xf32, #tpu.memory_space<vmem>>, vector<1x16x128xf32>
    %7 = vector.shape_cast %6 : vector<1x16x128xf32> to vector<16x128xf32>
    %8 = vector.extract_strided_slice %7 {offsets = [2, 0], sizes = [1, 40], strides = [1, 1]} : vector<16x128xf32> to vector<1x40xf32>
    %9 = vector.extract_strided_slice %7 {offsets = [3, 0], sizes = [1, 40], strides = [1, 1]} : vector<16x128xf32> to vector<1x40xf32>
    %cst = arith.constant dense<0.000000e+00> : vector<128xf32>
    %10 = vector.multi_reduction <add>, %1, %cst [1] : vector<128x40xf32> to vector<128xf32>
    %11 = vector.shape_cast %10 : vector<128xf32> to vector<128x1xf32>
    %cst_14 = arith.constant 4.000000e+01 : f32
    %12 = vector.broadcast %cst_14 : f32 to vector<128x1xf32>
    %13 = arith.divf %11, %12 : vector<128x1xf32>
    %14 = vector.broadcast %13 : vector<128x1xf32> to vector<128x40xf32>
    %15 = arith.subf %1, %14 : vector<128x40xf32>
    %16 = arith.mulf %15, %15 : vector<128x40xf32>
    %cst_15 = arith.constant dense<0.000000e+00> : vector<128xf32>
    %17 = vector.multi_reduction <add>, %16, %cst_15 [1] : vector<128x40xf32> to vector<128xf32>
    %18 = vector.shape_cast %17 : vector<128xf32> to vector<128x1xf32>
    %cst_16 = arith.constant 4.000000e+01 : f32
    %19 = vector.broadcast %cst_16 : f32 to vector<128x1xf32>
    %20 = arith.divf %18, %19 : vector<128x1xf32>
    %21 = vector.broadcast %13 : vector<128x1xf32> to vector<128x40xf32>
    %22 = arith.subf %1, %21 : vector<128x40xf32>
    %cst_17 = arith.constant 9.99999974E-6 : f32
    %23 = vector.broadcast %cst_17 : f32 to vector<128x1xf32>
    %24 = arith.addf %20, %23 : vector<128x1xf32>
    %25 = math.rsqrt %24 : vector<128x1xf32>
    %26 = vector.broadcast %25 : vector<128x1xf32> to vector<128x40xf32>
    %27 = arith.mulf %22, %26 : vector<128x40xf32>
    %28 = vector.broadcast %8 : vector<1x40xf32> to vector<128x40xf32>
    %29 = arith.mulf %27, %28 : vector<128x40xf32>
    %30 = vector.broadcast %9 : vector<1x40xf32> to vector<128x40xf32>
    %31 = arith.addf %29, %30 : vector<128x40xf32>
    %c1 = arith.constant 1 : index
    %c0_18 = arith.constant 0 : index
    %c0_19 = arith.constant 0 : index
    %32 = vector.load %arg7[%c1, %c0_18, %c0_19] : memref<15x64x64xbf16, #tpu.memory_space<vmem>>, vector<1x64x64xbf16>
    %33 = vector.shape_cast %32 : vector<1x64x64xbf16> to vector<64x64xbf16>
    %34 = vector.extract_strided_slice %33 {offsets = [0, 0], sizes = [40, 64], strides = [1, 1]} : vector<64x64xbf16> to vector<40x64xbf16>
    %35 = arith.truncf %31 : vector<128x40xf32> to vector<128x40xbf16>
    %cst_20 = arith.constant dense<0.000000e+00> : vector<128x64xf32>
    %36 = tpu.matmul %35, %34, %cst_20 {dimension_numbers = #tpu.dot_dimension_numbers<[1], [0], [0], [1], [0, 0, 1, 1], [], []>} : vector<128x40xbf16>, vector<40x64xbf16>, vector<128x64xf32> -> vector<128x64xf32>
    %37 = vector.extract_strided_slice %7 {offsets = [7, 0], sizes = [1, 64], strides = [1, 1]} : vector<16x128xf32> to vector<1x64xf32>
    %38 = vector.broadcast %37 : vector<1x64xf32> to vector<128x64xf32>
    %39 = arith.addf %36, %38 : vector<128x64xf32>
    %40 = vector.extract_strided_slice %39 {offsets = [0, 0], sizes = [128, 32], strides = [1, 1]} : vector<128x64xf32> to vector<128x32xf32>
    %41 = arith.truncf %40 : vector<128x32xf32> to vector<128x32xbf16>
    %42 = vector.extract_strided_slice %39 {offsets = [0, 32], sizes = [128, 32], strides = [1, 1]} : vector<128x64xf32> to vector<128x32xf32>
    %43 = arith.truncf %42 : vector<128x32xf32> to vector<128x32xbf16>
    %c0_21 = arith.constant 0 : index
    %c0_22 = arith.constant 0 : index
    %c0_23 = arith.constant 0 : index
    %44 = vector.load %arg8[%c0_21, %c0_22, %c0_23] : memref<3x16x128xf32, #tpu.memory_space<vmem>>, vector<1x16x128xf32>
    %45 = vector.shape_cast %44 : vector<1x16x128xf32> to vector<16x128xf32>
    %46 = vector.extract_strided_slice %45 {offsets = [0, 0], sizes = [1, 32], strides = [1, 1]} : vector<16x128xf32> to vector<1x32xf32>
    %47 = vector.extract_strided_slice %45 {offsets = [1, 0], sizes = [1, 32], strides = [1, 1]} : vector<16x128xf32> to vector<1x32xf32>
    %cst_24 = arith.constant dense<0.000000e+00> : vector<16xf32>
    %48 = vector.multi_reduction <add>, %0, %cst_24 [1] : vector<16x32xf32> to vector<16xf32>
    %49 = vector.shape_cast %48 : vector<16xf32> to vector<16x1xf32>
    %cst_25 = arith.constant 3.200000e+01 : f32
    %50 = vector.broadcast %cst_25 : f32 to vector<16x1xf32>
    %51 = arith.divf %49, %50 : vector<16x1xf32>
    %52 = vector.broadcast %51 : vector<16x1xf32> to vector<16x32xf32>
    %53 = arith.subf %0, %52 : vector<16x32xf32>
    %54 = arith.mulf %53, %53 : vector<16x32xf32>
    %cst_26 = arith.constant dense<0.000000e+00> : vector<16xf32>
    %55 = vector.multi_reduction <add>, %54, %cst_26 [1] : vector<16x32xf32> to vector<16xf32>
    %56 = vector.shape_cast %55 : vector<16xf32> to vector<16x1xf32>
    %cst_27 = arith.constant 3.200000e+01 : f32
    %57 = vector.broadcast %cst_27 : f32 to vector<16x1xf32>
    %58 = arith.divf %56, %57 : vector<16x1xf32>
    %59 = vector.broadcast %51 : vector<16x1xf32> to vector<16x32xf32>
    %60 = arith.subf %0, %59 : vector<16x32xf32>
    %cst_28 = arith.constant 9.99999974E-6 : f32
    %61 = vector.broadcast %cst_28 : f32 to vector<16x1xf32>
    %62 = arith.addf %58, %61 : vector<16x1xf32>
    %63 = math.rsqrt %62 : vector<16x1xf32>
    %64 = vector.broadcast %63 : vector<16x1xf32> to vector<16x32xf32>
    %65 = arith.mulf %60, %64 : vector<16x32xf32>
    %66 = vector.broadcast %46 : vector<1x32xf32> to vector<16x32xf32>
    %67 = arith.mulf %65, %66 : vector<16x32xf32>
    %68 = vector.broadcast %47 : vector<1x32xf32> to vector<16x32xf32>
    %69 = arith.addf %67, %68 : vector<16x32xf32>
    %70 = arith.truncf %69 : vector<16x32xf32> to vector<16x32xbf16>
    %c0_29 = arith.constant 0 : index
    %c0_30 = arith.constant 0 : index
    %c0_31 = arith.constant 0 : index
    %71 = vector.load %arg7[%c0_29, %c0_30, %c0_31] : memref<15x64x64xbf16, #tpu.memory_space<vmem>>, vector<1x64x64xbf16>
    %72 = vector.shape_cast %71 : vector<1x64x64xbf16> to vector<64x64xbf16>
    %73 = vector.extract_strided_slice %72 {offsets = [0, 0], sizes = [32, 32], strides = [1, 1]} : vector<64x64xbf16> to vector<32x32xbf16>
    %cst_32 = arith.constant dense<0.000000e+00> : vector<16x32xf32>
    %74 = tpu.matmul %70, %73, %cst_32 {dimension_numbers = #tpu.dot_dimension_numbers<[1], [0], [0], [1], [0, 0, 1, 1], [], []>} : vector<16x32xbf16>, vector<32x32xbf16>, vector<16x32xf32> -> vector<16x32xf32>
    %75 = vector.extract_strided_slice %45 {offsets = [6, 0], sizes = [1, 32], strides = [1, 1]} : vector<16x128xf32> to vector<1x32xf32>
    %76 = vector.broadcast %75 : vector<1x32xf32> to vector<16x32xf32>
    %77 = arith.addf %74, %76 : vector<16x32xf32>
    %78 = arith.truncf %77 : vector<16x32xf32> to vector<16x32xbf16>
    %79 = vector.extract_strided_slice %78 {offsets = [0, 0], sizes = [16, 8], strides = [1, 1]} : vector<16x32xbf16> to vector<16x8xbf16>
    %80 = vector.extract_strided_slice %41 {offsets = [0, 0], sizes = [128, 8], strides = [1, 1]} : vector<128x32xbf16> to vector<128x8xbf16>
    %cst_33 = arith.constant dense<0.000000e+00> : vector<16x128xf32>
    %81 = tpu.matmul %79, %80, %cst_33 {dimension_numbers = #tpu.dot_dimension_numbers<[1], [1], [0], [0], [0, 0, 1, 0], [], []>} : vector<16x8xbf16>, vector<128x8xbf16>, vector<16x128xf32> -> vector<16x128xf32>
    %cst_34 = arith.constant 0.353553385 : f32
    %82 = vector.broadcast %cst_34 : f32 to vector<16x128xf32>
    %83 = arith.mulf %81, %82 : vector<16x128xf32>
    %84 = arith.addf %83, %3 : vector<16x128xf32>
    %cst_35 = arith.constant dense<0xFF800000> : vector<16xf32>
    %85 = vector.multi_reduction <maximumf>, %84, %cst_35 [1] : vector<16x128xf32> to vector<16xf32>
    %86 = vector.shape_cast %85 : vector<16xf32> to vector<16x1xf32>
    %87 = vector.broadcast %86 : vector<16x1xf32> to vector<16x128xf32>
    %88 = arith.subf %84, %87 : vector<16x128xf32>
    %89 = math.exp %88 : vector<16x128xf32>
    %cst_36 = arith.constant dense<0.000000e+00> : vector<16xf32>
    %90 = vector.multi_reduction <add>, %89, %cst_36 [1] : vector<16x128xf32> to vector<16xf32>
    %91 = vector.shape_cast %90 : vector<16xf32> to vector<16x1xf32>
    %92 = vector.broadcast %91 : vector<16x1xf32> to vector<16x128xf32>
    %93 = arith.divf %89, %92 : vector<16x128xf32>
    %94 = arith.truncf %93 : vector<16x128xf32> to vector<16x128xbf16>
    %95 = vector.extract_strided_slice %43 {offsets = [0, 0], sizes = [128, 8], strides = [1, 1]} : vector<128x32xbf16> to vector<128x8xbf16>
    %cst_37 = arith.constant dense<0.000000e+00> : vector<16x8xf32>
    %96 = tpu.matmul %94, %95, %cst_37 {dimension_numbers = #tpu.dot_dimension_numbers<[1], [0], [0], [1], [0, 0, 1, 1], [], []>} : vector<16x128xbf16>, vector<128x8xbf16>, vector<16x8xf32> -> vector<16x8xf32>
    %97 = vector.extract_strided_slice %78 {offsets = [0, 8], sizes = [16, 8], strides = [1, 1]} : vector<16x32xbf16> to vector<16x8xbf16>
    %98 = vector.extract_strided_slice %41 {offsets = [0, 8], sizes = [128, 8], strides = [1, 1]} : vector<128x32xbf16> to vector<128x8xbf16>
    %cst_38 = arith.constant dense<0.000000e+00> : vector<16x128xf32>
    %99 = tpu.matmul %97, %98, %cst_38 {dimension_numbers = #tpu.dot_dimension_numbers<[1], [1], [0], [0], [0, 0, 1, 0], [], []>} : vector<16x8xbf16>, vector<128x8xbf16>, vector<16x128xf32> -> vector<16x128xf32>
    %cst_39 = arith.constant 0.353553385 : f32
    %100 = vector.broadcast %cst_39 : f32 to vector<16x128xf32>
    %101 = arith.mulf %99, %100 : vector<16x128xf32>
    %102 = arith.addf %101, %3 : vector<16x128xf32>
    %cst_40 = arith.constant dense<0xFF800000> : vector<16xf32>
    %103 = vector.multi_reduction <maximumf>, %102, %cst_40 [1] : vector<16x128xf32> to vector<16xf32>
    %104 = vector.shape_cast %103 : vector<16xf32> to vector<16x1xf32>
    %105 = vector.broadcast %104 : vector<16x1xf32> to vector<16x128xf32>
    %106 = arith.subf %102, %105 : vector<16x128xf32>
    %107 = math.exp %106 : vector<16x128xf32>
    %cst_41 = arith.constant dense<0.000000e+00> : vector<16xf32>
    %108 = vector.multi_reduction <add>, %107, %cst_41 [1] : vector<16x128xf32> to vector<16xf32>
    %109 = vector.shape_cast %108 : vector<16xf32> to vector<16x1xf32>
    %110 = vector.broadcast %109 : vector<16x1xf32> to vector<16x128xf32>
    %111 = arith.divf %107, %110 : vector<16x128xf32>
    %112 = arith.truncf %111 : vector<16x128xf32> to vector<16x128xbf16>
    %113 = vector.extract_strided_slice %43 {offsets = [0, 8], sizes = [128, 8], strides = [1, 1]} : vector<128x32xbf16> to vector<128x8xbf16>
    %cst_42 = arith.constant dense<0.000000e+00> : vector<16x8xf32>
    %114 = tpu.matmul %112, %113, %cst_42 {dimension_numbers = #tpu.dot_dimension_numbers<[1], [0], [0], [1], [0, 0, 1, 1], [], []>} : vector<16x128xbf16>, vector<128x8xbf16>, vector<16x8xf32> -> vector<16x8xf32>
    %115 = vector.extract_strided_slice %78 {offsets = [0, 16], sizes = [16, 8], strides = [1, 1]} : vector<16x32xbf16> to vector<16x8xbf16>
    %116 = vector.extract_strided_slice %41 {offsets = [0, 16], sizes = [128, 8], strides = [1, 1]} : vector<128x32xbf16> to vector<128x8xbf16>
    %cst_43 = arith.constant dense<0.000000e+00> : vector<16x128xf32>
    %117 = tpu.matmul %115, %116, %cst_43 {dimension_numbers = #tpu.dot_dimension_numbers<[1], [1], [0], [0], [0, 0, 1, 0], [], []>} : vector<16x8xbf16>, vector<128x8xbf16>, vector<16x128xf32> -> vector<16x128xf32>
    %cst_44 = arith.constant 0.353553385 : f32
    %118 = vector.broadcast %cst_44 : f32 to vector<16x128xf32>
    %119 = arith.mulf %117, %118 : vector<16x128xf32>
    %120 = arith.addf %119, %3 : vector<16x128xf32>
    %cst_45 = arith.constant dense<0xFF800000> : vector<16xf32>
    %121 = vector.multi_reduction <maximumf>, %120, %cst_45 [1] : vector<16x128xf32> to vector<16xf32>
    %122 = vector.shape_cast %121 : vector<16xf32> to vector<16x1xf32>
    %123 = vector.broadcast %122 : vector<16x1xf32> to vector<16x128xf32>
    %124 = arith.subf %120, %123 : vector<16x128xf32>
    %125 = math.exp %124 : vector<16x128xf32>
    %cst_46 = arith.constant dense<0.000000e+00> : vector<16xf32>
    %126 = vector.multi_reduction <add>, %125, %cst_46 [1] : vector<16x128xf32> to vector<16xf32>
    %127 = vector.shape_cast %126 : vector<16xf32> to vector<16x1xf32>
    %128 = vector.broadcast %127 : vector<16x1xf32> to vector<16x128xf32>
    %129 = arith.divf %125, %128 : vector<16x128xf32>
    %130 = arith.truncf %129 : vector<16x128xf32> to vector<16x128xbf16>
    %131 = vector.extract_strided_slice %43 {offsets = [0, 16], sizes = [128, 8], strides = [1, 1]} : vector<128x32xbf16> to vector<128x8xbf16>
    %cst_47 = arith.constant dense<0.000000e+00> : vector<16x8xf32>
    %132 = tpu.matmul %130, %131, %cst_47 {dimension_numbers = #tpu.dot_dimension_numbers<[1], [0], [0], [1], [0, 0, 1, 1], [], []>} : vector<16x128xbf16>, vector<128x8xbf16>, vector<16x8xf32> -> vector<16x8xf32>
    %133 = vector.extract_strided_slice %78 {offsets = [0, 24], sizes = [16, 8], strides = [1, 1]} : vector<16x32xbf16> to vector<16x8xbf16>
    %134 = vector.extract_strided_slice %41 {offsets = [0, 24], sizes = [128, 8], strides = [1, 1]} : vector<128x32xbf16> to vector<128x8xbf16>
    %cst_48 = arith.constant dense<0.000000e+00> : vector<16x128xf32>
    %135 = tpu.matmul %133, %134, %cst_48 {dimension_numbers = #tpu.dot_dimension_numbers<[1], [1], [0], [0], [0, 0, 1, 0], [], []>} : vector<16x8xbf16>, vector<128x8xbf16>, vector<16x128xf32> -> vector<16x128xf32>
    %cst_49 = arith.constant 0.353553385 : f32
    %136 = vector.broadcast %cst_49 : f32 to vector<16x128xf32>
    %137 = arith.mulf %135, %136 : vector<16x128xf32>
    %138 = arith.addf %137, %3 : vector<16x128xf32>
    %cst_50 = arith.constant dense<0xFF800000> : vector<16xf32>
    %139 = vector.multi_reduction <maximumf>, %138, %cst_50 [1] : vector<16x128xf32> to vector<16xf32>
    %140 = vector.shape_cast %139 : vector<16xf32> to vector<16x1xf32>
    %141 = vector.broadcast %140 : vector<16x1xf32> to vector<16x128xf32>
    %142 = arith.subf %138, %141 : vector<16x128xf32>
    %143 = math.exp %142 : vector<16x128xf32>
    %cst_51 = arith.constant dense<0.000000e+00> : vector<16xf32>
    %144 = vector.multi_reduction <add>, %143, %cst_51 [1] : vector<16x128xf32> to vector<16xf32>
    %145 = vector.shape_cast %144 : vector<16xf32> to vector<16x1xf32>
    %146 = vector.broadcast %145 : vector<16x1xf32> to vector<16x128xf32>
    %147 = arith.divf %143, %146 : vector<16x128xf32>
    %148 = arith.truncf %147 : vector<16x128xf32> to vector<16x128xbf16>
    %149 = vector.extract_strided_slice %43 {offsets = [0, 24], sizes = [128, 8], strides = [1, 1]} : vector<128x32xbf16> to vector<128x8xbf16>
    %cst_52 = arith.constant dense<0.000000e+00> : vector<16x8xf32>
    %150 = tpu.matmul %148, %149, %cst_52 {dimension_numbers = #tpu.dot_dimension_numbers<[1], [0], [0], [1], [0, 0, 1, 1], [], []>} : vector<16x128xbf16>, vector<128x8xbf16>, vector<16x8xf32> -> vector<16x8xf32>
    %151 = tpu.concatenate %96, %114, %132, %150 in 1 : vector<16x8xf32>, vector<16x8xf32>, vector<16x8xf32>, vector<16x8xf32> -> vector<16x32xf32>
    %152 = arith.truncf %151 : vector<16x32xf32> to vector<16x32xbf16>
    %c2 = arith.constant 2 : index
    %c0_53 = arith.constant 0 : index
    %c0_54 = arith.constant 0 : index
    %153 = vector.load %arg7[%c2, %c0_53, %c0_54] : memref<15x64x64xbf16, #tpu.memory_space<vmem>>, vector<1x64x64xbf16>
    %154 = vector.shape_cast %153 : vector<1x64x64xbf16> to vector<64x64xbf16>
    %155 = vector.extract_strided_slice %154 {offsets = [0, 0], sizes = [32, 32], strides = [1, 1]} : vector<64x64xbf16> to vector<32x32xbf16>
    %cst_55 = arith.constant dense<0.000000e+00> : vector<16x32xf32>
    %156 = tpu.matmul %152, %155, %cst_55 {dimension_numbers = #tpu.dot_dimension_numbers<[1], [0], [0], [1], [0, 0, 1, 1], [], []>} : vector<16x32xbf16>, vector<32x32xbf16>, vector<16x32xf32> -> vector<16x32xf32>
    %157 = vector.extract_strided_slice %45 {offsets = [8, 0], sizes = [1, 32], strides = [1, 1]} : vector<16x128xf32> to vector<1x32xf32>
    %158 = vector.broadcast %157 : vector<1x32xf32> to vector<16x32xf32>
    %159 = arith.addf %156, %158 : vector<16x32xf32>
    %160 = arith.addf %0, %159 : vector<16x32xf32>
    %161 = vector.extract_strided_slice %45 {offsets = [4, 0], sizes = [1, 32], strides = [1, 1]} : vector<16x128xf32> to vector<1x32xf32>
    %162 = vector.extract_strided_slice %45 {offsets = [5, 0], sizes = [1, 32], strides = [1, 1]} : vector<16x128xf32> to vector<1x32xf32>
    %cst_56 = arith.constant dense<0.000000e+00> : vector<16xf32>
    %163 = vector.multi_reduction <add>, %160, %cst_56 [1] : vector<16x32xf32> to vector<16xf32>
    %164 = vector.shape_cast %163 : vector<16xf32> to vector<16x1xf32>
    %cst_57 = arith.constant 3.200000e+01 : f32
    %165 = vector.broadcast %cst_57 : f32 to vector<16x1xf32>
    %166 = arith.divf %164, %165 : vector<16x1xf32>
    %167 = vector.broadcast %166 : vector<16x1xf32> to vector<16x32xf32>
    %168 = arith.subf %160, %167 : vector<16x32xf32>
    %169 = arith.mulf %168, %168 : vector<16x32xf32>
    %cst_58 = arith.constant dense<0.000000e+00> : vector<16xf32>
    %170 = vector.multi_reduction <add>, %169, %cst_58 [1] : vector<16x32xf32> to vector<16xf32>
    %171 = vector.shape_cast %170 : vector<16xf32> to vector<16x1xf32>
    %cst_59 = arith.constant 3.200000e+01 : f32
    %172 = vector.broadcast %cst_59 : f32 to vector<16x1xf32>
    %173 = arith.divf %171, %172 : vector<16x1xf32>
    %174 = vector.broadcast %166 : vector<16x1xf32> to vector<16x32xf32>
    %175 = arith.subf %160, %174 : vector<16x32xf32>
    %cst_60 = arith.constant 9.99999974E-6 : f32
    %176 = vector.broadcast %cst_60 : f32 to vector<16x1xf32>
    %177 = arith.addf %173, %176 : vector<16x1xf32>
    %178 = math.rsqrt %177 : vector<16x1xf32>
    %179 = vector.broadcast %178 : vector<16x1xf32> to vector<16x32xf32>
    %180 = arith.mulf %175, %179 : vector<16x32xf32>
    %181 = vector.broadcast %161 : vector<1x32xf32> to vector<16x32xf32>
    %182 = arith.mulf %180, %181 : vector<16x32xf32>
    %183 = vector.broadcast %162 : vector<1x32xf32> to vector<16x32xf32>
    %184 = arith.addf %182, %183 : vector<16x32xf32>
    %185 = arith.truncf %184 : vector<16x32xf32> to vector<16x32xbf16>
    %c3 = arith.constant 3 : index
    %c0_61 = arith.constant 0 : index
    %c0_62 = arith.constant 0 : index
    %186 = vector.load %arg7[%c3, %c0_61, %c0_62] : memref<15x64x64xbf16, #tpu.memory_space<vmem>>, vector<1x64x64xbf16>
    %187 = vector.shape_cast %186 : vector<1x64x64xbf16> to vector<64x64xbf16>
    %188 = vector.extract_strided_slice %187 {offsets = [0, 0], sizes = [32, 64], strides = [1, 1]} : vector<64x64xbf16> to vector<32x64xbf16>
    %cst_63 = arith.constant dense<0.000000e+00> : vector<16x64xf32>
    %189 = tpu.matmul %185, %188, %cst_63 {dimension_numbers = #tpu.dot_dimension_numbers<[1], [0], [0], [1], [0, 0, 1, 1], [], []>} : vector<16x32xbf16>, vector<32x64xbf16>, vector<16x64xf32> -> vector<16x64xf32>
    %190 = vector.extract_strided_slice %45 {offsets = [9, 0], sizes = [1, 64], strides = [1, 1]} : vector<16x128xf32> to vector<1x64xf32>
    %191 = vector.broadcast %190 : vector<1x64xf32> to vector<16x64xf32>
    %192 = arith.addf %189, %191 : vector<16x64xf32>
    %193 = arith.mulf %192, %192 : vector<16x64xf32>
    %194 = arith.mulf %192, %193 : vector<16x64xf32>
    %cst_64 = arith.constant 4.471500e-02 : f32
    %195 = vector.broadcast %cst_64 : f32 to vector<16x64xf32>
    %196 = arith.mulf %195, %194 : vector<16x64xf32>
    %197 = arith.addf %192, %196 : vector<16x64xf32>
    %cst_65 = arith.constant 0.797884583 : f32
    %198 = vector.broadcast %cst_65 : f32 to vector<16x64xf32>
    %199 = arith.mulf %198, %197 : vector<16x64xf32>
    %200 = math.tanh %199 : vector<16x64xf32>
    %cst_66 = arith.constant 1.000000e+00 : f32
    %201 = vector.broadcast %cst_66 : f32 to vector<16x64xf32>
    %202 = arith.addf %201, %200 : vector<16x64xf32>
    %cst_67 = arith.constant 5.000000e-01 : f32
    %203 = vector.broadcast %cst_67 : f32 to vector<16x64xf32>
    %204 = arith.mulf %203, %202 : vector<16x64xf32>
    %205 = arith.mulf %192, %204 : vector<16x64xf32>
    %206 = arith.truncf %205 : vector<16x64xf32> to vector<16x64xbf16>
    %c4 = arith.constant 4 : index
    %c0_68 = arith.constant 0 : index
    %c0_69 = arith.constant 0 : index
    %207 = vector.load %arg7[%c4, %c0_68, %c0_69] : memref<15x64x64xbf16, #tpu.memory_space<vmem>>, vector<1x64x64xbf16>
    %208 = vector.shape_cast %207 : vector<1x64x64xbf16> to vector<64x64xbf16>
    %209 = vector.extract_strided_slice %208 {offsets = [0, 0], sizes = [64, 32], strides = [1, 1]} : vector<64x64xbf16> to vector<64x32xbf16>
    %cst_70 = arith.constant dense<0.000000e+00> : vector<16x32xf32>
    %210 = tpu.matmul %206, %209, %cst_70 {dimension_numbers = #tpu.dot_dimension_numbers<[1], [0], [0], [1], [0, 0, 1, 1], [], []>} : vector<16x64xbf16>, vector<64x32xbf16>, vector<16x32xf32> -> vector<16x32xf32>
    %211 = vector.extract_strided_slice %45 {offsets = [10, 0], sizes = [1, 32], strides = [1, 1]} : vector<16x128xf32> to vector<1x32xf32>
    %212 = vector.broadcast %211 : vector<1x32xf32> to vector<16x32xf32>
    %213 = arith.addf %210, %212 : vector<16x32xf32>
    %214 = arith.addf %160, %213 : vector<16x32xf32>
    %c1_71 = arith.constant 1 : index
    %c0_72 = arith.constant 0 : index
    %c0_73 = arith.constant 0 : index
    %215 = vector.load %arg8[%c1_71, %c0_72, %c0_73] : memref<3x16x128xf32, #tpu.memory_space<vmem>>, vector<1x16x128xf32>
    %216 = vector.shape_cast %215 : vector<1x16x128xf32> to vector<16x128xf32>
    %217 = vector.extract_strided_slice %216 {offsets = [2, 0], sizes = [1, 40], strides = [1, 1]} : vector<16x128xf32> to vector<1x40xf32>
    %218 = vector.extract_strided_slice %216 {offsets = [3, 0], sizes = [1, 40], strides = [1, 1]} : vector<16x128xf32> to vector<1x40xf32>
    %cst_74 = arith.constant dense<0.000000e+00> : vector<16xf32>
    %219 = vector.multi_reduction <add>, %2, %cst_74 [1] : vector<16x40xf32> to vector<16xf32>
    %220 = vector.shape_cast %219 : vector<16xf32> to vector<16x1xf32>
    %cst_75 = arith.constant 4.000000e+01 : f32
    %221 = vector.broadcast %cst_75 : f32 to vector<16x1xf32>
    %222 = arith.divf %220, %221 : vector<16x1xf32>
    %223 = vector.broadcast %222 : vector<16x1xf32> to vector<16x40xf32>
    %224 = arith.subf %2, %223 : vector<16x40xf32>
    %225 = arith.mulf %224, %224 : vector<16x40xf32>
    %cst_76 = arith.constant dense<0.000000e+00> : vector<16xf32>
    %226 = vector.multi_reduction <add>, %225, %cst_76 [1] : vector<16x40xf32> to vector<16xf32>
    %227 = vector.shape_cast %226 : vector<16xf32> to vector<16x1xf32>
    %cst_77 = arith.constant 4.000000e+01 : f32
    %228 = vector.broadcast %cst_77 : f32 to vector<16x1xf32>
    %229 = arith.divf %227, %228 : vector<16x1xf32>
    %230 = vector.broadcast %222 : vector<16x1xf32> to vector<16x40xf32>
    %231 = arith.subf %2, %230 : vector<16x40xf32>
    %cst_78 = arith.constant 9.99999974E-6 : f32
    %232 = vector.broadcast %cst_78 : f32 to vector<16x1xf32>
    %233 = arith.addf %229, %232 : vector<16x1xf32>
    %234 = math.rsqrt %233 : vector<16x1xf32>
    %235 = vector.broadcast %234 : vector<16x1xf32> to vector<16x40xf32>
    %236 = arith.mulf %231, %235 : vector<16x40xf32>
    %237 = vector.broadcast %217 : vector<1x40xf32> to vector<16x40xf32>
    %238 = arith.mulf %236, %237 : vector<16x40xf32>
    %239 = vector.broadcast %218 : vector<1x40xf32> to vector<16x40xf32>
    %240 = arith.addf %238, %239 : vector<16x40xf32>
    %c6 = arith.constant 6 : index
    %c0_79 = arith.constant 0 : index
    %c0_80 = arith.constant 0 : index
    %241 = vector.load %arg7[%c6, %c0_79, %c0_80] : memref<15x64x64xbf16, #tpu.memory_space<vmem>>, vector<1x64x64xbf16>
    %242 = vector.shape_cast %241 : vector<1x64x64xbf16> to vector<64x64xbf16>
    %243 = vector.extract_strided_slice %242 {offsets = [0, 0], sizes = [40, 64], strides = [1, 1]} : vector<64x64xbf16> to vector<40x64xbf16>
    %244 = arith.truncf %240 : vector<16x40xf32> to vector<16x40xbf16>
    %cst_81 = arith.constant dense<0.000000e+00> : vector<16x64xf32>
    %245 = tpu.matmul %244, %243, %cst_81 {dimension_numbers = #tpu.dot_dimension_numbers<[1], [0], [0], [1], [0, 0, 1, 1], [], []>} : vector<16x40xbf16>, vector<40x64xbf16>, vector<16x64xf32> -> vector<16x64xf32>
    %246 = vector.extract_strided_slice %216 {offsets = [7, 0], sizes = [1, 64], strides = [1, 1]} : vector<16x128xf32> to vector<1x64xf32>
    %247 = vector.broadcast %246 : vector<1x64xf32> to vector<16x64xf32>
    %248 = arith.addf %245, %247 : vector<16x64xf32>
    %249 = vector.extract_strided_slice %248 {offsets = [0, 0], sizes = [16, 32], strides = [1, 1]} : vector<16x64xf32> to vector<16x32xf32>
    %250 = arith.truncf %249 : vector<16x32xf32> to vector<16x32xbf16>
    %251 = vector.extract_strided_slice %248 {offsets = [0, 32], sizes = [16, 32], strides = [1, 1]} : vector<16x64xf32> to vector<16x32xf32>
    %252 = arith.truncf %251 : vector<16x32xf32> to vector<16x32xbf16>
    %c1_82 = arith.constant 1 : index
    %c0_83 = arith.constant 0 : index
    %c0_84 = arith.constant 0 : index
    %253 = vector.load %arg8[%c1_82, %c0_83, %c0_84] : memref<3x16x128xf32, #tpu.memory_space<vmem>>, vector<1x16x128xf32>
    %254 = vector.shape_cast %253 : vector<1x16x128xf32> to vector<16x128xf32>
    %255 = vector.extract_strided_slice %254 {offsets = [0, 0], sizes = [1, 32], strides = [1, 1]} : vector<16x128xf32> to vector<1x32xf32>
    %256 = vector.extract_strided_slice %254 {offsets = [1, 0], sizes = [1, 32], strides = [1, 1]} : vector<16x128xf32> to vector<1x32xf32>
    %cst_85 = arith.constant dense<0.000000e+00> : vector<16xf32>
    %257 = vector.multi_reduction <add>, %214, %cst_85 [1] : vector<16x32xf32> to vector<16xf32>
    %258 = vector.shape_cast %257 : vector<16xf32> to vector<16x1xf32>
    %cst_86 = arith.constant 3.200000e+01 : f32
    %259 = vector.broadcast %cst_86 : f32 to vector<16x1xf32>
    %260 = arith.divf %258, %259 : vector<16x1xf32>
    %261 = vector.broadcast %260 : vector<16x1xf32> to vector<16x32xf32>
    %262 = arith.subf %214, %261 : vector<16x32xf32>
    %263 = arith.mulf %262, %262 : vector<16x32xf32>
    %cst_87 = arith.constant dense<0.000000e+00> : vector<16xf32>
    %264 = vector.multi_reduction <add>, %263, %cst_87 [1] : vector<16x32xf32> to vector<16xf32>
    %265 = vector.shape_cast %264 : vector<16xf32> to vector<16x1xf32>
    %cst_88 = arith.constant 3.200000e+01 : f32
    %266 = vector.broadcast %cst_88 : f32 to vector<16x1xf32>
    %267 = arith.divf %265, %266 : vector<16x1xf32>
    %268 = vector.broadcast %260 : vector<16x1xf32> to vector<16x32xf32>
    %269 = arith.subf %214, %268 : vector<16x32xf32>
    %cst_89 = arith.constant 9.99999974E-6 : f32
    %270 = vector.broadcast %cst_89 : f32 to vector<16x1xf32>
    %271 = arith.addf %267, %270 : vector<16x1xf32>
    %272 = math.rsqrt %271 : vector<16x1xf32>
    %273 = vector.broadcast %272 : vector<16x1xf32> to vector<16x32xf32>
    %274 = arith.mulf %269, %273 : vector<16x32xf32>
    %275 = vector.broadcast %255 : vector<1x32xf32> to vector<16x32xf32>
    %276 = arith.mulf %274, %275 : vector<16x32xf32>
    %277 = vector.broadcast %256 : vector<1x32xf32> to vector<16x32xf32>
    %278 = arith.addf %276, %277 : vector<16x32xf32>
    %279 = arith.truncf %278 : vector<16x32xf32> to vector<16x32xbf16>
    %c5 = arith.constant 5 : index
    %c0_90 = arith.constant 0 : index
    %c0_91 = arith.constant 0 : index
    %280 = vector.load %arg7[%c5, %c0_90, %c0_91] : memref<15x64x64xbf16, #tpu.memory_space<vmem>>, vector<1x64x64xbf16>
    %281 = vector.shape_cast %280 : vector<1x64x64xbf16> to vector<64x64xbf16>
    %282 = vector.extract_strided_slice %281 {offsets = [0, 0], sizes = [32, 32], strides = [1, 1]} : vector<64x64xbf16> to vector<32x32xbf16>
    %cst_92 = arith.constant dense<0.000000e+00> : vector<16x32xf32>
    %283 = tpu.matmul %279, %282, %cst_92 {dimension_numbers = #tpu.dot_dimension_numbers<[1], [0], [0], [1], [0, 0, 1, 1], [], []>} : vector<16x32xbf16>, vector<32x32xbf16>, vector<16x32xf32> -> vector<16x32xf32>
    %284 = vector.extract_strided_slice %254 {offsets = [6, 0], sizes = [1, 32], strides = [1, 1]} : vector<16x128xf32> to vector<1x32xf32>
    %285 = vector.broadcast %284 : vector<1x32xf32> to vector<16x32xf32>
    %286 = arith.addf %283, %285 : vector<16x32xf32>
    %287 = arith.truncf %286 : vector<16x32xf32> to vector<16x32xbf16>
    %288 = vector.extract_strided_slice %287 {offsets = [0, 0], sizes = [16, 8], strides = [1, 1]} : vector<16x32xbf16> to vector<16x8xbf16>
    %289 = vector.extract_strided_slice %250 {offsets = [0, 0], sizes = [16, 8], strides = [1, 1]} : vector<16x32xbf16> to vector<16x8xbf16>
    %cst_93 = arith.constant dense<0.000000e+00> : vector<16x16xf32>
    %290 = tpu.matmul %288, %289, %cst_93 {dimension_numbers = #tpu.dot_dimension_numbers<[1], [1], [0], [0], [0, 0, 1, 0], [], []>} : vector<16x8xbf16>, vector<16x8xbf16>, vector<16x16xf32> -> vector<16x16xf32>
    %cst_94 = arith.constant 0.353553385 : f32
    %291 = vector.broadcast %cst_94 : f32 to vector<16x16xf32>
    %292 = arith.mulf %290, %291 : vector<16x16xf32>
    %293 = arith.addf %292, %4 : vector<16x16xf32>
    %cst_95 = arith.constant dense<0xFF800000> : vector<16xf32>
    %294 = vector.multi_reduction <maximumf>, %293, %cst_95 [1] : vector<16x16xf32> to vector<16xf32>
    %295 = vector.shape_cast %294 : vector<16xf32> to vector<16x1xf32>
    %296 = vector.broadcast %295 : vector<16x1xf32> to vector<16x16xf32>
    %297 = arith.subf %293, %296 : vector<16x16xf32>
    %298 = math.exp %297 : vector<16x16xf32>
    %cst_96 = arith.constant dense<0.000000e+00> : vector<16xf32>
    %299 = vector.multi_reduction <add>, %298, %cst_96 [1] : vector<16x16xf32> to vector<16xf32>
    %300 = vector.shape_cast %299 : vector<16xf32> to vector<16x1xf32>
    %301 = vector.broadcast %300 : vector<16x1xf32> to vector<16x16xf32>
    %302 = arith.divf %298, %301 : vector<16x16xf32>
    %303 = arith.truncf %302 : vector<16x16xf32> to vector<16x16xbf16>
    %304 = vector.extract_strided_slice %252 {offsets = [0, 0], sizes = [16, 8], strides = [1, 1]} : vector<16x32xbf16> to vector<16x8xbf16>
    %cst_97 = arith.constant dense<0.000000e+00> : vector<16x8xf32>
    %305 = tpu.matmul %303, %304, %cst_97 {dimension_numbers = #tpu.dot_dimension_numbers<[1], [0], [0], [1], [0, 0, 1, 1], [], []>} : vector<16x16xbf16>, vector<16x8xbf16>, vector<16x8xf32> -> vector<16x8xf32>
    %306 = vector.extract_strided_slice %287 {offsets = [0, 8], sizes = [16, 8], strides = [1, 1]} : vector<16x32xbf16> to vector<16x8xbf16>
    %307 = vector.extract_strided_slice %250 {offsets = [0, 8], sizes = [16, 8], strides = [1, 1]} : vector<16x32xbf16> to vector<16x8xbf16>
    %cst_98 = arith.constant dense<0.000000e+00> : vector<16x16xf32>
    %308 = tpu.matmul %306, %307, %cst_98 {dimension_numbers = #tpu.dot_dimension_numbers<[1], [1], [0], [0], [0, 0, 1, 0], [], []>} : vector<16x8xbf16>, vector<16x8xbf16>, vector<16x16xf32> -> vector<16x16xf32>
    %cst_99 = arith.constant 0.353553385 : f32
    %309 = vector.broadcast %cst_99 : f32 to vector<16x16xf32>
    %310 = arith.mulf %308, %309 : vector<16x16xf32>
    %311 = arith.addf %310, %4 : vector<16x16xf32>
    %cst_100 = arith.constant dense<0xFF800000> : vector<16xf32>
    %312 = vector.multi_reduction <maximumf>, %311, %cst_100 [1] : vector<16x16xf32> to vector<16xf32>
    %313 = vector.shape_cast %312 : vector<16xf32> to vector<16x1xf32>
    %314 = vector.broadcast %313 : vector<16x1xf32> to vector<16x16xf32>
    %315 = arith.subf %311, %314 : vector<16x16xf32>
    %316 = math.exp %315 : vector<16x16xf32>
    %cst_101 = arith.constant dense<0.000000e+00> : vector<16xf32>
    %317 = vector.multi_reduction <add>, %316, %cst_101 [1] : vector<16x16xf32> to vector<16xf32>
    %318 = vector.shape_cast %317 : vector<16xf32> to vector<16x1xf32>
    %319 = vector.broadcast %318 : vector<16x1xf32> to vector<16x16xf32>
    %320 = arith.divf %316, %319 : vector<16x16xf32>
    %321 = arith.truncf %320 : vector<16x16xf32> to vector<16x16xbf16>
    %322 = vector.extract_strided_slice %252 {offsets = [0, 8], sizes = [16, 8], strides = [1, 1]} : vector<16x32xbf16> to vector<16x8xbf16>
    %cst_102 = arith.constant dense<0.000000e+00> : vector<16x8xf32>
    %323 = tpu.matmul %321, %322, %cst_102 {dimension_numbers = #tpu.dot_dimension_numbers<[1], [0], [0], [1], [0, 0, 1, 1], [], []>} : vector<16x16xbf16>, vector<16x8xbf16>, vector<16x8xf32> -> vector<16x8xf32>
    %324 = vector.extract_strided_slice %287 {offsets = [0, 16], sizes = [16, 8], strides = [1, 1]} : vector<16x32xbf16> to vector<16x8xbf16>
    %325 = vector.extract_strided_slice %250 {offsets = [0, 16], sizes = [16, 8], strides = [1, 1]} : vector<16x32xbf16> to vector<16x8xbf16>
    %cst_103 = arith.constant dense<0.000000e+00> : vector<16x16xf32>
    %326 = tpu.matmul %324, %325, %cst_103 {dimension_numbers = #tpu.dot_dimension_numbers<[1], [1], [0], [0], [0, 0, 1, 0], [], []>} : vector<16x8xbf16>, vector<16x8xbf16>, vector<16x16xf32> -> vector<16x16xf32>
    %cst_104 = arith.constant 0.353553385 : f32
    %327 = vector.broadcast %cst_104 : f32 to vector<16x16xf32>
    %328 = arith.mulf %326, %327 : vector<16x16xf32>
    %329 = arith.addf %328, %4 : vector<16x16xf32>
    %cst_105 = arith.constant dense<0xFF800000> : vector<16xf32>
    %330 = vector.multi_reduction <maximumf>, %329, %cst_105 [1] : vector<16x16xf32> to vector<16xf32>
    %331 = vector.shape_cast %330 : vector<16xf32> to vector<16x1xf32>
    %332 = vector.broadcast %331 : vector<16x1xf32> to vector<16x16xf32>
    %333 = arith.subf %329, %332 : vector<16x16xf32>
    %334 = math.exp %333 : vector<16x16xf32>
    %cst_106 = arith.constant dense<0.000000e+00> : vector<16xf32>
    %335 = vector.multi_reduction <add>, %334, %cst_106 [1] : vector<16x16xf32> to vector<16xf32>
    %336 = vector.shape_cast %335 : vector<16xf32> to vector<16x1xf32>
    %337 = vector.broadcast %336 : vector<16x1xf32> to vector<16x16xf32>
    %338 = arith.divf %334, %337 : vector<16x16xf32>
    %339 = arith.truncf %338 : vector<16x16xf32> to vector<16x16xbf16>
    %340 = vector.extract_strided_slice %252 {offsets = [0, 16], sizes = [16, 8], strides = [1, 1]} : vector<16x32xbf16> to vector<16x8xbf16>
    %cst_107 = arith.constant dense<0.000000e+00> : vector<16x8xf32>
    %341 = tpu.matmul %339, %340, %cst_107 {dimension_numbers = #tpu.dot_dimension_numbers<[1], [0], [0], [1], [0, 0, 1, 1], [], []>} : vector<16x16xbf16>, vector<16x8xbf16>, vector<16x8xf32> -> vector<16x8xf32>
    %342 = vector.extract_strided_slice %287 {offsets = [0, 24], sizes = [16, 8], strides = [1, 1]} : vector<16x32xbf16> to vector<16x8xbf16>
    %343 = vector.extract_strided_slice %250 {offsets = [0, 24], sizes = [16, 8], strides = [1, 1]} : vector<16x32xbf16> to vector<16x8xbf16>
    %cst_108 = arith.constant dense<0.000000e+00> : vector<16x16xf32>
    %344 = tpu.matmul %342, %343, %cst_108 {dimension_numbers = #tpu.dot_dimension_numbers<[1], [1], [0], [0], [0, 0, 1, 0], [], []>} : vector<16x8xbf16>, vector<16x8xbf16>, vector<16x16xf32> -> vector<16x16xf32>
    %cst_109 = arith.constant 0.353553385 : f32
    %345 = vector.broadcast %cst_109 : f32 to vector<16x16xf32>
    %346 = arith.mulf %344, %345 : vector<16x16xf32>
    %347 = arith.addf %346, %4 : vector<16x16xf32>
    %cst_110 = arith.constant dense<0xFF800000> : vector<16xf32>
    %348 = vector.multi_reduction <maximumf>, %347, %cst_110 [1] : vector<16x16xf32> to vector<16xf32>
    %349 = vector.shape_cast %348 : vector<16xf32> to vector<16x1xf32>
    %350 = vector.broadcast %349 : vector<16x1xf32> to vector<16x16xf32>
    %351 = arith.subf %347, %350 : vector<16x16xf32>
    %352 = math.exp %351 : vector<16x16xf32>
    %cst_111 = arith.constant dense<0.000000e+00> : vector<16xf32>
    %353 = vector.multi_reduction <add>, %352, %cst_111 [1] : vector<16x16xf32> to vector<16xf32>
    %354 = vector.shape_cast %353 : vector<16xf32> to vector<16x1xf32>
    %355 = vector.broadcast %354 : vector<16x1xf32> to vector<16x16xf32>
    %356 = arith.divf %352, %355 : vector<16x16xf32>
    %357 = arith.truncf %356 : vector<16x16xf32> to vector<16x16xbf16>
    %358 = vector.extract_strided_slice %252 {offsets = [0, 24], sizes = [16, 8], strides = [1, 1]} : vector<16x32xbf16> to vector<16x8xbf16>
    %cst_112 = arith.constant dense<0.000000e+00> : vector<16x8xf32>
    %359 = tpu.matmul %357, %358, %cst_112 {dimension_numbers = #tpu.dot_dimension_numbers<[1], [0], [0], [1], [0, 0, 1, 1], [], []>} : vector<16x16xbf16>, vector<16x8xbf16>, vector<16x8xf32> -> vector<16x8xf32>
    %360 = tpu.concatenate %305, %323, %341, %359 in 1 : vector<16x8xf32>, vector<16x8xf32>, vector<16x8xf32>, vector<16x8xf32> -> vector<16x32xf32>
    %361 = arith.truncf %360 : vector<16x32xf32> to vector<16x32xbf16>
    %c7 = arith.constant 7 : index
    %c0_113 = arith.constant 0 : index
    %c0_114 = arith.constant 0 : index
    %362 = vector.load %arg7[%c7, %c0_113, %c0_114] : memref<15x64x64xbf16, #tpu.memory_space<vmem>>, vector<1x64x64xbf16>
    %363 = vector.shape_cast %362 : vector<1x64x64xbf16> to vector<64x64xbf16>
    %364 = vector.extract_strided_slice %363 {offsets = [0, 0], sizes = [32, 32], strides = [1, 1]} : vector<64x64xbf16> to vector<32x32xbf16>
    %cst_115 = arith.constant dense<0.000000e+00> : vector<16x32xf32>
    %365 = tpu.matmul %361, %364, %cst_115 {dimension_numbers = #tpu.dot_dimension_numbers<[1], [0], [0], [1], [0, 0, 1, 1], [], []>} : vector<16x32xbf16>, vector<32x32xbf16>, vector<16x32xf32> -> vector<16x32xf32>
    %366 = vector.extract_strided_slice %254 {offsets = [8, 0], sizes = [1, 32], strides = [1, 1]} : vector<16x128xf32> to vector<1x32xf32>
    %367 = vector.broadcast %366 : vector<1x32xf32> to vector<16x32xf32>
    %368 = arith.addf %365, %367 : vector<16x32xf32>
    %369 = arith.addf %214, %368 : vector<16x32xf32>
    %370 = vector.extract_strided_slice %254 {offsets = [4, 0], sizes = [1, 32], strides = [1, 1]} : vector<16x128xf32> to vector<1x32xf32>
    %371 = vector.extract_strided_slice %254 {offsets = [5, 0], sizes = [1, 32], strides = [1, 1]} : vector<16x128xf32> to vector<1x32xf32>
    %cst_116 = arith.constant dense<0.000000e+00> : vector<16xf32>
    %372 = vector.multi_reduction <add>, %369, %cst_116 [1] : vector<16x32xf32> to vector<16xf32>
    %373 = vector.shape_cast %372 : vector<16xf32> to vector<16x1xf32>
    %cst_117 = arith.constant 3.200000e+01 : f32
    %374 = vector.broadcast %cst_117 : f32 to vector<16x1xf32>
    %375 = arith.divf %373, %374 : vector<16x1xf32>
    %376 = vector.broadcast %375 : vector<16x1xf32> to vector<16x32xf32>
    %377 = arith.subf %369, %376 : vector<16x32xf32>
    %378 = arith.mulf %377, %377 : vector<16x32xf32>
    %cst_118 = arith.constant dense<0.000000e+00> : vector<16xf32>
    %379 = vector.multi_reduction <add>, %378, %cst_118 [1] : vector<16x32xf32> to vector<16xf32>
    %380 = vector.shape_cast %379 : vector<16xf32> to vector<16x1xf32>
    %cst_119 = arith.constant 3.200000e+01 : f32
    %381 = vector.broadcast %cst_119 : f32 to vector<16x1xf32>
    %382 = arith.divf %380, %381 : vector<16x1xf32>
    %383 = vector.broadcast %375 : vector<16x1xf32> to vector<16x32xf32>
    %384 = arith.subf %369, %383 : vector<16x32xf32>
    %cst_120 = arith.constant 9.99999974E-6 : f32
    %385 = vector.broadcast %cst_120 : f32 to vector<16x1xf32>
    %386 = arith.addf %382, %385 : vector<16x1xf32>
    %387 = math.rsqrt %386 : vector<16x1xf32>
    %388 = vector.broadcast %387 : vector<16x1xf32> to vector<16x32xf32>
    %389 = arith.mulf %384, %388 : vector<16x32xf32>
    %390 = vector.broadcast %370 : vector<1x32xf32> to vector<16x32xf32>
    %391 = arith.mulf %389, %390 : vector<16x32xf32>
    %392 = vector.broadcast %371 : vector<1x32xf32> to vector<16x32xf32>
    %393 = arith.addf %391, %392 : vector<16x32xf32>
    %394 = arith.truncf %393 : vector<16x32xf32> to vector<16x32xbf16>
    %c8 = arith.constant 8 : index
    %c0_121 = arith.constant 0 : index
    %c0_122 = arith.constant 0 : index
    %395 = vector.load %arg7[%c8, %c0_121, %c0_122] : memref<15x64x64xbf16, #tpu.memory_space<vmem>>, vector<1x64x64xbf16>
    %396 = vector.shape_cast %395 : vector<1x64x64xbf16> to vector<64x64xbf16>
    %397 = vector.extract_strided_slice %396 {offsets = [0, 0], sizes = [32, 64], strides = [1, 1]} : vector<64x64xbf16> to vector<32x64xbf16>
    %cst_123 = arith.constant dense<0.000000e+00> : vector<16x64xf32>
    %398 = tpu.matmul %394, %397, %cst_123 {dimension_numbers = #tpu.dot_dimension_numbers<[1], [0], [0], [1], [0, 0, 1, 1], [], []>} : vector<16x32xbf16>, vector<32x64xbf16>, vector<16x64xf32> -> vector<16x64xf32>
    %399 = vector.extract_strided_slice %254 {offsets = [9, 0], sizes = [1, 64], strides = [1, 1]} : vector<16x128xf32> to vector<1x64xf32>
    %400 = vector.broadcast %399 : vector<1x64xf32> to vector<16x64xf32>
    %401 = arith.addf %398, %400 : vector<16x64xf32>
    %402 = arith.mulf %401, %401 : vector<16x64xf32>
    %403 = arith.mulf %401, %402 : vector<16x64xf32>
    %cst_124 = arith.constant 4.471500e-02 : f32
    %404 = vector.broadcast %cst_124 : f32 to vector<16x64xf32>
    %405 = arith.mulf %404, %403 : vector<16x64xf32>
    %406 = arith.addf %401, %405 : vector<16x64xf32>
    %cst_125 = arith.constant 0.797884583 : f32
    %407 = vector.broadcast %cst_125 : f32 to vector<16x64xf32>
    %408 = arith.mulf %407, %406 : vector<16x64xf32>
    %409 = math.tanh %408 : vector<16x64xf32>
    %cst_126 = arith.constant 1.000000e+00 : f32
    %410 = vector.broadcast %cst_126 : f32 to vector<16x64xf32>
    %411 = arith.addf %410, %409 : vector<16x64xf32>
    %cst_127 = arith.constant 5.000000e-01 : f32
    %412 = vector.broadcast %cst_127 : f32 to vector<16x64xf32>
    %413 = arith.mulf %412, %411 : vector<16x64xf32>
    %414 = arith.mulf %401, %413 : vector<16x64xf32>
    %415 = arith.truncf %414 : vector<16x64xf32> to vector<16x64xbf16>
    %c9 = arith.constant 9 : index
    %c0_128 = arith.constant 0 : index
    %c0_129 = arith.constant 0 : index
    %416 = vector.load %arg7[%c9, %c0_128, %c0_129] : memref<15x64x64xbf16, #tpu.memory_space<vmem>>, vector<1x64x64xbf16>
    %417 = vector.shape_cast %416 : vector<1x64x64xbf16> to vector<64x64xbf16>
    %418 = vector.extract_strided_slice %417 {offsets = [0, 0], sizes = [64, 32], strides = [1, 1]} : vector<64x64xbf16> to vector<64x32xbf16>
    %cst_130 = arith.constant dense<0.000000e+00> : vector<16x32xf32>
    %419 = tpu.matmul %415, %418, %cst_130 {dimension_numbers = #tpu.dot_dimension_numbers<[1], [0], [0], [1], [0, 0, 1, 1], [], []>} : vector<16x64xbf16>, vector<64x32xbf16>, vector<16x32xf32> -> vector<16x32xf32>
    %420 = vector.extract_strided_slice %254 {offsets = [10, 0], sizes = [1, 32], strides = [1, 1]} : vector<16x128xf32> to vector<1x32xf32>
    %421 = vector.broadcast %420 : vector<1x32xf32> to vector<16x32xf32>
    %422 = arith.addf %419, %421 : vector<16x32xf32>
    %423 = arith.addf %369, %422 : vector<16x32xf32>
    %c2_131 = arith.constant 2 : index
    %c0_132 = arith.constant 0 : index
    %c0_133 = arith.constant 0 : index
    %424 = vector.load %arg8[%c2_131, %c0_132, %c0_133] : memref<3x16x128xf32, #tpu.memory_space<vmem>>, vector<1x16x128xf32>
    %425 = vector.shape_cast %424 : vector<1x16x128xf32> to vector<16x128xf32>
    %426 = vector.extract_strided_slice %425 {offsets = [2, 0], sizes = [1, 32], strides = [1, 1]} : vector<16x128xf32> to vector<1x32xf32>
    %427 = vector.extract_strided_slice %425 {offsets = [3, 0], sizes = [1, 32], strides = [1, 1]} : vector<16x128xf32> to vector<1x32xf32>
    %cst_134 = arith.constant dense<0.000000e+00> : vector<16xf32>
    %428 = vector.multi_reduction <add>, %423, %cst_134 [1] : vector<16x32xf32> to vector<16xf32>
    %429 = vector.shape_cast %428 : vector<16xf32> to vector<16x1xf32>
    %cst_135 = arith.constant 3.200000e+01 : f32
    %430 = vector.broadcast %cst_135 : f32 to vector<16x1xf32>
    %431 = arith.divf %429, %430 : vector<16x1xf32>
    %432 = vector.broadcast %431 : vector<16x1xf32> to vector<16x32xf32>
    %433 = arith.subf %423, %432 : vector<16x32xf32>
    %434 = arith.mulf %433, %433 : vector<16x32xf32>
    %cst_136 = arith.constant dense<0.000000e+00> : vector<16xf32>
    %435 = vector.multi_reduction <add>, %434, %cst_136 [1] : vector<16x32xf32> to vector<16xf32>
    %436 = vector.shape_cast %435 : vector<16xf32> to vector<16x1xf32>
    %cst_137 = arith.constant 3.200000e+01 : f32
    %437 = vector.broadcast %cst_137 : f32 to vector<16x1xf32>
    %438 = arith.divf %436, %437 : vector<16x1xf32>
    %439 = vector.broadcast %431 : vector<16x1xf32> to vector<16x32xf32>
    %440 = arith.subf %423, %439 : vector<16x32xf32>
    %cst_138 = arith.constant 9.99999974E-6 : f32
    %441 = vector.broadcast %cst_138 : f32 to vector<16x1xf32>
    %442 = arith.addf %438, %441 : vector<16x1xf32>
    %443 = math.rsqrt %442 : vector<16x1xf32>
    %444 = vector.broadcast %443 : vector<16x1xf32> to vector<16x32xf32>
    %445 = arith.mulf %440, %444 : vector<16x32xf32>
    %446 = vector.broadcast %426 : vector<1x32xf32> to vector<16x32xf32>
    %447 = arith.mulf %445, %446 : vector<16x32xf32>
    %448 = vector.broadcast %427 : vector<1x32xf32> to vector<16x32xf32>
    %449 = arith.addf %447, %448 : vector<16x32xf32>
    %c11 = arith.constant 11 : index
    %c0_139 = arith.constant 0 : index
    %c0_140 = arith.constant 0 : index
    %450 = vector.load %arg7[%c11, %c0_139, %c0_140] : memref<15x64x64xbf16, #tpu.memory_space<vmem>>, vector<1x64x64xbf16>
    %451 = vector.shape_cast %450 : vector<1x64x64xbf16> to vector<64x64xbf16>
    %452 = vector.extract_strided_slice %451 {offsets = [0, 0], sizes = [32, 64], strides = [1, 1]} : vector<64x64xbf16> to vector<32x64xbf16>
    %453 = arith.truncf %449 : vector<16x32xf32> to vector<16x32xbf16>
    %cst_141 = arith.constant dense<0.000000e+00> : vector<16x64xf32>
    %454 = tpu.matmul %453, %452, %cst_141 {dimension_numbers = #tpu.dot_dimension_numbers<[1], [0], [0], [1], [0, 0, 1, 1], [], []>} : vector<16x32xbf16>, vector<32x64xbf16>, vector<16x64xf32> -> vector<16x64xf32>
    %455 = vector.extract_strided_slice %425 {offsets = [7, 0], sizes = [1, 64], strides = [1, 1]} : vector<16x128xf32> to vector<1x64xf32>
    %456 = vector.broadcast %455 : vector<1x64xf32> to vector<16x64xf32>
    %457 = arith.addf %454, %456 : vector<16x64xf32>
    %458 = vector.extract_strided_slice %457 {offsets = [0, 0], sizes = [16, 32], strides = [1, 1]} : vector<16x64xf32> to vector<16x32xf32>
    %459 = arith.truncf %458 : vector<16x32xf32> to vector<16x32xbf16>
    %460 = vector.extract_strided_slice %457 {offsets = [0, 32], sizes = [16, 32], strides = [1, 1]} : vector<16x64xf32> to vector<16x32xf32>
    %461 = arith.truncf %460 : vector<16x32xf32> to vector<16x32xbf16>
    %c2_142 = arith.constant 2 : index
    %c0_143 = arith.constant 0 : index
    %c0_144 = arith.constant 0 : index
    %462 = vector.load %arg8[%c2_142, %c0_143, %c0_144] : memref<3x16x128xf32, #tpu.memory_space<vmem>>, vector<1x16x128xf32>
    %463 = vector.shape_cast %462 : vector<1x16x128xf32> to vector<16x128xf32>
    %464 = vector.extract_strided_slice %463 {offsets = [0, 0], sizes = [1, 32], strides = [1, 1]} : vector<16x128xf32> to vector<1x32xf32>
    %465 = vector.extract_strided_slice %463 {offsets = [1, 0], sizes = [1, 32], strides = [1, 1]} : vector<16x128xf32> to vector<1x32xf32>
    %cst_145 = arith.constant dense<0.000000e+00> : vector<16xf32>
    %466 = vector.multi_reduction <add>, %423, %cst_145 [1] : vector<16x32xf32> to vector<16xf32>
    %467 = vector.shape_cast %466 : vector<16xf32> to vector<16x1xf32>
    %cst_146 = arith.constant 3.200000e+01 : f32
    %468 = vector.broadcast %cst_146 : f32 to vector<16x1xf32>
    %469 = arith.divf %467, %468 : vector<16x1xf32>
    %470 = vector.broadcast %469 : vector<16x1xf32> to vector<16x32xf32>
    %471 = arith.subf %423, %470 : vector<16x32xf32>
    %472 = arith.mulf %471, %471 : vector<16x32xf32>
    %cst_147 = arith.constant dense<0.000000e+00> : vector<16xf32>
    %473 = vector.multi_reduction <add>, %472, %cst_147 [1] : vector<16x32xf32> to vector<16xf32>
    %474 = vector.shape_cast %473 : vector<16xf32> to vector<16x1xf32>
    %cst_148 = arith.constant 3.200000e+01 : f32
    %475 = vector.broadcast %cst_148 : f32 to vector<16x1xf32>
    %476 = arith.divf %474, %475 : vector<16x1xf32>
    %477 = vector.broadcast %469 : vector<16x1xf32> to vector<16x32xf32>
    %478 = arith.subf %423, %477 : vector<16x32xf32>
    %cst_149 = arith.constant 9.99999974E-6 : f32
    %479 = vector.broadcast %cst_149 : f32 to vector<16x1xf32>
    %480 = arith.addf %476, %479 : vector<16x1xf32>
    %481 = math.rsqrt %480 : vector<16x1xf32>
    %482 = vector.broadcast %481 : vector<16x1xf32> to vector<16x32xf32>
    %483 = arith.mulf %478, %482 : vector<16x32xf32>
    %484 = vector.broadcast %464 : vector<1x32xf32> to vector<16x32xf32>
    %485 = arith.mulf %483, %484 : vector<16x32xf32>
    %486 = vector.broadcast %465 : vector<1x32xf32> to vector<16x32xf32>
    %487 = arith.addf %485, %486 : vector<16x32xf32>
    %488 = arith.truncf %487 : vector<16x32xf32> to vector<16x32xbf16>
    %c10 = arith.constant 10 : index
    %c0_150 = arith.constant 0 : index
    %c0_151 = arith.constant 0 : index
    %489 = vector.load %arg7[%c10, %c0_150, %c0_151] : memref<15x64x64xbf16, #tpu.memory_space<vmem>>, vector<1x64x64xbf16>
    %490 = vector.shape_cast %489 : vector<1x64x64xbf16> to vector<64x64xbf16>
    %491 = vector.extract_strided_slice %490 {offsets = [0, 0], sizes = [32, 32], strides = [1, 1]} : vector<64x64xbf16> to vector<32x32xbf16>
    %cst_152 = arith.constant dense<0.000000e+00> : vector<16x32xf32>
    %492 = tpu.matmul %488, %491, %cst_152 {dimension_numbers = #tpu.dot_dimension_numbers<[1], [0], [0], [1], [0, 0, 1, 1], [], []>} : vector<16x32xbf16>, vector<32x32xbf16>, vector<16x32xf32> -> vector<16x32xf32>
    %493 = vector.extract_strided_slice %463 {offsets = [6, 0], sizes = [1, 32], strides = [1, 1]} : vector<16x128xf32> to vector<1x32xf32>
    %494 = vector.broadcast %493 : vector<1x32xf32> to vector<16x32xf32>
    %495 = arith.addf %492, %494 : vector<16x32xf32>
    %496 = arith.truncf %495 : vector<16x32xf32> to vector<16x32xbf16>
    %497 = vector.extract_strided_slice %496 {offsets = [0, 0], sizes = [16, 8], strides = [1, 1]} : vector<16x32xbf16> to vector<16x8xbf16>
    %498 = vector.extract_strided_slice %459 {offsets = [0, 0], sizes = [16, 8], strides = [1, 1]} : vector<16x32xbf16> to vector<16x8xbf16>
    %cst_153 = arith.constant dense<0.000000e+00> : vector<16x16xf32>
    %499 = tpu.matmul %497, %498, %cst_153 {dimension_numbers = #tpu.dot_dimension_numbers<[1], [1], [0], [0], [0, 0, 1, 0], [], []>} : vector<16x8xbf16>, vector<16x8xbf16>, vector<16x16xf32> -> vector<16x16xf32>
    %cst_154 = arith.constant 0.353553385 : f32
    %500 = vector.broadcast %cst_154 : f32 to vector<16x16xf32>
    %501 = arith.mulf %499, %500 : vector<16x16xf32>
    %502 = arith.addf %501, %5 : vector<16x16xf32>
    %cst_155 = arith.constant dense<0xFF800000> : vector<16xf32>
    %503 = vector.multi_reduction <maximumf>, %502, %cst_155 [1] : vector<16x16xf32> to vector<16xf32>
    %504 = vector.shape_cast %503 : vector<16xf32> to vector<16x1xf32>
    %505 = vector.broadcast %504 : vector<16x1xf32> to vector<16x16xf32>
    %506 = arith.subf %502, %505 : vector<16x16xf32>
    %507 = math.exp %506 : vector<16x16xf32>
    %cst_156 = arith.constant dense<0.000000e+00> : vector<16xf32>
    %508 = vector.multi_reduction <add>, %507, %cst_156 [1] : vector<16x16xf32> to vector<16xf32>
    %509 = vector.shape_cast %508 : vector<16xf32> to vector<16x1xf32>
    %510 = vector.broadcast %509 : vector<16x1xf32> to vector<16x16xf32>
    %511 = arith.divf %507, %510 : vector<16x16xf32>
    %512 = arith.truncf %511 : vector<16x16xf32> to vector<16x16xbf16>
    %513 = vector.extract_strided_slice %461 {offsets = [0, 0], sizes = [16, 8], strides = [1, 1]} : vector<16x32xbf16> to vector<16x8xbf16>
    %cst_157 = arith.constant dense<0.000000e+00> : vector<16x8xf32>
    %514 = tpu.matmul %512, %513, %cst_157 {dimension_numbers = #tpu.dot_dimension_numbers<[1], [0], [0], [1], [0, 0, 1, 1], [], []>} : vector<16x16xbf16>, vector<16x8xbf16>, vector<16x8xf32> -> vector<16x8xf32>
    %515 = vector.extract_strided_slice %496 {offsets = [0, 8], sizes = [16, 8], strides = [1, 1]} : vector<16x32xbf16> to vector<16x8xbf16>
    %516 = vector.extract_strided_slice %459 {offsets = [0, 8], sizes = [16, 8], strides = [1, 1]} : vector<16x32xbf16> to vector<16x8xbf16>
    %cst_158 = arith.constant dense<0.000000e+00> : vector<16x16xf32>
    %517 = tpu.matmul %515, %516, %cst_158 {dimension_numbers = #tpu.dot_dimension_numbers<[1], [1], [0], [0], [0, 0, 1, 0], [], []>} : vector<16x8xbf16>, vector<16x8xbf16>, vector<16x16xf32> -> vector<16x16xf32>
    %cst_159 = arith.constant 0.353553385 : f32
    %518 = vector.broadcast %cst_159 : f32 to vector<16x16xf32>
    %519 = arith.mulf %517, %518 : vector<16x16xf32>
    %520 = arith.addf %519, %5 : vector<16x16xf32>
    %cst_160 = arith.constant dense<0xFF800000> : vector<16xf32>
    %521 = vector.multi_reduction <maximumf>, %520, %cst_160 [1] : vector<16x16xf32> to vector<16xf32>
    %522 = vector.shape_cast %521 : vector<16xf32> to vector<16x1xf32>
    %523 = vector.broadcast %522 : vector<16x1xf32> to vector<16x16xf32>
    %524 = arith.subf %520, %523 : vector<16x16xf32>
    %525 = math.exp %524 : vector<16x16xf32>
    %cst_161 = arith.constant dense<0.000000e+00> : vector<16xf32>
    %526 = vector.multi_reduction <add>, %525, %cst_161 [1] : vector<16x16xf32> to vector<16xf32>
    %527 = vector.shape_cast %526 : vector<16xf32> to vector<16x1xf32>
    %528 = vector.broadcast %527 : vector<16x1xf32> to vector<16x16xf32>
    %529 = arith.divf %525, %528 : vector<16x16xf32>
    %530 = arith.truncf %529 : vector<16x16xf32> to vector<16x16xbf16>
    %531 = vector.extract_strided_slice %461 {offsets = [0, 8], sizes = [16, 8], strides = [1, 1]} : vector<16x32xbf16> to vector<16x8xbf16>
    %cst_162 = arith.constant dense<0.000000e+00> : vector<16x8xf32>
    %532 = tpu.matmul %530, %531, %cst_162 {dimension_numbers = #tpu.dot_dimension_numbers<[1], [0], [0], [1], [0, 0, 1, 1], [], []>} : vector<16x16xbf16>, vector<16x8xbf16>, vector<16x8xf32> -> vector<16x8xf32>
    %533 = vector.extract_strided_slice %496 {offsets = [0, 16], sizes = [16, 8], strides = [1, 1]} : vector<16x32xbf16> to vector<16x8xbf16>
    %534 = vector.extract_strided_slice %459 {offsets = [0, 16], sizes = [16, 8], strides = [1, 1]} : vector<16x32xbf16> to vector<16x8xbf16>
    %cst_163 = arith.constant dense<0.000000e+00> : vector<16x16xf32>
    %535 = tpu.matmul %533, %534, %cst_163 {dimension_numbers = #tpu.dot_dimension_numbers<[1], [1], [0], [0], [0, 0, 1, 0], [], []>} : vector<16x8xbf16>, vector<16x8xbf16>, vector<16x16xf32> -> vector<16x16xf32>
    %cst_164 = arith.constant 0.353553385 : f32
    %536 = vector.broadcast %cst_164 : f32 to vector<16x16xf32>
    %537 = arith.mulf %535, %536 : vector<16x16xf32>
    %538 = arith.addf %537, %5 : vector<16x16xf32>
    %cst_165 = arith.constant dense<0xFF800000> : vector<16xf32>
    %539 = vector.multi_reduction <maximumf>, %538, %cst_165 [1] : vector<16x16xf32> to vector<16xf32>
    %540 = vector.shape_cast %539 : vector<16xf32> to vector<16x1xf32>
    %541 = vector.broadcast %540 : vector<16x1xf32> to vector<16x16xf32>
    %542 = arith.subf %538, %541 : vector<16x16xf32>
    %543 = math.exp %542 : vector<16x16xf32>
    %cst_166 = arith.constant dense<0.000000e+00> : vector<16xf32>
    %544 = vector.multi_reduction <add>, %543, %cst_166 [1] : vector<16x16xf32> to vector<16xf32>
    %545 = vector.shape_cast %544 : vector<16xf32> to vector<16x1xf32>
    %546 = vector.broadcast %545 : vector<16x1xf32> to vector<16x16xf32>
    %547 = arith.divf %543, %546 : vector<16x16xf32>
    %548 = arith.truncf %547 : vector<16x16xf32> to vector<16x16xbf16>
    %549 = vector.extract_strided_slice %461 {offsets = [0, 16], sizes = [16, 8], strides = [1, 1]} : vector<16x32xbf16> to vector<16x8xbf16>
    %cst_167 = arith.constant dense<0.000000e+00> : vector<16x8xf32>
    %550 = tpu.matmul %548, %549, %cst_167 {dimension_numbers = #tpu.dot_dimension_numbers<[1], [0], [0], [1], [0, 0, 1, 1], [], []>} : vector<16x16xbf16>, vector<16x8xbf16>, vector<16x8xf32> -> vector<16x8xf32>
    %551 = vector.extract_strided_slice %496 {offsets = [0, 24], sizes = [16, 8], strides = [1, 1]} : vector<16x32xbf16> to vector<16x8xbf16>
    %552 = vector.extract_strided_slice %459 {offsets = [0, 24], sizes = [16, 8], strides = [1, 1]} : vector<16x32xbf16> to vector<16x8xbf16>
    %cst_168 = arith.constant dense<0.000000e+00> : vector<16x16xf32>
    %553 = tpu.matmul %551, %552, %cst_168 {dimension_numbers = #tpu.dot_dimension_numbers<[1], [1], [0], [0], [0, 0, 1, 0], [], []>} : vector<16x8xbf16>, vector<16x8xbf16>, vector<16x16xf32> -> vector<16x16xf32>
    %cst_169 = arith.constant 0.353553385 : f32
    %554 = vector.broadcast %cst_169 : f32 to vector<16x16xf32>
    %555 = arith.mulf %553, %554 : vector<16x16xf32>
    %556 = arith.addf %555, %5 : vector<16x16xf32>
    %cst_170 = arith.constant dense<0xFF800000> : vector<16xf32>
    %557 = vector.multi_reduction <maximumf>, %556, %cst_170 [1] : vector<16x16xf32> to vector<16xf32>
    %558 = vector.shape_cast %557 : vector<16xf32> to vector<16x1xf32>
    %559 = vector.broadcast %558 : vector<16x1xf32> to vector<16x16xf32>
    %560 = arith.subf %556, %559 : vector<16x16xf32>
    %561 = math.exp %560 : vector<16x16xf32>
    %cst_171 = arith.constant dense<0.000000e+00> : vector<16xf32>
    %562 = vector.multi_reduction <add>, %561, %cst_171 [1] : vector<16x16xf32> to vector<16xf32>
    %563 = vector.shape_cast %562 : vector<16xf32> to vector<16x1xf32>
    %564 = vector.broadcast %563 : vector<16x1xf32> to vector<16x16xf32>
    %565 = arith.divf %561, %564 : vector<16x16xf32>
    %566 = arith.truncf %565 : vector<16x16xf32> to vector<16x16xbf16>
    %567 = vector.extract_strided_slice %461 {offsets = [0, 24], sizes = [16, 8], strides = [1, 1]} : vector<16x32xbf16> to vector<16x8xbf16>
    %cst_172 = arith.constant dense<0.000000e+00> : vector<16x8xf32>
    %568 = tpu.matmul %566, %567, %cst_172 {dimension_numbers = #tpu.dot_dimension_numbers<[1], [0], [0], [1], [0, 0, 1, 1], [], []>} : vector<16x16xbf16>, vector<16x8xbf16>, vector<16x8xf32> -> vector<16x8xf32>
    %569 = tpu.concatenate %514, %532, %550, %568 in 1 : vector<16x8xf32>, vector<16x8xf32>, vector<16x8xf32>, vector<16x8xf32> -> vector<16x32xf32>
    %570 = arith.truncf %569 : vector<16x32xf32> to vector<16x32xbf16>
    %c12 = arith.constant 12 : index
    %c0_173 = arith.constant 0 : index
    %c0_174 = arith.constant 0 : index
    %571 = vector.load %arg7[%c12, %c0_173, %c0_174] : memref<15x64x64xbf16, #tpu.memory_space<vmem>>, vector<1x64x64xbf16>
    %572 = vector.shape_cast %571 : vector<1x64x64xbf16> to vector<64x64xbf16>
    %573 = vector.extract_strided_slice %572 {offsets = [0, 0], sizes = [32, 32], strides = [1, 1]} : vector<64x64xbf16> to vector<32x32xbf16>
    %cst_175 = arith.constant dense<0.000000e+00> : vector<16x32xf32>
    %574 = tpu.matmul %570, %573, %cst_175 {dimension_numbers = #tpu.dot_dimension_numbers<[1], [0], [0], [1], [0, 0, 1, 1], [], []>} : vector<16x32xbf16>, vector<32x32xbf16>, vector<16x32xf32> -> vector<16x32xf32>
    %575 = vector.extract_strided_slice %463 {offsets = [8, 0], sizes = [1, 32], strides = [1, 1]} : vector<16x128xf32> to vector<1x32xf32>
    %576 = vector.broadcast %575 : vector<1x32xf32> to vector<16x32xf32>
    %577 = arith.addf %574, %576 : vector<16x32xf32>
    %578 = arith.addf %423, %577 : vector<16x32xf32>
    %579 = vector.extract_strided_slice %463 {offsets = [4, 0], sizes = [1, 32], strides = [1, 1]} : vector<16x128xf32> to vector<1x32xf32>
    %580 = vector.extract_strided_slice %463 {offsets = [5, 0], sizes = [1, 32], strides = [1, 1]} : vector<16x128xf32> to vector<1x32xf32>
    %cst_176 = arith.constant dense<0.000000e+00> : vector<16xf32>
    %581 = vector.multi_reduction <add>, %578, %cst_176 [1] : vector<16x32xf32> to vector<16xf32>
    %582 = vector.shape_cast %581 : vector<16xf32> to vector<16x1xf32>
    %cst_177 = arith.constant 3.200000e+01 : f32
    %583 = vector.broadcast %cst_177 : f32 to vector<16x1xf32>
    %584 = arith.divf %582, %583 : vector<16x1xf32>
    %585 = vector.broadcast %584 : vector<16x1xf32> to vector<16x32xf32>
    %586 = arith.subf %578, %585 : vector<16x32xf32>
    %587 = arith.mulf %586, %586 : vector<16x32xf32>
    %cst_178 = arith.constant dense<0.000000e+00> : vector<16xf32>
    %588 = vector.multi_reduction <add>, %587, %cst_178 [1] : vector<16x32xf32> to vector<16xf32>
    %589 = vector.shape_cast %588 : vector<16xf32> to vector<16x1xf32>
    %cst_179 = arith.constant 3.200000e+01 : f32
    %590 = vector.broadcast %cst_179 : f32 to vector<16x1xf32>
    %591 = arith.divf %589, %590 : vector<16x1xf32>
    %592 = vector.broadcast %584 : vector<16x1xf32> to vector<16x32xf32>
    %593 = arith.subf %578, %592 : vector<16x32xf32>
    %cst_180 = arith.constant 9.99999974E-6 : f32
    %594 = vector.broadcast %cst_180 : f32 to vector<16x1xf32>
    %595 = arith.addf %591, %594 : vector<16x1xf32>
    %596 = math.rsqrt %595 : vector<16x1xf32>
    %597 = vector.broadcast %596 : vector<16x1xf32> to vector<16x32xf32>
    %598 = arith.mulf %593, %597 : vector<16x32xf32>
    %599 = vector.broadcast %579 : vector<1x32xf32> to vector<16x32xf32>
    %600 = arith.mulf %598, %599 : vector<16x32xf32>
    %601 = vector.broadcast %580 : vector<1x32xf32> to vector<16x32xf32>
    %602 = arith.addf %600, %601 : vector<16x32xf32>
    %603 = arith.truncf %602 : vector<16x32xf32> to vector<16x32xbf16>
    %c13 = arith.constant 13 : index
    %c0_181 = arith.constant 0 : index
    %c0_182 = arith.constant 0 : index
    %604 = vector.load %arg7[%c13, %c0_181, %c0_182] : memref<15x64x64xbf16, #tpu.memory_space<vmem>>, vector<1x64x64xbf16>
    %605 = vector.shape_cast %604 : vector<1x64x64xbf16> to vector<64x64xbf16>
    %606 = vector.extract_strided_slice %605 {offsets = [0, 0], sizes = [32, 64], strides = [1, 1]} : vector<64x64xbf16> to vector<32x64xbf16>
    %cst_183 = arith.constant dense<0.000000e+00> : vector<16x64xf32>
    %607 = tpu.matmul %603, %606, %cst_183 {dimension_numbers = #tpu.dot_dimension_numbers<[1], [0], [0], [1], [0, 0, 1, 1], [], []>} : vector<16x32xbf16>, vector<32x64xbf16>, vector<16x64xf32> -> vector<16x64xf32>
    %608 = vector.extract_strided_slice %463 {offsets = [9, 0], sizes = [1, 64], strides = [1, 1]} : vector<16x128xf32> to vector<1x64xf32>
    %609 = vector.broadcast %608 : vector<1x64xf32> to vector<16x64xf32>
    %610 = arith.addf %607, %609 : vector<16x64xf32>
    %611 = arith.mulf %610, %610 : vector<16x64xf32>
    %612 = arith.mulf %610, %611 : vector<16x64xf32>
    %cst_184 = arith.constant 4.471500e-02 : f32
    %613 = vector.broadcast %cst_184 : f32 to vector<16x64xf32>
    %614 = arith.mulf %613, %612 : vector<16x64xf32>
    %615 = arith.addf %610, %614 : vector<16x64xf32>
    %cst_185 = arith.constant 0.797884583 : f32
    %616 = vector.broadcast %cst_185 : f32 to vector<16x64xf32>
    %617 = arith.mulf %616, %615 : vector<16x64xf32>
    %618 = math.tanh %617 : vector<16x64xf32>
    %cst_186 = arith.constant 1.000000e+00 : f32
    %619 = vector.broadcast %cst_186 : f32 to vector<16x64xf32>
    %620 = arith.addf %619, %618 : vector<16x64xf32>
    %cst_187 = arith.constant 5.000000e-01 : f32
    %621 = vector.broadcast %cst_187 : f32 to vector<16x64xf32>
    %622 = arith.mulf %621, %620 : vector<16x64xf32>
    %623 = arith.mulf %610, %622 : vector<16x64xf32>
    %624 = arith.truncf %623 : vector<16x64xf32> to vector<16x64xbf16>
    %c14 = arith.constant 14 : index
    %c0_188 = arith.constant 0 : index
    %c0_189 = arith.constant 0 : index
    %625 = vector.load %arg7[%c14, %c0_188, %c0_189] : memref<15x64x64xbf16, #tpu.memory_space<vmem>>, vector<1x64x64xbf16>
    %626 = vector.shape_cast %625 : vector<1x64x64xbf16> to vector<64x64xbf16>
    %627 = vector.extract_strided_slice %626 {offsets = [0, 0], sizes = [64, 32], strides = [1, 1]} : vector<64x64xbf16> to vector<64x32xbf16>
    %cst_190 = arith.constant dense<0.000000e+00> : vector<16x32xf32>
    %628 = tpu.matmul %624, %627, %cst_190 {dimension_numbers = #tpu.dot_dimension_numbers<[1], [0], [0], [1], [0, 0, 1, 1], [], []>} : vector<16x64xbf16>, vector<64x32xbf16>, vector<16x32xf32> -> vector<16x32xf32>
    %629 = vector.extract_strided_slice %463 {offsets = [10, 0], sizes = [1, 32], strides = [1, 1]} : vector<16x128xf32> to vector<1x32xf32>
    %630 = vector.broadcast %629 : vector<1x32xf32> to vector<16x32xf32>
    %631 = arith.addf %628, %630 : vector<16x32xf32>
    %632 = arith.addf %578, %631 : vector<16x32xf32>
    %c1_191 = arith.constant 1 : index
    %c0_192 = arith.constant 0 : index
    %c0_193 = arith.constant 0 : index
    %633 = vector.load %arg8[%c1_191, %c0_192, %c0_193] : memref<3x16x128xf32, #tpu.memory_space<vmem>>, vector<1x16x128xf32>
    %634 = vector.shape_cast %633 : vector<1x16x128xf32> to vector<16x128xf32>
    %635 = vector.extract_strided_slice %634 {offsets = [0, 0], sizes = [1, 32], strides = [1, 1]} : vector<16x128xf32> to vector<1x32xf32>
    %636 = vector.extract_strided_slice %634 {offsets = [1, 0], sizes = [1, 32], strides = [1, 1]} : vector<16x128xf32> to vector<1x32xf32>
    %cst_194 = arith.constant dense<0.000000e+00> : vector<16xf32>
    %637 = vector.multi_reduction <add>, %632, %cst_194 [1] : vector<16x32xf32> to vector<16xf32>
    %638 = vector.shape_cast %637 : vector<16xf32> to vector<16x1xf32>
    %cst_195 = arith.constant 3.200000e+01 : f32
    %639 = vector.broadcast %cst_195 : f32 to vector<16x1xf32>
    %640 = arith.divf %638, %639 : vector<16x1xf32>
    %641 = vector.broadcast %640 : vector<16x1xf32> to vector<16x32xf32>
    %642 = arith.subf %632, %641 : vector<16x32xf32>
    %643 = arith.mulf %642, %642 : vector<16x32xf32>
    %cst_196 = arith.constant dense<0.000000e+00> : vector<16xf32>
    %644 = vector.multi_reduction <add>, %643, %cst_196 [1] : vector<16x32xf32> to vector<16xf32>
    %645 = vector.shape_cast %644 : vector<16xf32> to vector<16x1xf32>
    %cst_197 = arith.constant 3.200000e+01 : f32
    %646 = vector.broadcast %cst_197 : f32 to vector<16x1xf32>
    %647 = arith.divf %645, %646 : vector<16x1xf32>
    %648 = vector.broadcast %640 : vector<16x1xf32> to vector<16x32xf32>
    %649 = arith.subf %632, %648 : vector<16x32xf32>
    %cst_198 = arith.constant 9.99999974E-6 : f32
    %650 = vector.broadcast %cst_198 : f32 to vector<16x1xf32>
    %651 = arith.addf %647, %650 : vector<16x1xf32>
    %652 = math.rsqrt %651 : vector<16x1xf32>
    %653 = vector.broadcast %652 : vector<16x1xf32> to vector<16x32xf32>
    %654 = arith.mulf %649, %653 : vector<16x32xf32>
    %655 = vector.broadcast %635 : vector<1x32xf32> to vector<16x32xf32>
    %656 = arith.mulf %654, %655 : vector<16x32xf32>
    %657 = vector.broadcast %636 : vector<1x32xf32> to vector<16x32xf32>
    %658 = arith.addf %656, %657 : vector<16x32xf32>
    %659 = arith.truncf %658 : vector<16x32xf32> to vector<16x32xbf16>
    %c5_199 = arith.constant 5 : index
    %c0_200 = arith.constant 0 : index
    %c0_201 = arith.constant 0 : index
    %660 = vector.load %arg7[%c5_199, %c0_200, %c0_201] : memref<15x64x64xbf16, #tpu.memory_space<vmem>>, vector<1x64x64xbf16>
    %661 = vector.shape_cast %660 : vector<1x64x64xbf16> to vector<64x64xbf16>
    %662 = vector.extract_strided_slice %661 {offsets = [0, 0], sizes = [32, 32], strides = [1, 1]} : vector<64x64xbf16> to vector<32x32xbf16>
    %cst_202 = arith.constant dense<0.000000e+00> : vector<16x32xf32>
    %663 = tpu.matmul %659, %662, %cst_202 {dimension_numbers = #tpu.dot_dimension_numbers<[1], [0], [0], [1], [0, 0, 1, 1], [], []>} : vector<16x32xbf16>, vector<32x32xbf16>, vector<16x32xf32> -> vector<16x32xf32>
    %664 = vector.extract_strided_slice %634 {offsets = [6, 0], sizes = [1, 32], strides = [1, 1]} : vector<16x128xf32> to vector<1x32xf32>
    %665 = vector.broadcast %664 : vector<1x32xf32> to vector<16x32xf32>
    %666 = arith.addf %663, %665 : vector<16x32xf32>
    %667 = arith.truncf %666 : vector<16x32xf32> to vector<16x32xbf16>
    %668 = vector.extract_strided_slice %667 {offsets = [0, 0], sizes = [16, 8], strides = [1, 1]} : vector<16x32xbf16> to vector<16x8xbf16>
    %669 = vector.extract_strided_slice %250 {offsets = [0, 0], sizes = [16, 8], strides = [1, 1]} : vector<16x32xbf16> to vector<16x8xbf16>
    %cst_203 = arith.constant dense<0.000000e+00> : vector<16x16xf32>
    %670 = tpu.matmul %668, %669, %cst_203 {dimension_numbers = #tpu.dot_dimension_numbers<[1], [1], [0], [0], [0, 0, 1, 0], [], []>} : vector<16x8xbf16>, vector<16x8xbf16>, vector<16x16xf32> -> vector<16x16xf32>
    %cst_204 = arith.constant 0.353553385 : f32
    %671 = vector.broadcast %cst_204 : f32 to vector<16x16xf32>
    %672 = arith.mulf %670, %671 : vector<16x16xf32>
    %673 = arith.addf %672, %4 : vector<16x16xf32>
    %cst_205 = arith.constant dense<0xFF800000> : vector<16xf32>
    %674 = vector.multi_reduction <maximumf>, %673, %cst_205 [1] : vector<16x16xf32> to vector<16xf32>
    %675 = vector.shape_cast %674 : vector<16xf32> to vector<16x1xf32>
    %676 = vector.broadcast %675 : vector<16x1xf32> to vector<16x16xf32>
    %677 = arith.subf %673, %676 : vector<16x16xf32>
    %678 = math.exp %677 : vector<16x16xf32>
    %cst_206 = arith.constant dense<0.000000e+00> : vector<16xf32>
    %679 = vector.multi_reduction <add>, %678, %cst_206 [1] : vector<16x16xf32> to vector<16xf32>
    %680 = vector.shape_cast %679 : vector<16xf32> to vector<16x1xf32>
    %681 = vector.broadcast %680 : vector<16x1xf32> to vector<16x16xf32>
    %682 = arith.divf %678, %681 : vector<16x16xf32>
    %683 = arith.truncf %682 : vector<16x16xf32> to vector<16x16xbf16>
    %684 = vector.extract_strided_slice %252 {offsets = [0, 0], sizes = [16, 8], strides = [1, 1]} : vector<16x32xbf16> to vector<16x8xbf16>
    %cst_207 = arith.constant dense<0.000000e+00> : vector<16x8xf32>
    %685 = tpu.matmul %683, %684, %cst_207 {dimension_numbers = #tpu.dot_dimension_numbers<[1], [0], [0], [1], [0, 0, 1, 1], [], []>} : vector<16x16xbf16>, vector<16x8xbf16>, vector<16x8xf32> -> vector<16x8xf32>
    %686 = vector.extract_strided_slice %667 {offsets = [0, 8], sizes = [16, 8], strides = [1, 1]} : vector<16x32xbf16> to vector<16x8xbf16>
    %687 = vector.extract_strided_slice %250 {offsets = [0, 8], sizes = [16, 8], strides = [1, 1]} : vector<16x32xbf16> to vector<16x8xbf16>
    %cst_208 = arith.constant dense<0.000000e+00> : vector<16x16xf32>
    %688 = tpu.matmul %686, %687, %cst_208 {dimension_numbers = #tpu.dot_dimension_numbers<[1], [1], [0], [0], [0, 0, 1, 0], [], []>} : vector<16x8xbf16>, vector<16x8xbf16>, vector<16x16xf32> -> vector<16x16xf32>
    %cst_209 = arith.constant 0.353553385 : f32
    %689 = vector.broadcast %cst_209 : f32 to vector<16x16xf32>
    %690 = arith.mulf %688, %689 : vector<16x16xf32>
    %691 = arith.addf %690, %4 : vector<16x16xf32>
    %cst_210 = arith.constant dense<0xFF800000> : vector<16xf32>
    %692 = vector.multi_reduction <maximumf>, %691, %cst_210 [1] : vector<16x16xf32> to vector<16xf32>
    %693 = vector.shape_cast %692 : vector<16xf32> to vector<16x1xf32>
    %694 = vector.broadcast %693 : vector<16x1xf32> to vector<16x16xf32>
    %695 = arith.subf %691, %694 : vector<16x16xf32>
    %696 = math.exp %695 : vector<16x16xf32>
    %cst_211 = arith.constant dense<0.000000e+00> : vector<16xf32>
    %697 = vector.multi_reduction <add>, %696, %cst_211 [1] : vector<16x16xf32> to vector<16xf32>
    %698 = vector.shape_cast %697 : vector<16xf32> to vector<16x1xf32>
    %699 = vector.broadcast %698 : vector<16x1xf32> to vector<16x16xf32>
    %700 = arith.divf %696, %699 : vector<16x16xf32>
    %701 = arith.truncf %700 : vector<16x16xf32> to vector<16x16xbf16>
    %702 = vector.extract_strided_slice %252 {offsets = [0, 8], sizes = [16, 8], strides = [1, 1]} : vector<16x32xbf16> to vector<16x8xbf16>
    %cst_212 = arith.constant dense<0.000000e+00> : vector<16x8xf32>
    %703 = tpu.matmul %701, %702, %cst_212 {dimension_numbers = #tpu.dot_dimension_numbers<[1], [0], [0], [1], [0, 0, 1, 1], [], []>} : vector<16x16xbf16>, vector<16x8xbf16>, vector<16x8xf32> -> vector<16x8xf32>
    %704 = vector.extract_strided_slice %667 {offsets = [0, 16], sizes = [16, 8], strides = [1, 1]} : vector<16x32xbf16> to vector<16x8xbf16>
    %705 = vector.extract_strided_slice %250 {offsets = [0, 16], sizes = [16, 8], strides = [1, 1]} : vector<16x32xbf16> to vector<16x8xbf16>
    %cst_213 = arith.constant dense<0.000000e+00> : vector<16x16xf32>
    %706 = tpu.matmul %704, %705, %cst_213 {dimension_numbers = #tpu.dot_dimension_numbers<[1], [1], [0], [0], [0, 0, 1, 0], [], []>} : vector<16x8xbf16>, vector<16x8xbf16>, vector<16x16xf32> -> vector<16x16xf32>
    %cst_214 = arith.constant 0.353553385 : f32
    %707 = vector.broadcast %cst_214 : f32 to vector<16x16xf32>
    %708 = arith.mulf %706, %707 : vector<16x16xf32>
    %709 = arith.addf %708, %4 : vector<16x16xf32>
    %cst_215 = arith.constant dense<0xFF800000> : vector<16xf32>
    %710 = vector.multi_reduction <maximumf>, %709, %cst_215 [1] : vector<16x16xf32> to vector<16xf32>
    %711 = vector.shape_cast %710 : vector<16xf32> to vector<16x1xf32>
    %712 = vector.broadcast %711 : vector<16x1xf32> to vector<16x16xf32>
    %713 = arith.subf %709, %712 : vector<16x16xf32>
    %714 = math.exp %713 : vector<16x16xf32>
    %cst_216 = arith.constant dense<0.000000e+00> : vector<16xf32>
    %715 = vector.multi_reduction <add>, %714, %cst_216 [1] : vector<16x16xf32> to vector<16xf32>
    %716 = vector.shape_cast %715 : vector<16xf32> to vector<16x1xf32>
    %717 = vector.broadcast %716 : vector<16x1xf32> to vector<16x16xf32>
    %718 = arith.divf %714, %717 : vector<16x16xf32>
    %719 = arith.truncf %718 : vector<16x16xf32> to vector<16x16xbf16>
    %720 = vector.extract_strided_slice %252 {offsets = [0, 16], sizes = [16, 8], strides = [1, 1]} : vector<16x32xbf16> to vector<16x8xbf16>
    %cst_217 = arith.constant dense<0.000000e+00> : vector<16x8xf32>
    %721 = tpu.matmul %719, %720, %cst_217 {dimension_numbers = #tpu.dot_dimension_numbers<[1], [0], [0], [1], [0, 0, 1, 1], [], []>} : vector<16x16xbf16>, vector<16x8xbf16>, vector<16x8xf32> -> vector<16x8xf32>
    %722 = vector.extract_strided_slice %667 {offsets = [0, 24], sizes = [16, 8], strides = [1, 1]} : vector<16x32xbf16> to vector<16x8xbf16>
    %723 = vector.extract_strided_slice %250 {offsets = [0, 24], sizes = [16, 8], strides = [1, 1]} : vector<16x32xbf16> to vector<16x8xbf16>
    %cst_218 = arith.constant dense<0.000000e+00> : vector<16x16xf32>
    %724 = tpu.matmul %722, %723, %cst_218 {dimension_numbers = #tpu.dot_dimension_numbers<[1], [1], [0], [0], [0, 0, 1, 0], [], []>} : vector<16x8xbf16>, vector<16x8xbf16>, vector<16x16xf32> -> vector<16x16xf32>
    %cst_219 = arith.constant 0.353553385 : f32
    %725 = vector.broadcast %cst_219 : f32 to vector<16x16xf32>
    %726 = arith.mulf %724, %725 : vector<16x16xf32>
    %727 = arith.addf %726, %4 : vector<16x16xf32>
    %cst_220 = arith.constant dense<0xFF800000> : vector<16xf32>
    %728 = vector.multi_reduction <maximumf>, %727, %cst_220 [1] : vector<16x16xf32> to vector<16xf32>
    %729 = vector.shape_cast %728 : vector<16xf32> to vector<16x1xf32>
    %730 = vector.broadcast %729 : vector<16x1xf32> to vector<16x16xf32>
    %731 = arith.subf %727, %730 : vector<16x16xf32>
    %732 = math.exp %731 : vector<16x16xf32>
    %cst_221 = arith.constant dense<0.000000e+00> : vector<16xf32>
    %733 = vector.multi_reduction <add>, %732, %cst_221 [1] : vector<16x16xf32> to vector<16xf32>
    %734 = vector.shape_cast %733 : vector<16xf32> to vector<16x1xf32>
    %735 = vector.broadcast %734 : vector<16x1xf32> to vector<16x16xf32>
    %736 = arith.divf %732, %735 : vector<16x16xf32>
    %737 = arith.truncf %736 : vector<16x16xf32> to vector<16x16xbf16>
    %738 = vector.extract_strided_slice %252 {offsets = [0, 24], sizes = [16, 8], strides = [1, 1]} : vector<16x32xbf16> to vector<16x8xbf16>
    %cst_222 = arith.constant dense<0.000000e+00> : vector<16x8xf32>
    %739 = tpu.matmul %737, %738, %cst_222 {dimension_numbers = #tpu.dot_dimension_numbers<[1], [0], [0], [1], [0, 0, 1, 1], [], []>} : vector<16x16xbf16>, vector<16x8xbf16>, vector<16x8xf32> -> vector<16x8xf32>
    %740 = tpu.concatenate %685, %703, %721, %739 in 1 : vector<16x8xf32>, vector<16x8xf32>, vector<16x8xf32>, vector<16x8xf32> -> vector<16x32xf32>
    %741 = arith.truncf %740 : vector<16x32xf32> to vector<16x32xbf16>
    %c7_223 = arith.constant 7 : index
    %c0_224 = arith.constant 0 : index
    %c0_225 = arith.constant 0 : index
    %742 = vector.load %arg7[%c7_223, %c0_224, %c0_225] : memref<15x64x64xbf16, #tpu.memory_space<vmem>>, vector<1x64x64xbf16>
    %743 = vector.shape_cast %742 : vector<1x64x64xbf16> to vector<64x64xbf16>
    %744 = vector.extract_strided_slice %743 {offsets = [0, 0], sizes = [32, 32], strides = [1, 1]} : vector<64x64xbf16> to vector<32x32xbf16>
    %cst_226 = arith.constant dense<0.000000e+00> : vector<16x32xf32>
    %745 = tpu.matmul %741, %744, %cst_226 {dimension_numbers = #tpu.dot_dimension_numbers<[1], [0], [0], [1], [0, 0, 1, 1], [], []>} : vector<16x32xbf16>, vector<32x32xbf16>, vector<16x32xf32> -> vector<16x32xf32>
    %746 = vector.extract_strided_slice %634 {offsets = [8, 0], sizes = [1, 32], strides = [1, 1]} : vector<16x128xf32> to vector<1x32xf32>
    %747 = vector.broadcast %746 : vector<1x32xf32> to vector<16x32xf32>
    %748 = arith.addf %745, %747 : vector<16x32xf32>
    %749 = arith.addf %632, %748 : vector<16x32xf32>
    %750 = vector.extract_strided_slice %634 {offsets = [4, 0], sizes = [1, 32], strides = [1, 1]} : vector<16x128xf32> to vector<1x32xf32>
    %751 = vector.extract_strided_slice %634 {offsets = [5, 0], sizes = [1, 32], strides = [1, 1]} : vector<16x128xf32> to vector<1x32xf32>
    %cst_227 = arith.constant dense<0.000000e+00> : vector<16xf32>
    %752 = vector.multi_reduction <add>, %749, %cst_227 [1] : vector<16x32xf32> to vector<16xf32>
    %753 = vector.shape_cast %752 : vector<16xf32> to vector<16x1xf32>
    %cst_228 = arith.constant 3.200000e+01 : f32
    %754 = vector.broadcast %cst_228 : f32 to vector<16x1xf32>
    %755 = arith.divf %753, %754 : vector<16x1xf32>
    %756 = vector.broadcast %755 : vector<16x1xf32> to vector<16x32xf32>
    %757 = arith.subf %749, %756 : vector<16x32xf32>
    %758 = arith.mulf %757, %757 : vector<16x32xf32>
    %cst_229 = arith.constant dense<0.000000e+00> : vector<16xf32>
    %759 = vector.multi_reduction <add>, %758, %cst_229 [1] : vector<16x32xf32> to vector<16xf32>
    %760 = vector.shape_cast %759 : vector<16xf32> to vector<16x1xf32>
    %cst_230 = arith.constant 3.200000e+01 : f32
    %761 = vector.broadcast %cst_230 : f32 to vector<16x1xf32>
    %762 = arith.divf %760, %761 : vector<16x1xf32>
    %763 = vector.broadcast %755 : vector<16x1xf32> to vector<16x32xf32>
    %764 = arith.subf %749, %763 : vector<16x32xf32>
    %cst_231 = arith.constant 9.99999974E-6 : f32
    %765 = vector.broadcast %cst_231 : f32 to vector<16x1xf32>
    %766 = arith.addf %762, %765 : vector<16x1xf32>
    %767 = math.rsqrt %766 : vector<16x1xf32>
    %768 = vector.broadcast %767 : vector<16x1xf32> to vector<16x32xf32>
    %769 = arith.mulf %764, %768 : vector<16x32xf32>
    %770 = vector.broadcast %750 : vector<1x32xf32> to vector<16x32xf32>
    %771 = arith.mulf %769, %770 : vector<16x32xf32>
    %772 = vector.broadcast %751 : vector<1x32xf32> to vector<16x32xf32>
    %773 = arith.addf %771, %772 : vector<16x32xf32>
    %774 = arith.truncf %773 : vector<16x32xf32> to vector<16x32xbf16>
    %c8_232 = arith.constant 8 : index
    %c0_233 = arith.constant 0 : index
    %c0_234 = arith.constant 0 : index
    %775 = vector.load %arg7[%c8_232, %c0_233, %c0_234] : memref<15x64x64xbf16, #tpu.memory_space<vmem>>, vector<1x64x64xbf16>
    %776 = vector.shape_cast %775 : vector<1x64x64xbf16> to vector<64x64xbf16>
    %777 = vector.extract_strided_slice %776 {offsets = [0, 0], sizes = [32, 64], strides = [1, 1]} : vector<64x64xbf16> to vector<32x64xbf16>
    %cst_235 = arith.constant dense<0.000000e+00> : vector<16x64xf32>
    %778 = tpu.matmul %774, %777, %cst_235 {dimension_numbers = #tpu.dot_dimension_numbers<[1], [0], [0], [1], [0, 0, 1, 1], [], []>} : vector<16x32xbf16>, vector<32x64xbf16>, vector<16x64xf32> -> vector<16x64xf32>
    %779 = vector.extract_strided_slice %634 {offsets = [9, 0], sizes = [1, 64], strides = [1, 1]} : vector<16x128xf32> to vector<1x64xf32>
    %780 = vector.broadcast %779 : vector<1x64xf32> to vector<16x64xf32>
    %781 = arith.addf %778, %780 : vector<16x64xf32>
    %782 = arith.mulf %781, %781 : vector<16x64xf32>
    %783 = arith.mulf %781, %782 : vector<16x64xf32>
    %cst_236 = arith.constant 4.471500e-02 : f32
    %784 = vector.broadcast %cst_236 : f32 to vector<16x64xf32>
    %785 = arith.mulf %784, %783 : vector<16x64xf32>
    %786 = arith.addf %781, %785 : vector<16x64xf32>
    %cst_237 = arith.constant 0.797884583 : f32
    %787 = vector.broadcast %cst_237 : f32 to vector<16x64xf32>
    %788 = arith.mulf %787, %786 : vector<16x64xf32>
    %789 = math.tanh %788 : vector<16x64xf32>
    %cst_238 = arith.constant 1.000000e+00 : f32
    %790 = vector.broadcast %cst_238 : f32 to vector<16x64xf32>
    %791 = arith.addf %790, %789 : vector<16x64xf32>
    %cst_239 = arith.constant 5.000000e-01 : f32
    %792 = vector.broadcast %cst_239 : f32 to vector<16x64xf32>
    %793 = arith.mulf %792, %791 : vector<16x64xf32>
    %794 = arith.mulf %781, %793 : vector<16x64xf32>
    %795 = arith.truncf %794 : vector<16x64xf32> to vector<16x64xbf16>
    %c9_240 = arith.constant 9 : index
    %c0_241 = arith.constant 0 : index
    %c0_242 = arith.constant 0 : index
    %796 = vector.load %arg7[%c9_240, %c0_241, %c0_242] : memref<15x64x64xbf16, #tpu.memory_space<vmem>>, vector<1x64x64xbf16>
    %797 = vector.shape_cast %796 : vector<1x64x64xbf16> to vector<64x64xbf16>
    %798 = vector.extract_strided_slice %797 {offsets = [0, 0], sizes = [64, 32], strides = [1, 1]} : vector<64x64xbf16> to vector<64x32xbf16>
    %cst_243 = arith.constant dense<0.000000e+00> : vector<16x32xf32>
    %799 = tpu.matmul %795, %798, %cst_243 {dimension_numbers = #tpu.dot_dimension_numbers<[1], [0], [0], [1], [0, 0, 1, 1], [], []>} : vector<16x64xbf16>, vector<64x32xbf16>, vector<16x32xf32> -> vector<16x32xf32>
    %800 = vector.extract_strided_slice %634 {offsets = [10, 0], sizes = [1, 32], strides = [1, 1]} : vector<16x128xf32> to vector<1x32xf32>
    %801 = vector.broadcast %800 : vector<1x32xf32> to vector<16x32xf32>
    %802 = arith.addf %799, %801 : vector<16x32xf32>
    %803 = arith.addf %749, %802 : vector<16x32xf32>
    %c0_244 = arith.constant 0 : index
    %c0_245 = arith.constant 0 : index
    %804 = vector.load %arg9[%c0_244, %c0_245] : memref<48x128xbf16, #tpu.memory_space<vmem>>, vector<32x128xbf16>
    %c32 = arith.constant 32 : index
    %c0_246 = arith.constant 0 : index
    %805 = vector.load %arg9[%c32, %c0_246] : memref<48x128xbf16, #tpu.memory_space<vmem>>, vector<1x128xbf16>
    %806 = arith.extf %805 : vector<1x128xbf16> to vector<1x128xf32>
    %807 = arith.truncf %803 : vector<16x32xf32> to vector<16x32xbf16>
    %cst_247 = arith.constant dense<0.000000e+00> : vector<16x128xf32>
    %808 = tpu.matmul %807, %804, %cst_247 {dimension_numbers = #tpu.dot_dimension_numbers<[1], [0], [0], [1], [0, 0, 1, 1], [], []>} : vector<16x32xbf16>, vector<32x128xbf16>, vector<16x128xf32> -> vector<16x128xf32>
    %809 = vector.broadcast %806 : vector<1x128xf32> to vector<16x128xf32>
    %810 = arith.addf %808, %809 : vector<16x128xf32>
    %c0_248 = arith.constant 0 : index
    %c0_249 = arith.constant 0 : index
    %811 = vector.load %arg10[%c0_248, %c0_249] : memref<16x128xf32, #tpu.memory_space<vmem>>, vector<16x128xf32>
    tpu.vector_store %arg10[%c0_248, %c0_249], %810 {strides = array<i32>} : memref<16x128xf32, #tpu.memory_space<vmem>>, vector<16x128xf32>,
    return
  }
  func.func @transform_0(%arg0: i32) -> (i32, i32) {
    %c0_i32 = arith.constant 0 : i32
    %c0_i32_0 = arith.constant 0 : i32
    %c0_i32_1 = arith.constant 0 : i32
    return %c0_i32, %c0_i32_0 : i32, i32
  }
  func.func @transform_1(%arg0: i32) -> (i32, i32) {
    %c0_i32 = arith.constant 0 : i32
    %c0_i32_0 = arith.constant 0 : i32
    %c0_i32_1 = arith.constant 0 : i32
    return %c0_i32, %c0_i32_0 : i32, i32
  }
  func.func @transform_2(%arg0: i32) -> (i32, i32) {
    %c0_i32 = arith.constant 0 : i32
    %c0_i32_0 = arith.constant 0 : i32
    %c0_i32_1 = arith.constant 0 : i32
    return %c0_i32, %c0_i32_0 : i32, i32
  }
  func.func @transform_3(%arg0: i32) -> (i32, i32) {
    %c0_i32 = arith.constant 0 : i32
    %c0_i32_0 = arith.constant 0 : i32
    %c0_i32_1 = arith.constant 0 : i32
    return %c0_i32, %c0_i32_0 : i32, i32
  }
  func.func @transform_4(%arg0: i32) -> (i32, i32) {
    %c0_i32 = arith.constant 0 : i32
    %c0_i32_0 = arith.constant 0 : i32
    %c0_i32_1 = arith.constant 0 : i32
    return %c0_i32, %c0_i32_0 : i32, i32
  }
  func.func @transform_5(%arg0: i32) -> (i32, i32) {
    %c0_i32 = arith.constant 0 : i32
    %c0_i32_0 = arith.constant 0 : i32
    %c0_i32_1 = arith.constant 0 : i32
    return %c0_i32, %c0_i32_0 : i32, i32
  }
  func.func @transform_6(%arg0: i32) -> (i32, i32, i32) {
    %c0_i32 = arith.constant 0 : i32
    %c0_i32_0 = arith.constant 0 : i32
    %c0_i32_1 = arith.constant 0 : i32
    %c0_i32_2 = arith.constant 0 : i32
    return %c0_i32, %c0_i32_0, %c0_i32_1 : i32, i32, i32
  }
  func.func @transform_7(%arg0: i32) -> (i32, i32, i32) {
    %c0_i32 = arith.constant 0 : i32
    %c0_i32_0 = arith.constant 0 : i32
    %c0_i32_1 = arith.constant 0 : i32
    %c0_i32_2 = arith.constant 0 : i32
    return %c0_i32, %c0_i32_0, %c0_i32_1 : i32, i32, i32
  }
  func.func @transform_8(%arg0: i32) -> (i32, i32) {
    %c0_i32 = arith.constant 0 : i32
    %c0_i32_0 = arith.constant 0 : i32
    %c0_i32_1 = arith.constant 0 : i32
    return %c0_i32, %c0_i32_0 : i32, i32
  }
  func.func @transform_9(%arg0: i32) -> (i32, i32) {
    %c0_i32 = arith.constant 0 : i32
    %c0_i32_0 = arith.constant 0 : i32
    %c0_i32_1 = arith.constant 0 : i32
    return %c0_i32, %c0_i32_0 : i32, i32
  }
}

</mosaic_0001>

<bundles_post_ra>
// kernel: ecoperceiver_forward.1
= control target key start
LH: loop header
LB: loop body
LE: loop exit
PB: predicated region body
PF: predicated region fallthrough
CT: control target
= control target key end

     0   :  { %14 = vsyncpa [#allocation3], 0  ;;  %s4297_s12 = smov [#allocation2]   ;;  %s4298_s14 = smov 64   ;;  %s5988_s0 = inlined_call_operand.vmem [shape: f32[16,32], index: 0, kind: input, shape index: {}]   ;;  %s5989_s1 = inlined_call_operand.vmem [shape: f32[128,40], index: 1, kind: input, shape index: {}]   ;;  %s5990_s2 = inlined_call_operand.vmem [shape: f32[16,128], index: 2, kind: input, shape index: {}]   ;;  %s5991_s3 = inlined_call_operand.vmem [shape: f32[16,40], index: 3, kind: input, shape index: {}]   ;;  %s5992_s4 = inlined_call_operand.vmem [shape: f32[16,16], index: 4, kind: input, shape index: {}]   ;;  %s5993_s5 = inlined_call_operand.vmem [shape: f32[16,16], index: 5, kind: input, shape index: {}]   ;;  %s5994_s6 = inlined_call_operand.hbm [shape: bf16[15,64,64], index: 6, kind: input, shape index: {}]   ;;  %s5995_s7 = inlined_call_operand.vmem [shape: f32[3,16,128], index: 7, kind: input, shape index: {}]   ;;  %s5996_s8 = inlined_call_operand.vmem [shape: bf16[48,128], index: 8, kind: input, shape index: {}]   ;;  %s5997_s9 = inlined_call_operand.vmem [shape: f32[16,128], index: 9, kind: output, shape index: {}]  }
   0x1   :  { %s31_s11 = sshll.u32 %s5994_s6, 4  ;;  %s33_s13 = sshll.u32 %s4297_s12, 4  ;;  %s32_s11 = int_to_ptr.hbm [resolvable:$true] %s31_s11  ;;  %s34_s13 = int_to_ptr.vmem [resolvable:$true] %s33_s13 }
   0x2   :  { %s4299_s15 = smov 4  }
   0x3   :  { %39 = dma.hbm_to_vmem [thread:$0]  %s32_s11, 7680, %s34_s13, [#allocation3], %s4298_s14, %s4298_s14, %s4299_s15  }
   0x4   :  { %4295 = dma.done.wait [#allocation3], 7680  }
   0x5   :  { %4296 = vsyncadd [#allocation3], 4294959616  ;;  %vm77_vm0 = vcmask 326656   ;;  %v53_v0 = vld [vmem:[%s5989_s1 + $0x10] sm:$0xff]  ;;  %v51_v1 = vld [vmem:[%s5989_s1] sm:$0xff]  ;;  %v4300_v14 = vmov 40.0  }
   0x6   :  { %v84_v2 = vsel %vm77_vm0, %v53_v0, 0.0  ;;  %v78_v3 = vsel %vm77_vm0, %v51_v1, 0.0  ;;  %v55_v4 = vld [vmem:[%s5989_s1 + $0x20] sm:$0xff]  ;;  %v54_v6 = vld [vmem:[%s5989_s1 + $0x18] sm:$0xff]  ;;  %v52_v7 = vld [vmem:[%s5989_s1 + $0x8] sm:$0xff]  ;;  %4040 = vrcp.f32 %v4300_v14  ;;  %vm525_vm2 = vcmask 1043456  }
   0x7   :  { %85 = vadd.xlane.f32.xlu1 %v84_v2  ;;  %79 = vadd.xlane.f32.xlu0 %v78_v3  ;;  %v90_v5 = vsel %vm77_vm0, %v55_v4, 0.0  ;;  %v56_v8 = vld [vmem:[%s5989_s1 + $0x28] sm:$0xff]  ;;  %v87_v9 = vsel %vm77_vm0, %v54_v6, 0.0  ;;  %v81_v10 = vsel %vm77_vm0, %v52_v7, 0.0  ;;  %v57_v12 = vld [vmem:[%s5989_s1 + $0x30] sm:$0xff]  ;;  %v4408_v34 = vld [vmem:[%s5989_s1 + $0x38] sm:$0xff] }
   0x8   :  { %91 = vadd.xlane.f32.xlu2 %v90_v5  ;;  %v93_v11 = vsel %vm77_vm0, %v56_v8, 0.0  ;;  %v96_v13 = vsel %vm77_vm0, %v57_v12, 0.0  ;;  %v99_v40 = vsel %vm77_vm0, %v4408_v34, 0.0  ;;  %v4432_v47 = vld [vmem:[%s5989_s1 + $0x40] sm:$0xff]  ;;  %v4448_v56 = vld [vmem:[%s5989_s1 + $0x58] sm:$0xff]  ;;  %v4453_v57 = vld [vmem:[%s5989_s1 + $0x48] sm:$0xff] }
   0x9   :  { %v102_v51 = vsel %vm77_vm0, %v4432_v47, 0.0  ;;  %v111_v59 = vsel %vm77_vm0, %v4448_v56, 0.0  ;;  %v105_v61 = vsel %vm77_vm0, %v4453_v57, 0.0  ;;  %v4467_v63 = vld [vmem:[%s5989_s1 + $0x60] sm:$0xff]  ;;  %s4302_s30 = smov 112   ;;  %s4303_s10 = smov 120  }
   0xa   :  { %s4304_s11 = smov 104   ;;  %s4305_s12 = smov 96  }
   0xb   :  { %s4306_s13 = smov 88   ;;  %s4307_s14 = smov 80  }
   0xc   :  { %v4041_v15 = vpop.eup %4040  ;;  %s4309_s19 = smov 8   ;;  %s4310_s6 = smov 16  }
   0xd   :  { %v127_v16 = vmul.f32 40.0, %v4041_v15  ;;  %vm131_vm1 = vweird.f32 %v4041_v15  ;;  %s4311_s20 = smov 24  }
   0xf   :  { %88 = vadd.xlane.f32.xlu1 %v87_v9  ;;  %82 = vadd.xlane.f32.xlu0 %v81_v10  ;;  %v128_v17 = vsub.f32 1.0, %v127_v16  ;;  %v3927_v16 = vld [vmem:[#allocation2 + $0x20] sm:$0xff] }
  0x10   :  { %94 = vadd.xlane.f32.xlu2 %v93_v11 }
  0x11   :  { %v129_v18 = vmul.f32 %v4041_v15, %v128_v17 }
  0x13   :  { %v130_v19 = vadd.f32 %v4041_v15, %v129_v18 }
  0x15   :  { %v4393_v20 = vsel %vm131_vm1, %v4041_v15, %v130_v19 }
  0x18   :  { %97 = vadd.xlane.f32.xlu2 %v96_v13  ;;  %v3928_v13 = vld [vmem:[#allocation2 + $0x28] sm:$0xff] }
  0x7a   :  { %v86_v21 = vpop.xlane.xlu1 %85  ;;  %v80_v22 = vpop.xlane.xlu0 %79 }
  0x7b   :  { %v133_v23 = vmul.f32 %v4393_v20, %v80_v22  ;;  %v92_v24 = vpop.xlane.xlu2 %91  ;;  %v135_v33 = vmul.f32 %v4393_v20, %v86_v21 }
  0x7c   :  { %v137_v32 = vmul.f32 %v4393_v20, %v92_v24 }
  0x7d   :  { %v4396_v25 = vsub.f32 %v51_v1, %v133_v23  ;;  %v4422_v42 = vsub.f32 %v53_v0, %v135_v33  ;;  %v4472_v0 = vld [vmem:[%s5989_s1 + $0x50] sm:$0xff]  ;;  %v114_v1 = vsel %vm77_vm0, %v4467_v63, 0.0 }
  0x7e   :  { %v4414_v38 = vsub.f32 %v55_v4, %v137_v32  ;;  %v108_v3 = vsel %vm77_vm0, %v4472_v0, 0.0  ;;  %v4482_v4 = vld [vmem:[%s5989_s1 + $0x68] sm:$0xff] }
  0x7f   :  { %v165_v26 = vmul.f32 %v4396_v25, %v4396_v25  ;;  %v167_v48 = vmul.f32 %v4422_v42, %v4422_v42  ;;  %v117_v5 = vsel %vm77_vm0, %v4482_v4, 0.0 }
  0x80   :  { %v169_v46 = vmul.f32 %v4414_v38, %v4414_v38 }
  0x81   :  { %v181_v27 = vsel %vm77_vm0, %v165_v26, 0.0  ;;  %v187_v52 = vsel %vm77_vm0, %v167_v48, 0.0 }
  0x82   :  { %v89_v28 = vpop.xlane.xlu1 %88  ;;  %182 = vadd.xlane.f32.xlu0 %v181_v27  ;;  %v83_v29 = vpop.xlane.xlu0 %82  ;;  %v193_v50 = vsel %vm77_vm0, %v169_v46, 0.0 }
  0x83   :  { %v136_v30 = vmul.f32 %v4393_v20, %v89_v28  ;;  %v134_v31 = vmul.f32 %v4393_v20, %v83_v29  ;;  %v95_v37 = vpop.xlane.xlu2 %94 }
  0x84   :  { %v138_v45 = vmul.f32 %v4393_v20, %v95_v37 }
  0x85   :  { %v4410_v35 = vsub.f32 %v54_v6, %v136_v30  ;;  %v4412_v36 = vsub.f32 %v52_v7, %v134_v31  ;;  %v4489_v6 = vld [vmem:[%s5989_s1 + $0x70] sm:$0xff] }
  0x86   :  { %v4436_v49 = vsub.f32 %v56_v8, %v138_v45  ;;  %v120_v7 = vsel %vm77_vm0, %v4489_v6, 0.0  ;;  %v476_v8 = vld [vmem:[#allocation2 + $0x30] sm:$0xf] }
  0x87   :  { %v168_v39 = vmul.f32 %v4410_v35, %v4410_v35  ;;  %v166_v41 = vmul.f32 %v4412_v36, %v4412_v36  ;;  %v495_v9 = vunpack.c.l.b16 %v476_v8 }
  0x88   :  { %v170_v55 = vmul.f32 %v4436_v49, %v4436_v49 }
  0x89   :  { %v190_v43 = vsel %vm77_vm0, %v168_v39, 0.0  ;;  %v184_v44 = vsel %vm77_vm0, %v166_v41, 0.0  ;;  %v498_v10 = vpack.c.b16 %v495_v9, %v495_v9 }
  0x8a   :  { %191 = vadd.xlane.f32.xlu2 %v190_v43  ;;  %100 = vadd.xlane.f32.xlu0 %v99_v40  ;;  %v196_v60 = vsel %vm77_vm0, %v170_v55, 0.0 }
  0x8b   :  { %185 = vadd.xlane.f32.xlu1 %v184_v44  ;;  %v98_v53 = vpop.xlane.xlu2 %97  ;;  %v527_v11 = vsel %vm525_vm2, %v498_v10, 0 }
  0x8c   :  { %v139_v54 = vmul.f32 %v4393_v20, %v98_v53  ;;  %534 = vmatpush.bf16.msra.mxu0 %v527_v11 }
  0x8e   :  { %v4455_v58 = vsub.f32 %v57_v12, %v139_v54 }
  0x90   :  { %v171_v62 = vmul.f32 %v4455_v58, %v4455_v58  ;;  %535 = vmatpush.bf16.msra.mxu0 %v3928_v13 }
  0x92   :  { %194 = vadd.xlane.f32.xlu2 %v193_v50  ;;  %103 = vadd.xlane.f32.xlu0 %v102_v51  ;;  %v199_v2 = vsel %vm77_vm0, %v171_v62, 0.0 }
  0x93   :  { %188 = vadd.xlane.f32.xlu1 %v187_v52 }
  0x94   :  { %536 = vmatpush.bf16.msra.mxu0 %v3927_v16 }
  0x9a   :  { %112 = vadd.xlane.f32.xlu2 %v111_v59  ;;  %197 = vadd.xlane.f32.xlu0 %v196_v60 }
  0x9b   :  { %106 = vadd.xlane.f32.xlu1 %v105_v61 }
  0xa2   :  { %115 = vadd.xlane.f32.xlu2 %v114_v1  ;;  %200 = vadd.xlane.f32.xlu0 %v199_v2 }
  0xa3   :  { %109 = vadd.xlane.f32.xlu1 %v108_v3 }
  0xaa   :  { %118 = vadd.xlane.f32.xlu0 %v117_v5 }
  0xb2   :  { %121 = vadd.xlane.f32.xlu0 %v120_v7  ;;  %v4534_v7 = vld [vmem:[%s5995_s7] sm:$0xff] }
  0xf5   :  { %v183_v12 = vpop.xlane.xlu0 %182 }
  0xf6   :  { %v229_v14 = vmul.f32 %v183_v12, %v4393_v20 }
  0xf8   :  { %v245_v15 = vadd.f32 1e-05, %v229_v14 }
  0xfa   :  { %4042 = vrsqrt.f32 %v245_v15  ;;  %vm267_vm4 = vweird.f32 %v245_v15 }
  0xfd   :  { %v192_v17 = vpop.xlane.xlu2 %191  ;;  %v101_v18 = vpop.xlane.xlu0 %100 }
  0xfe   :  { %v232_v19 = vmul.f32 %v192_v17, %v4393_v20  ;;  %v186_v21 = vpop.xlane.xlu1 %185  ;;  %v140_v22 = vmul.f32 %v4393_v20, %v101_v18  ;;  %v4563_v17 = vperm.slane %v4534_v7, 2 }
  0xff   :  { %v230_v23 = vmul.f32 %v186_v21, %v4393_v20 }
 0x100   :  { %v4043_v24 = vpop.eup %4042  ;;  %v4498_v26 = vadd.f32 1e-05, %v232_v19  ;;  %v4501_v27 = vsub.f32 %v4408_v34, %v140_v22 }
 0x101   :  { %v262_v28 = vmul.f32 %v4043_v24, %v245_v15  ;;  %v246_v29 = vadd.f32 1e-05, %v230_v23  ;;  %vm268_vm3 = vweird.f32 %v4043_v24 }
 0x102   :  { %4044 = vrsqrt.f32 %v4498_v26  ;;  %v172_v30 = vmul.f32 %v4501_v27, %v4501_v27  ;;  %vm4524_vm7 = vmor %vm267_vm4, %vm268_vm3  ;;  %vm297_vm11 = vweird.f32 %v4498_v26 }
 0x103   :  { %v263_v31 = vmul.f32 %v4043_v24, %v262_v28  ;;  %4046 = vrsqrt.f32 %v246_v29  ;;  %vm277_vm5 = vweird.f32 %v246_v29 }
 0x104   :  { %v202_v32 = vsel %vm77_vm0, %v172_v30, 0.0 }
 0x105   :  { %v264_v33 = vmul.f32 0.5, %v263_v31  ;;  %v195_v37 = vpop.xlane.xlu2 %194  ;;  %203 = vadd.xlane.f32.xlu1 %v202_v32  ;;  %v104_v39 = vpop.xlane.xlu0 %103 }
 0x106   :  { %v189_v40 = vpop.xlane.xlu1 %188  ;;  %v141_v41 = vmul.f32 %v4393_v20, %v104_v39  ;;  %v233_v48 = vmul.f32 %v195_v37, %v4393_v20 }
 0x107   :  { %v265_v34 = vsub.f32 1.5, %v264_v33  ;;  %v231_v43 = vmul.f32 %v189_v40, %v4393_v20  ;;  %v4584_v33 = vperm.slane %v4534_v7, 3 }
 0x108   :  { %v4509_v44 = vpop.eup %4044  ;;  %v4512_v45 = vsub.f32 %v4432_v47, %v141_v41  ;;  %v4522_v47 = vadd.f32 1e-05, %v233_v48 }
 0x109   :  { %v4047_v46 = vpop.eup %4046  ;;  %v4515_v50 = vadd.f32 1e-05, %v231_v43  ;;  %v266_v52 = vmul.f32 %v4043_v24, %v265_v34  ;;  %v292_v53 = vmul.f32 %v4509_v44, %v4498_v26  ;;  %vm298_vm12 = vweird.f32 %v4509_v44 }
 0x10a   :  { %v272_v51 = vmul.f32 %v4047_v46, %v246_v29  ;;  %v173_v55 = vmul.f32 %v4512_v45, %v4512_v45  ;;  %vm278_vm6 = vweird.f32 %v4047_v46  ;;  %vm4622_vm14 = vmor %vm297_vm11, %vm298_vm12  ;;  %vm307_vm3 = vweird.f32 %v4522_v47 }
 0x10b   :  { %4048 = vrsqrt.f32 %v4515_v50  ;;  %v270_v8 = vsel %vm4524_vm7, %v4043_v24, %v266_v52  ;;  %v293_v9 = vmul.f32 %v4509_v44, %v292_v53  ;;  %vm4549_vm8 = vmor %vm277_vm5, %vm278_vm6  ;;  %vm287_vm9 = vweird.f32 %v4515_v50 }
 0x10c   :  { %v273_v54 = vmul.f32 %v4047_v46, %v272_v51  ;;  %v205_v3 = vsel %vm77_vm0, %v173_v55, 0.0  ;;  %4050 = vrsqrt.f32 %v4522_v47  ;;  %v421_v21 = vmul.f32 %v270_v8, %v4396_v25 }
 0x10d   :  { %v113_v59 = vpop.xlane.xlu2 %112  ;;  %v198_v60 = vpop.xlane.xlu0 %197  ;;  %206 = vadd.xlane.f32.xlu1 %v205_v3  ;;  %v294_v22 = vmul.f32 0.5, %v293_v9  ;;  %vm594_vm5 = vcmask 261120  }
 0x10e   :  { %v274_v62 = vmul.f32 0.5, %v273_v54  ;;  %v144_v1 = vmul.f32 %v4393_v20, %v113_v59  ;;  %v107_v2 = vpop.xlane.xlu1 %106  ;;  %v234_v5 = vmul.f32 %v198_v60, %v4393_v20  ;;  %v438_v34 = vmul.f32 %v4563_v17, %v421_v21 }
 0x10f   :  { %v142_v10 = vmul.f32 %v4393_v20, %v107_v2 }
 0x110   :  { %v275_v11 = vsub.f32 1.5, %v274_v62  ;;  %v4541_v12 = vsub.f32 %v4448_v56, %v144_v1  ;;  %v4543_v13 = vadd.f32 1e-05, %v234_v5  ;;  %v4560_v56 = vld [vmem:[%s5989_s1 + $0x78] sm:$0xff] }
 0x111   :  { %v4545_v14 = vpop.eup %4048  ;;  %v4555_v16 = vsub.f32 %v4453_v57, %v142_v10  ;;  %v123_v29 = vsel %vm77_vm0, %v4560_v56, 0.0 }
 0x112   :  { %v276_v18 = vmul.f32 %v4047_v46, %v275_v11  ;;  %v282_v19 = vmul.f32 %v4545_v14, %v4515_v50  ;;  %4052 = vrsqrt.f32 %v4543_v13  ;;  %v176_v57 = vmul.f32 %v4541_v12, %v4541_v12  ;;  %v4589_v43 = vpop.eup %4050 }
 0x113   :  { %v174_v28 = vmul.f32 %v4555_v16, %v4555_v16  ;;  %vm288_vm10 = vweird.f32 %v4545_v14  ;;  %v302_v62 = vmul.f32 %v4589_v43, %v4522_v47  ;;  %vm317_vm15 = vweird.f32 %v4543_v13 }
 0x114   :  { %v280_v23 = vsel %vm4549_vm8, %v4047_v46, %v276_v18  ;;  %v283_v24 = vmul.f32 %v4545_v14, %v282_v19  ;;  %v214_v25 = vsel %vm77_vm0, %v176_v57, 0.0  ;;  %v295_v46 = vsub.f32 1.5, %v294_v22  ;;  %vm4609_vm13 = vmor %vm287_vm9, %vm288_vm10 }
 0x115   :  { %v116_v30 = vpop.xlane.xlu2 %115  ;;  %v4580_v31 = vpop.xlane.xlu0 %200  ;;  %v422_v32 = vmul.f32 %v280_v23, %v4412_v36  ;;  %215 = vadd.xlane.f32.xlu0 %v214_v25  ;;  %v208_v40 = vsel %vm77_vm0, %v174_v28, 0.0  ;;  %124 = vadd.xlane.f32.xlu1 %v123_v29  ;;  %v303_v18 = vmul.f32 %v4589_v43, %v302_v62  ;;  %vm308_vm4 = vweird.f32 %v4589_v43 }
 0x116   :  { %v284_v37 = vmul.f32 0.5, %v283_v24  ;;  %v145_v39 = vmul.f32 %v4393_v20, %v116_v30  ;;  %v110_v41 = vpop.xlane.xlu1 %109  ;;  %209 = vadd.xlane.f32.xlu2 %v208_v40  ;;  %v296_v61 = vmul.f32 %v4509_v44, %v295_v46  ;;  %vm309_vm7 = vmor %vm307_vm3, %vm308_vm4 }
 0x117   :  { %v143_v36 = vmul.f32 %v4393_v20, %v110_v41  ;;  %v439_v48 = vmul.f32 %v4563_v17, %v422_v32  ;;  %v304_v23 = vmul.f32 0.5, %v303_v18 }
 0x118   :  { %v4594_v51 = vpop.eup %4052  ;;  %v285_v52 = vsub.f32 1.5, %v284_v37  ;;  %v4597_v53 = vsub.f32 %v4467_v63, %v145_v39  ;;  %v455_v63 = vadd.f32 %v4584_v33, %v438_v34  ;;  %v300_v15 = vsel %vm4622_vm14, %v4509_v44, %v296_v61  ;;  %v4661_v37 = vld [vmem:[%s5988_s0] sm:$0xff] }
 0x119   :  { %v312_v54 = vmul.f32 %v4594_v51, %v4543_v13  ;;  %v4604_v55 = vsub.f32 %v4472_v0, %v143_v36  ;;  %v456_v26 = vadd.f32 %v4584_v33, %v439_v48  ;;  %v424_v57 = vmul.f32 %v300_v15, %v4410_v35  ;;  %v4676_v36 = vld [vmem:[%s5988_s0 + $0x8] sm:$0xff] }
 0x11a   :  { %v286_v59 = vmul.f32 %v4545_v14, %v285_v52  ;;  %v177_v1 = vmul.f32 %v4597_v53, %v4597_v53  ;;  %v305_v25 = vsub.f32 1.5, %v304_v23  ;;  %vm318_vm1 = vweird.f32 %v4594_v51 }
 0x11b   :  { %v175_v0 = vmul.f32 %v4604_v55, %v4604_v55  ;;  %v477_v2 = vpack.c.bf16 %v456_v26, %v455_v63  ;;  %v313_v5 = vmul.f32 %v4594_v51, %v312_v54  ;;  %vm319_vm6 = vmor %vm317_vm15, %vm318_vm1  ;;  %v595_v41 = vsel %vm594_vm5, %v4661_v37, 0.0 }
 0x11c   :  { %v290_v3 = vsel %vm4609_vm13, %v4545_v14, %v286_v59  ;;  %v217_v9 = vsel %vm77_vm0, %v177_v1, 0.0  ;;  %v306_v39 = vmul.f32 %v4589_v43, %v305_v25  ;;  %v598_v52 = vsel %vm594_vm5, %v4676_v36, 0.0 }
 0x11d   :  { %v211_v8 = vsel %vm77_vm0, %v175_v0, 0.0  ;;  %v119_v10 = vpop.xlane.xlu0 %118  ;;  %3724 = vmatmul.msk.bf16.vlgmr.msra.gmra.mxu0 %vm77_vm0, %v477_v2  ;;  %218 = vadd.xlane.f32.xlu1 %v217_v9  ;;  %v423_v19 = vmul.f32 %v290_v3, %v4422_v42  ;;  %v314_v21 = vmul.f32 0.5, %v313_v5 }
 0x11e   :  { %v146_v11 = vmul.f32 %v4393_v20, %v119_v10  ;;  %212 = vadd.xlane.f32.xlu2 %v211_v8  ;;  %v310_v46 = vsel %vm309_vm7, %v4589_v43, %v306_v39 }
 0x11f   :  { %v440_v44 = vmul.f32 %v4563_v17, %v423_v19  ;;  %v315_v28 = vsub.f32 1.5, %v314_v21  ;;  %v425_v54 = vmul.f32 %v310_v46, %v4414_v38  ;;  %v4301_v19 = vmov 32.0  }
 0x120   :  { %v4639_v14 = vsub.f32 %v4482_v4, %v146_v11  ;;  %v441_v4 = vmul.f32 %v4563_v17, %v424_v57 }
 0x121   :  { %v457_v35 = vadd.f32 %v4584_v33, %v440_v44  ;;  %v316_v32 = vmul.f32 %v4594_v51, %v315_v28  ;;  %v442_v59 = vmul.f32 %v4563_v17, %v425_v54 }
 0x122   :  { %v178_v22 = vmul.f32 %v4639_v14, %v4639_v14  ;;  %v458_v13 = vadd.f32 %v4584_v33, %v441_v4 }
 0x123   :  { %v320_v34 = vsel %vm319_vm6, %v4594_v51, %v316_v32  ;;  %v459_v60 = vadd.f32 %v4584_v33, %v442_v59 }
 0x124   :  { %v220_v24 = vsel %vm77_vm0, %v178_v22, 0.0  ;;  %v478_v47 = vpack.c.bf16 %v458_v13, %v457_v35  ;;  %v426_v48 = vmul.f32 %v320_v34, %v4436_v49  ;;  %v235_v49 = vmul.f32 %v4580_v31, %v4393_v20 }
 0x125   :  { %v122_v29 = vpop.xlane.xlu0 %121 }
 0x126   :  { %v147_v30 = vmul.f32 %v4393_v20, %v122_v29  ;;  %221 = vadd.xlane.f32.xlu2 %v220_v24  ;;  %v443_v51 = vmul.f32 %v4563_v17, %v426_v48  ;;  %v251_v26 = vadd.f32 1e-05, %v235_v49 }
 0x128   :  { %v4652_v42 = vsub.f32 %v4489_v6, %v147_v30  ;;  %v460_v43 = vadd.f32 %v4584_v33, %v443_v51  ;;  %4054 = vrsqrt.f32 %v251_v26  ;;  %vm327_vm8 = vweird.f32 %v251_v26 }
 0x12a   :  { %v179_v6 = vmul.f32 %v4652_v42, %v4652_v42  ;;  %v479_v63 = vpack.c.bf16 %v460_v43, %v459_v60 }
 0x12c   :  { %v223_v40 = vsel %vm77_vm0, %v179_v6, 0.0 }
 0x12d   :  { %224 = vadd.xlane.f32.xlu0 %v223_v40  ;;  %3725 = vmatmul.msk.bf16.gmra.mxu0 %vm77_vm0, %v478_v47 }
 0x12e   :  { %596 = vadd.xlane.f32.xlu2 %v595_v41  ;;  %v4055_v61 = vpop.eup %4054 }
 0x12f   :  { %v322_v62 = vmul.f32 %v4055_v61, %v251_v26  ;;  %vm328_vm9 = vweird.f32 %v4055_v61 }
 0x130   :  { %vm4693_vm10 = vmor %vm327_vm8, %vm328_vm9 }
 0x131   :  { %v323_v0 = vmul.f32 %v4055_v61, %v322_v62 }
 0x133   :  { %v324_v2 = vmul.f32 0.5, %v323_v0 }
 0x135   :  { %599 = vadd.xlane.f32.xlu0 %v598_v52  ;;  %v325_v3 = vsub.f32 1.5, %v324_v2 }
 0x137   :  { %v326_v31 = vmul.f32 %v4055_v61, %v325_v3 }
 0x139   :  { %v330_v22 = vsel %vm4693_vm10, %v4055_v61, %v326_v31 }
 0x13a   :  { %v427_v32 = vmul.f32 %v330_v22, %v4455_v58 }
 0x13c   :  { %v444_v48 = vmul.f32 %v4563_v17, %v427_v32 }
 0x13d   :  { %3726 = vmatmul.msk.bf16.gmra.mxu0 %vm77_vm0, %v479_v63 }
 0x13e   :  { %v461_v26 = vadd.f32 %v4584_v33, %v444_v48 }
 0x178   :  { %v204_v38 = vpop.xlane.xlu1 %203 }
 0x179   :  { %v236_v1 = vmul.f32 %v204_v38, %v4393_v20 }
 0x17b   :  { %v252_v50 = vadd.f32 1e-05, %v236_v1 }
 0x17d   :  { %4056 = vrsqrt.f32 %v252_v50  ;;  %vm337_vm12 = vweird.f32 %v252_v50 }
 0x17e   :  { %4058 = vrcp.f32 %v4301_v19 }
 0x180   :  { %v207_v5 = vpop.xlane.xlu1 %206 }
 0x181   :  { %v237_v9 = vmul.f32 %v207_v5, %v4393_v20 }
 0x183   :  { %v4057_v8 = vpop.eup %4056  ;;  %v4691_v11 = vadd.f32 1e-05, %v237_v9 }
 0x184   :  { %v332_v10 = vmul.f32 %v4057_v8, %v252_v50  ;;  %vm338_vm11 = vweird.f32 %v4057_v8  ;;  %v4703_v4 = vpop.eup %4058 }
 0x185   :  { %4060 = vrsqrt.f32 %v4691_v11  ;;  %vm339_vm13 = vmor %vm337_vm12, %vm338_vm11  ;;  %v602_v34 = vmul.f32 32.0, %v4703_v4  ;;  %vm347_vm15 = vweird.f32 %v4691_v11  ;;  %vm606_vm7 = vweird.f32 %v4703_v4 }
 0x186   :  { %v333_v18 = vmul.f32 %v4057_v8, %v332_v10 }
 0x187   :  { %v603_v60 = vsub.f32 1.0, %v602_v34 }
 0x188   :  { %v334_v21 = vmul.f32 0.5, %v333_v18  ;;  %v216_v57 = vpop.xlane.xlu0 %215  ;;  %v125_v44 = vpop.xlane.xlu1 %124 }
 0x189   :  { %v210_v24 = vpop.xlane.xlu2 %209  ;;  %v240_v28 = vmul.f32 %v216_v57, %v4393_v20  ;;  %v148_v30 = vmul.f32 %v4393_v20, %v125_v44  ;;  %v604_v50 = vmul.f32 %v4703_v4, %v603_v60 }
 0x18a   :  { %v335_v23 = vsub.f32 1.5, %v334_v21  ;;  %v238_v29 = vmul.f32 %v210_v24, %v4393_v20 }
 0x18b   :  { %v4705_v35 = vadd.f32 1e-05, %v240_v28  ;;  %v4061_v13 = vpop.eup %4060  ;;  %v4709_v39 = vsub.f32 %v4560_v56, %v148_v30  ;;  %v605_v21 = vadd.f32 %v4703_v4, %v604_v50 }
 0x18c   :  { %v336_v25 = vmul.f32 %v4057_v8, %v335_v23  ;;  %v254_v6 = vadd.f32 1e-05, %v238_v29  ;;  %v342_v40 = vmul.f32 %v4061_v13, %v4691_v11  ;;  %vm348_vm14 = vweird.f32 %v4061_v13 }
 0x18d   :  { %4062 = vrsqrt.f32 %v4705_v35  ;;  %v180_v41 = vmul.f32 %v4709_v39, %v4709_v39  ;;  %vm349_vm4 = vmor %vm347_vm15, %vm348_vm14  ;;  %vm377_vm10 = vweird.f32 %v4705_v35 }
 0x18e   :  { %v340_v47 = vsel %vm339_vm13, %v4057_v8, %v336_v25  ;;  %4064 = vrsqrt.f32 %v254_v6  ;;  %v343_v46 = vmul.f32 %v4061_v13, %v342_v40  ;;  %vm357_vm1 = vweird.f32 %v254_v6 }
 0x18f   :  { %v428_v58 = vmul.f32 %v340_v47, %v4501_v27  ;;  %v226_v52 = vsel %vm77_vm0, %v180_v41, 0.0  ;;  %v4745_v25 = vsel %vm606_vm7, %v4703_v4, %v605_v21 }
 0x190   :  { %v344_v56 = vmul.f32 0.5, %v343_v46  ;;  %227 = vadd.xlane.f32.xlu1 %v226_v52  ;;  %v219_v43 = vpop.xlane.xlu1 %218 }
 0x191   :  { %v213_v54 = vpop.xlane.xlu2 %212  ;;  %v445_v51 = vmul.f32 %v4563_v17, %v428_v58  ;;  %v241_v0 = vmul.f32 %v219_v43, %v4393_v20 }
 0x192   :  { %v239_v59 = vmul.f32 %v213_v54, %v4393_v20  ;;  %v345_v49 = vsub.f32 1.5, %v344_v56 }
 0x193   :  { %v4721_v63 = vpop.eup %4062  ;;  %v462_v27 = vadd.f32 %v4584_v33, %v445_v51  ;;  %v4731_v9 = vadd.f32 1e-05, %v241_v0 }
 0x194   :  { %v4065_v61 = vpop.eup %4064  ;;  %v255_v62 = vadd.f32 1e-05, %v239_v59  ;;  %v346_v2 = vmul.f32 %v4061_v13, %v345_v49  ;;  %v372_v5 = vmul.f32 %v4721_v63, %v4705_v35  ;;  %vm378_vm11 = vweird.f32 %v4721_v63 }
 0x195   :  { %v352_v38 = vmul.f32 %v4065_v61, %v254_v6  ;;  %v480_v1 = vpack.c.bf16 %v462_v27, %v461_v26  ;;  %vm358_vm3 = vweird.f32 %v4065_v61  ;;  %vm379_vm13 = vmor %vm377_vm10, %vm378_vm11 }
 0x196   :  { %4066 = vrsqrt.f32 %v255_v62  ;;  %v350_v15 = vsel %vm349_vm4, %v4061_v13, %v346_v2  ;;  %v373_v19 = vmul.f32 %v4721_v63, %v372_v5  ;;  %vm359_vm6 = vmor %vm357_vm1, %vm358_vm3  ;;  %vm367_vm8 = vweird.f32 %v255_v62 }
 0x197   :  { %v353_v3 = vmul.f32 %v4065_v61, %v352_v38  ;;  %3727 = vmatmul.msk.bf16.gmra.mxu0 %vm77_vm0, %v480_v1  ;;  %4068 = vrsqrt.f32 %v4731_v9  ;;  %v429_v24 = vmul.f32 %v350_v15, %v4512_v45  ;;  %vm387_vm1 = vweird.f32 %v4731_v9 }
 0x198   :  { %v374_v28 = vmul.f32 0.5, %v373_v19 }
 0x199   :  { %v354_v8 = vmul.f32 0.5, %v353_v3  ;;  %v222_v10 = vpop.xlane.xlu2 %221  ;;  %v446_v40 = vmul.f32 %v4563_v17, %v429_v24 }
 0x19a   :  { %v242_v31 = vmul.f32 %v222_v10, %v4393_v20  ;;  %v375_v45 = vsub.f32 1.5, %v374_v28  ;;  %v4795_v28 = vpop.f32.mrf.mxu0 }
 0x19b   :  { %v355_v18 = vsub.f32 1.5, %v354_v8  ;;  %v463_v56 = vadd.f32 %v4584_v33, %v446_v40 }
 0x19c   :  { %v4067_v22 = vpop.eup %4066  ;;  %v4736_v57 = vadd.f32 1e-05, %v242_v31 }
 0x19d   :  { %v356_v11 = vmul.f32 %v4065_v61, %v355_v18  ;;  %v362_v23 = vmul.f32 %v4067_v22, %v255_v62  ;;  %v4069_v34 = vpop.eup %4068  ;;  %vm368_vm9 = vweird.f32 %v4067_v22 }
 0x19e   :  { %4070 = vrsqrt.f32 %v4736_v57  ;;  %vm4757_vm12 = vmor %vm367_vm8, %vm368_vm9  ;;  %v382_v35 = vmul.f32 %v4069_v34, %v4731_v9  ;;  %vm397_vm14 = vweird.f32 %v4736_v57  ;;  %vm388_vm3 = vweird.f32 %v4069_v34 }
 0x19f   :  { %v360_v44 = vsel %vm359_vm6, %v4065_v61, %v356_v11  ;;  %v363_v29 = vmul.f32 %v4067_v22, %v362_v23  ;;  %vm389_vm6 = vmor %vm387_vm1, %vm388_vm3 }
 0x1a0   :  { %v4742_v30 = vpop.xlane.xlu0 %224  ;;  %v430_v32 = vmul.f32 %v360_v44, %v4555_v16  ;;  %v383_v38 = vmul.f32 %v4069_v34, %v382_v35 }
 0x1a1   :  { %v364_v13 = vmul.f32 0.5, %v363_v29  ;;  %v597_v6 = vpop.xlane.xlu2 %596 }
 0x1a2   :  { %v608_v47 = vmul.f32 %v4745_v25, %v597_v6  ;;  %v447_v41 = vmul.f32 %v4563_v17, %v430_v32  ;;  %v384_v5 = vmul.f32 0.5, %v383_v38  ;;  %v4797_v29 = vpop.f32.mrf.mxu0  ;;  %v3930_v38 = vld [vmem:[#allocation2 + $0x8] sm:$0xff] }
 0x1a3   :  { %v365_v46 = vsub.f32 1.5, %v364_v13  ;;  %679 = vmatpush.bf16.msra.mxu1 %v3930_v38 }
 0x1a4   :  { %v4071_v58 = vpop.eup %4070  ;;  %v4752_v48 = vsub.f32 %v4661_v37, %v608_v47  ;;  %v464_v54 = vadd.f32 %v4584_v33, %v447_v41  ;;  %v376_v37 = vmul.f32 %v4721_v63, %v375_v45  ;;  %v385_v31 = vsub.f32 1.5, %v384_v5  ;;  %v3929_v5 = vld [vmem:[#allocation2] sm:$0xff] }
 0x1a5   :  { %v366_v16 = vmul.f32 %v4067_v22, %v365_v46  ;;  %v392_v4 = vmul.f32 %v4071_v58, %v4736_v57  ;;  %vm398_vm15 = vweird.f32 %v4071_v58 }
 0x1a6   :  { %v612_v51 = vmul.f32 %v4752_v48, %v4752_v48  ;;  %v481_v43 = vpack.c.bf16 %v464_v54, %v463_v56  ;;  %v380_v62 = vsel %vm379_vm13, %v4721_v63, %v376_v37  ;;  %vm399_vm4 = vmor %vm397_vm14, %vm398_vm15  ;;  %v386_v15 = vmul.f32 %v4069_v34, %v385_v31 }
 0x1a7   :  { %v370_v26 = vsel %vm4757_vm12, %v4067_v22, %v366_v16  ;;  %v393_v27 = vmul.f32 %v4071_v58, %v392_v4  ;;  %v432_v3 = vmul.f32 %v380_v62, %v4541_v12  ;;  %680 = vmatpush.bf16.msra.mxu1 %v3929_v5 }
 0x1a8   :  { %v600_v59 = vpop.xlane.xlu0 %599  ;;  %v614_v49 = vsel %vm594_vm5, %v612_v51, 0.0  ;;  %3728 = vmatmul.msk.bf16.gmra.mxu0 %vm77_vm0, %v481_v43  ;;  %v431_v1 = vmul.f32 %v370_v26, %v4604_v55  ;;  %v390_v21 = vsel %vm389_vm6, %v4069_v34, %v386_v15  ;;  %vm734_vm6 = vcmask 64512  }
 0x1a9   :  { %v609_v60 = vmul.f32 %v4745_v25, %v600_v59  ;;  %615 = vadd.xlane.f32.xlu1 %v614_v49  ;;  %v394_v50 = vmul.f32 0.5, %v393_v27  ;;  %v433_v57 = vmul.f32 %v390_v21, %v4597_v53  ;;  %v243_v53 = vmul.f32 %v4742_v30, %v4393_v20 }
 0x1aa   :  { %v448_v8 = vmul.f32 %v4563_v17, %v431_v1  ;;  %v4799_v32 = vpop.f32.mrf.mxu0 }
 0x1ab   :  { %v4773_v61 = vsub.f32 %v4676_v36, %v609_v60  ;;  %v395_v10 = vsub.f32 1.5, %v394_v50  ;;  %v449_v36 = vmul.f32 %v4563_v17, %v432_v3  ;;  %v450_v9 = vmul.f32 %v4563_v17, %v433_v57 }
 0x1ac   :  { %v465_v63 = vadd.f32 %v4584_v33, %v448_v8 }
 0x1ad   :  { %v613_v0 = vmul.f32 %v4773_v61, %v4773_v61  ;;  %v396_v55 = vmul.f32 %v4071_v58, %v395_v10  ;;  %v466_v12 = vadd.f32 %v4584_v33, %v449_v36  ;;  %v467_v24 = vadd.f32 %v4584_v33, %v450_v9 }
 0x1af   :  { %v617_v2 = vsel %vm594_vm5, %v613_v0, 0.0  ;;  %v482_v18 = vpack.c.bf16 %v466_v12, %v465_v63  ;;  %v400_v19 = vsel %vm399_vm4, %v4071_v58, %v396_v55 }
 0x1b0   :  { %618 = vadd.xlane.f32.xlu2 %v617_v2  ;;  %v434_v22 = vmul.f32 %v400_v19, %v4639_v14  ;;  %v259_v14 = vadd.f32 1e-05, %v243_v53 }
 0x1b2   :  { %v451_v11 = vmul.f32 %v4563_v17, %v434_v22  ;;  %4072 = vrsqrt.f32 %v259_v14  ;;  %v4803_v13 = vpop.f32.mrf.mxu0  ;;  %vm407_vm7 = vweird.f32 %v259_v14 }
 0x1b4   :  { %v468_v23 = vadd.f32 %v4584_v33, %v451_v11 }
 0x1b6   :  { %v483_v44 = vpack.c.bf16 %v468_v23, %v467_v24  ;;  %v646_v24 = vperm.slane %v4534_v7, 0 }
 0x1b8   :  { %3729 = vmatmul.msk.bf16.gmra.mxu0 %vm77_vm0, %v482_v18  ;;  %v4073_v6 = vpop.eup %4072 }
 0x1b9   :  { %v402_v47 = vmul.f32 %v4073_v6, %v259_v14  ;;  %vm408_vm8 = vweird.f32 %v4073_v6 }
 0x1ba   :  { %v4805_v40 = vpop.f32.mrf.mxu0  ;;  %vm409_vm9 = vmor %vm407_vm7, %vm408_vm8 }
 0x1bb   :  { %v403_v41 = vmul.f32 %v4073_v6, %v402_v47 }
 0x1bd   :  { %v404_v58 = vmul.f32 0.5, %v403_v41  ;;  %v649_v41 = vperm.slane %v4534_v7, 1 }
 0x1bf   :  { %v405_v16 = vsub.f32 1.5, %v404_v58 }
 0x1c1   :  { %v406_v52 = vmul.f32 %v4073_v6, %v405_v16 }
 0x1c2   :  { %v4808_v4 = vpop.f32.mrf.mxu0 }
 0x1c3   :  { %v410_v51 = vsel %vm409_vm9, %v4073_v6, %v406_v52 }
 0x1c4   :  { %v435_v43 = vmul.f32 %v410_v51, %v4652_v42 }
 0x1c6   :  { %v452_v27 = vmul.f32 %v4563_v17, %v435_v43 }
 0x1c8   :  { %3730 = vmatmul.msk.bf16.gmra.mxu0 %vm77_vm0, %v483_v44  ;;  %v469_v3 = vadd.f32 %v4584_v33, %v452_v27 }
 0x203   :  { %v228_v34 = vpop.xlane.xlu1 %227 }
 0x204   :  { %v244_v45 = vmul.f32 %v228_v34, %v4393_v20 }
 0x206   :  { %v260_v46 = vadd.f32 1e-05, %v244_v45 }
 0x208   :  { %4074 = vrsqrt.f32 %v260_v46  ;;  %vm417_vm11 = vweird.f32 %v260_v46 }
 0x20e   :  { %v4075_v30 = vpop.eup %4074 }
 0x20f   :  { %v412_v56 = vmul.f32 %v4075_v30, %v260_v46  ;;  %vm418_vm10 = vweird.f32 %v4075_v30 }
 0x210   :  { %vm419_vm12 = vmor %vm417_vm11, %vm418_vm10 }
 0x211   :  { %v413_v54 = vmul.f32 %v4075_v30, %v412_v56 }
 0x213   :  { %v414_v37 = vmul.f32 0.5, %v413_v54 }
 0x214   :  { %v4810_v35 = vpop.f32.mrf.mxu0 }
 0x215   :  { %v415_v59 = vsub.f32 1.5, %v414_v37 }
 0x217   :  { %v416_v60 = vmul.f32 %v4075_v30, %v415_v59 }
 0x219   :  { %v420_v49 = vsel %vm419_vm12, %v4075_v30, %v416_v60 }
 0x21a   :  { %v436_v26 = vmul.f32 %v420_v49, %v4709_v39 }
 0x21c   :  { %v616_v62 = vpop.xlane.xlu1 %615  ;;  %v555_v1 = vpop.f32.mrf.mxu0  ;;  %v453_v50 = vmul.f32 %v4563_v17, %v436_v26 }
 0x21d   :  { %v620_v0 = vmul.f32 %v616_v62, %v4745_v25 }
 0x21e   :  { %v470_v42 = vadd.f32 %v4584_v33, %v453_v50 }
 0x21f   :  { %v622_v2 = vadd.f32 1e-05, %v620_v0 }
 0x220   :  { %v484_v8 = vpack.c.bf16 %v470_v42, %v469_v3 }
 0x221   :  { %4076 = vrsqrt.f32 %v622_v2  ;;  %vm630_vm13 = vweird.f32 %v622_v2 }
 0x222   :  { %3731 = vmatmul.msk.bf16.gmra.mxu0 %vm77_vm0, %v484_v8 }
 0x223   :  { %v619_v10 = vpop.xlane.xlu2 %618 }
 0x224   :  { %v621_v39 = vmul.f32 %v619_v10, %v4745_v25 }
 0x225   :  { %v558_v63 = vpop.f32.mrf.mxu0 }
 0x226   :  { %v623_v36 = vadd.f32 1e-05, %v621_v39 }
 0x227   :  { %v4077_v31 = vpop.eup %4076 }
 0x228   :  { %4078 = vrsqrt.f32 %v623_v36  ;;  %v625_v17 = vmul.f32 %v4077_v31, %v622_v2  ;;  %vm631_vm14 = vweird.f32 %v4077_v31  ;;  %vm640_vm1 = vweird.f32 %v623_v36 }
 0x229   :  { %vm632_vm15 = vmor %vm630_vm13, %vm631_vm14 }
 0x22a   :  { %v626_v55 = vmul.f32 %v4077_v31, %v625_v17 }
 0x22c   :  { %v627_v12 = vmul.f32 0.5, %v626_v55 }
 0x22d   :  { %v560_v19 = vpop.f32.mrf.mxu0 }
 0x22e   :  { %v4079_v15 = vpop.eup %4078  ;;  %v628_v33 = vsub.f32 1.5, %v627_v12 }
 0x22f   :  { %v635_v18 = vmul.f32 %v4079_v15, %v623_v36  ;;  %vm641_vm3 = vweird.f32 %v4079_v15 }
 0x230   :  { %v629_v21 = vmul.f32 %v4077_v31, %v628_v33  ;;  %vm642_vm4 = vmor %vm640_vm1, %vm641_vm3 }
 0x231   :  { %v636_v22 = vmul.f32 %v4079_v15, %v635_v18 }
 0x232   :  { %v633_v57 = vsel %vm632_vm15, %v4077_v31, %v629_v21 }
 0x233   :  { %v637_v11 = vmul.f32 0.5, %v636_v22  ;;  %v644_v23 = vmul.f32 %v633_v57, %v4752_v48  ;;  %v4827_v48 = vperm.slane %v4534_v7, 7 }
 0x235   :  { %v638_v9 = vsub.f32 1.5, %v637_v11  ;;  %v563_v53 = vpop.f32.mrf.mxu0  ;;  %v647_v47 = vmul.f32 %v646_v24, %v644_v23  ;;  %v556_v51 = vadd.f32 %v555_v1, %v4827_v48  ;;  %v561_v37 = vadd.f32 %v560_v19, %v4827_v48 }
 0x236   :  { %v554_v43 = vadd.f32 %v4810_v35, %v4827_v48  ;;  %v559_v60 = vadd.f32 %v558_v63, %v4827_v48  ;;  %v551_v35 = vadd.f32 %v4808_v4, %v4827_v48  ;;  %v549_v3 = vadd.f32 %v4805_v40, %v4827_v48 }
 0x237   :  { %v639_v44 = vmul.f32 %v4079_v15, %v638_v9  ;;  %v650_v45 = vadd.f32 %v649_v41, %v647_v47  ;;  %v585_v27 = vpack.c.bf16 %v556_v51, %v556_v51  ;;  %v587_v62 = vpack.c.bf16 %v561_v37, %v561_v37 }
 0x238   :  { %v584_v0 = vpack.c.bf16 %v554_v43, %v554_v43  ;;  %v586_v50 = vpack.c.bf16 %v559_v60, %v559_v60  ;;  %v583_v8 = vpack.c.bf16 %v551_v35, %v551_v35  ;;  %v582_v36 = vpack.c.bf16 %v549_v3, %v549_v3 }
 0x239   :  { %v643_v14 = vsel %vm642_vm4, %v4079_v15, %v639_v44  ;;  %v717_v1 = vunpack.c.l.b16 %v585_v27  ;;  %v719_v2 = vunpack.c.l.b16 %v587_v62  ;;  %v546_v33 = vadd.f32 %v4803_v13, %v4827_v48 }
 0x23a   :  { %v645_v6 = vmul.f32 %v643_v14, %v4773_v61  ;;  %v716_v42 = vunpack.c.l.b16 %v584_v0  ;;  %v718_v5 = vunpack.c.l.b16 %v586_v50  ;;  %v715_v4 = vunpack.c.l.b16 %v583_v8 }
 0x23b   :  { %v714_v31 = vunpack.c.l.b16 %v582_v36  ;;  %v544_v21 = vadd.f32 %v4799_v32, %v4827_v48  ;;  %v564_v22 = vadd.f32 %v563_v53, %v4827_v48  ;;  %v581_v9 = vpack.c.bf16 %v546_v33, %v546_v33 }
 0x23c   :  { %v648_v34 = vmul.f32 %v646_v24, %v645_v6  ;;  %v4846_v10 = vpack.c.b16 %v717_v1, %v716_v42  ;;  %v4848_v39 = vpack.c.b16 %v719_v2, %v718_v5  ;;  %v541_v13 = vadd.f32 %v4797_v29, %v4827_v48 }
 0x23d   :  { %v565_v58 = vpop.f32.mrf.mxu0  ;;  %v4854_v63 = vpack.c.b16 %v715_v4, %v714_v31  ;;  %v580_v44 = vpack.c.bf16 %v544_v21, %v544_v21  ;;  %v588_v14 = vpack.c.bf16 %v564_v22, %v564_v22  ;;  %v713_v53 = vunpack.c.l.b16 %v581_v9 }
 0x23e   :  { %v651_v46 = vadd.f32 %v649_v41, %v648_v34  ;;  %v566_v18 = vadd.f32 %v565_v58, %v4827_v48  ;;  %v539_v47 = vadd.f32 %v4795_v28, %v4827_v48  ;;  %v748_v27 = vsel %vm734_vm6, %v4846_v10, 0 }
 0x23f   :  { %v712_v41 = vunpack.c.l.b16 %v580_v44  ;;  %v720_v34 = vunpack.c.l.b16 %v588_v14  ;;  %v745_v62 = vsel %vm734_vm6, %v4854_v63, 0 }
 0x240   :  { %v652_v16 = vpack.c.bf16 %v651_v46, %v650_v45  ;;  %v589_v23 = vpack.c.bf16 %v566_v18, %v566_v18  ;;  %v579_v45 = vpack.c.bf16 %v541_v13, %v541_v13 }
 0x241   :  { %v4880_v46 = vpack.c.b16 %v713_v53, %v712_v41 }
 0x242   :  { %3740 = vmatmul.msk.bf16.vlgmr.msra.gmra.mxu1 %vm594_vm5, %v652_v16  ;;  %v721_v6 = vunpack.c.l.b16 %v589_v23  ;;  %v578_v16 = vpack.c.bf16 %v539_v47, %v539_v47  ;;  %v711_v28 = vunpack.c.l.b16 %v579_v45 }
 0x243   :  { %v742_v0 = vsel %vm734_vm6, %v4880_v46, 0 }
 0x244   :  { %v4882_v58 = vpack.c.b16 %v721_v6, %v720_v34 }
 0x245   :  { %v568_v30 = vpop.f32.mrf.mxu0 }
 0x246   :  { %v569_v52 = vadd.f32 %v568_v30, %v4827_v48  ;;  %v710_v30 = vunpack.c.l.b16 %v578_v16 }
 0x248   :  { %v590_v54 = vpack.c.bf16 %v569_v52, %v569_v52  ;;  %v4892_v52 = vpack.c.b16 %v711_v28, %v710_v30 }
 0x24a   :  { %v722_v49 = vunpack.c.l.b16 %v590_v54  ;;  %v754_v54 = vsel %vm734_vm6, %v4882_v58, 0  ;;  %v739_v50 = vsel %vm734_vm6, %v4892_v52, 0 }
 0x24d   :  { %v570_v56 = vpop.f32.mrf.mxu0 }
 0x24e   :  { %v571_v61 = vadd.f32 %v570_v56, %v4827_v48  ;;  %v657_v56 = vperm.slane %v4534_v7, 6  ;;  %v751_v7 = vsel %vm734_vm6, %v4848_v39, 0 }
 0x250   :  { %v591_v59 = vpack.c.bf16 %v571_v61, %v571_v61 }
 0x252   :  { %v723_v26 = vunpack.c.l.b16 %v591_v59 }
 0x254   :  { %v4836_v38 = vpack.c.b16 %v723_v26, %v722_v49 }
 0x256   :  { %1023 = vrot.lane.b32.xlu2 %v4836_v38, %s4302_s30  ;;  %877 = vrot.lane.b32.xlu1 %v4836_v38, %s4303_s10  ;;  %v757_v29 = vsel %vm734_vm6, %v4836_v38, 0 }
 0x25e   :  { %871 = vrot.lane.b32.xlu2 %v4846_v10, %s4303_s10  ;;  %873 = vrot.lane.b32.xlu1 %v4848_v39, %s4303_s10 }
 0x266   :  { %869 = vrot.lane.b32.xlu2 %v4854_v63, %s4303_s10 }
 0x29f   :  { %v573_v40 = vpop.f32.mrf.mxu0 }
 0x2a0   :  { %v574_v17 = vadd.f32 %v573_v40, %v4827_v48 }
 0x2a2   :  { %v592_v12 = vpack.c.bf16 %v574_v17, %v574_v17 }
 0x2a4   :  { %v724_v57 = vunpack.c.l.b16 %v592_v12 }
 0x2a7   :  { %v575_v55 = vpop.f32.mrf.mxu0 }
 0x2a8   :  { %v576_v15 = vadd.f32 %v575_v55, %v4827_v48 }
 0x2aa   :  { %v593_v19 = vpack.c.bf16 %v576_v15, %v576_v15 }
 0x2ac   :  { %v725_v11 = vunpack.c.l.b16 %v593_v19 }
 0x2ae   :  { %v4866_v24 = vpack.c.b16 %v725_v11, %v724_v57 }
 0x2b0   :  { %879 = vrot.lane.b32.xlu0 %v4866_v24, %s4303_s10  ;;  %1025 = vrot.lane.b32.xlu2 %v4866_v24, %s4302_s30  ;;  %v760_v32 = vsel %vm734_vm6, %v4866_v24, 0  ;;  %v1024_v35 = vpop.permute.xlu2 %1023 }
 0x2b1   :  { %1171 = vrot.lane.b32.xlu1 %v4866_v24, %s4304_s11  ;;  %762 = vmatpush.bf16.xpose.msra.mxu2 %v760_v32  ;;  %v1049_v5 = vsel %vm734_vm6, %v1024_v35, 0 }
 0x2b8   :  { %875 = vrot.lane.b32.xlu0 %v4882_v58, %s4303_s10  ;;  %867 = vrot.lane.b32.xlu2 %v4880_v46, %s4303_s10  ;;  %v872_v1 = vpop.permute.xlu2 %871 }
 0x2b9   :  { %1169 = vrot.lane.b32.xlu1 %v4836_v38, %s4304_s11  ;;  %763 = vmatpush.bf16.xpose.msra.mxu2 %v757_v29  ;;  %v894_v11 = vsel %vm734_vm6, %v872_v1, 0 }
 0x2bf   :  { %v682_v48 = vpop.f32.mrf.mxu1 }
 0x2c0   :  { %1021 = vrot.lane.b32.xlu0 %v4882_v58, %s4302_s30  ;;  %865 = vrot.lane.b32.xlu2 %v4892_v52, %s4303_s10  ;;  %v683_v61 = vadd.f32 %v682_v48, %v657_v56  ;;  %v870_v2 = vpop.permute.xlu2 %869 }
 0x2c1   :  { %1167 = vrot.lane.b32.xlu1 %v4882_v58, %s4304_s11  ;;  %764 = vmatpush.bf16.xpose.msra.mxu2 %v754_v54  ;;  %v891_v14 = vsel %vm734_vm6, %v870_v2, 0 }
 0x2c2   :  { %v687_v37 = vpack.c.bf16 %v683_v61, %v683_v61 }
 0x2c4   :  { %v691_v60 = vunpack.c.l.b16 %v687_v37 }
 0x2c7   :  { %v684_v51 = vpop.f32.mrf.mxu1 }
 0x2c8   :  { %v685_v59 = vadd.f32 %v684_v51, %v657_v56  ;;  %1019 = vrot.lane.b32.xlu0 %v4848_v39, %s4302_s30  ;;  %v878_v8 = vpop.permute.xlu1 %877 }
 0x2c9   :  { %1165 = vrot.lane.b32.xlu1 %v4848_v39, %s4304_s11  ;;  %765 = vmatpush.bf16.xpose.msra.mxu2 %v751_v7  ;;  %v903_v17 = vsel %vm734_vm6, %v878_v8, 0  ;;  %v4991_v7 = vld [vmem:[%s5990_s2] sm:$0xff] }
 0x2ca   :  { %v688_v43 = vpack.c.bf16 %v685_v59, %v685_v59 }
 0x2cc   :  { %v692_v49 = vunpack.c.l.b16 %v688_v43 }
 0x2ce   :  { %v693_v26 = vpack.c.b16 %v692_v49, %v691_v60 }
 0x2d0   :  { %863 = vrot.lane.b32.xlu2 %v693_v26, %s4303_s10  ;;  %1017 = vrot.lane.b32.xlu0 %v4846_v10, %s4302_s30  ;;  %v874_v31 = vpop.permute.xlu1 %873 }
 0x2d1   :  { %1163 = vrot.lane.b32.xlu1 %v4846_v10, %s4304_s11  ;;  %766 = vmatpush.bf16.xpose.msra.mxu2 %v748_v27  ;;  %v897_v21 = vsel %vm734_vm6, %v874_v31, 0 }
 0x2d8   :  { %1161 = vrot.lane.b32.xlu2 %v4854_v63, %s4304_s11  ;;  %1015 = vrot.lane.b32.xlu0 %v4854_v63, %s4302_s30 }
 0x2d9   :  { %1009 = vrot.lane.b32.xlu1 %v693_v26, %s4302_s30  ;;  %767 = vmatpush.bf16.xpose.msra.mxu2 %v745_v62 }
 0x2e0   :  { %1157 = vrot.lane.b32.xlu2 %v4892_v52, %s4304_s11  ;;  %1013 = vrot.lane.b32.xlu0 %v4880_v46, %s4302_s30 }
 0x2e1   :  { %1155 = vrot.lane.b32.xlu1 %v693_v26, %s4304_s11  ;;  %768 = vmatpush.bf16.xpose.msra.mxu2 %v742_v0  ;;  %v5001_v0 = vld [vmem:[%s5990_s2 + $0x8] sm:$0xff]  ;;  %s4308_s2 = smov 72  }
 0x2e8   :  { %837 = vrot.lane.b32.xlu2 %v4836_v38, %s4305_s12  ;;  %1011 = vrot.lane.b32.xlu0 %v4892_v52, %s4302_s30 }
 0x2e9   :  { %831 = vrot.lane.b32.xlu1 %v4846_v10, %s4305_s12  ;;  %769 = vmatpush.bf16.xpose.msra.mxu2 %v739_v50 }
 0x2f0   :  { %825 = vrot.lane.b32.xlu2 %v4892_v52, %s4305_s12  ;;  %1159 = vrot.lane.b32.xlu0 %v4880_v46, %s4304_s11 }
 0x2f1   :  { %3741 = vmatmul.msk.bf16.vlgmr.msra.gmra.mxu2 %vm734_vm6, %v693_v26  ;;  %827 = vrot.lane.b32.xlu1 %v4880_v46, %s4305_s12 }
 0x2f8   :  { %979 = vrot.lane.b32.xlu2 %v4848_v39, %s4306_s13  ;;  %835 = vrot.lane.b32.xlu0 %v4882_v58, %s4305_s12 }
 0x2f9   :  { %1131 = vrot.lane.b32.xlu1 %v4866_v24, %s4307_s14 }
 0x300   :  { %977 = vrot.lane.b32.xlu2 %v4846_v10, %s4306_s13  ;;  %833 = vrot.lane.b32.xlu0 %v4848_v39, %s4305_s12 }
 0x308   :  { %975 = vrot.lane.b32.xlu2 %v4854_v63, %s4306_s13  ;;  %829 = vrot.lane.b32.xlu0 %v4854_v63, %s4305_s12 }
 0x30a   :  { %v1026_v3 = vpop.permute.xlu2 %1025 }
 0x30b   :  { %v1052_v42 = vsel %vm734_vm6, %v1026_v3, 0 }
 0x30c   :  { %1054 = vmatpush.bf16.xpose.msrb.mxu2 %v1052_v42 }
 0x310   :  { %983 = vrot.lane.b32.xlu0 %v4836_v38, %s4306_s13 }
 0x312   :  { %v868_v13 = vpop.permute.xlu2 %867 }
 0x313   :  { %v888_v47 = vsel %vm734_vm6, %v868_v13, 0 }
 0x314   :  { %1055 = vmatpush.bf16.xpose.msrb.mxu2 %v1049_v5  ;;  %v1588_v5 = vld [vmem:[#allocation2 + $0xd0] sm:$0xf] }
 0x318   :  { %981 = vrot.lane.b32.xlu0 %v4882_v58, %s4306_s13 }
 0x31a   :  { %v866_v34 = vpop.permute.xlu2 %865 }
 0x31b   :  { %v885_v29 = vsel %vm734_vm6, %v866_v34, 0 }
 0x320   :  { %839 = vrot.lane.b32.xlu0 %v4866_v24, %s4305_s12 }
 0x322   :  { %v880_v36 = vpop.permute.xlu0 %879 }
 0x323   :  { %v906_v4 = vsel %vm734_vm6, %v880_v36, 0  ;;  %v1172_v55 = vpop.permute.xlu1 %1171  ;;  %v1600_v36 = vunpack.c.l.b16 %v1588_v5 }
 0x324   :  { %908 = vmatpush.bf16.xpose.msrb.mxu1 %v906_v4  ;;  %v1198_v30 = vsel %vm734_vm6, %v1172_v55, 0 }
 0x328   :  { %985 = vrot.lane.b32.xlu0 %v4866_v24, %s4306_s13 }
 0x32a   :  { %v876_v40 = vpop.permute.xlu0 %875  ;;  %v864_v48 = vpop.permute.xlu2 %863 }
 0x32b   :  { %v900_v15 = vsel %vm734_vm6, %v876_v40, 0  ;;  %v1170_v18 = vpop.permute.xlu1 %1169  ;;  %v1603_v40 = vpack.c.b16 %v1600_v36, %v1600_v36 }
 0x32c   :  { %909 = vmatpush.bf16.xpose.msrb.mxu1 %v903_v17  ;;  %v1195_v61 = vsel %vm734_vm6, %v1170_v18, 0 }
 0x32d   :  { %v1610_v55 = vsel %vm525_vm2, %v1603_v40, 0 }
 0x332   :  { %v1022_v12 = vpop.permute.xlu0 %1021  ;;  %v1162_v2 = vpop.permute.xlu2 %1161 }
 0x333   :  { %v1046_v33 = vsel %vm734_vm6, %v1022_v12, 0  ;;  %v1168_v23 = vpop.permute.xlu1 %1167  ;;  %v1183_v42 = vsel %vm734_vm6, %v1162_v2, 0 }
 0x334   :  { %910 = vmatpush.bf16.xpose.msrb.mxu1 %v900_v15  ;;  %1056 = vmatpush.bf16.xpose.msrb.mxu2 %v1046_v33  ;;  %v1192_v37 = vsel %vm734_vm6, %v1168_v23, 0 }
 0x33a   :  { %v1020_v19 = vpop.permute.xlu0 %1019  ;;  %v1158_v4 = vpop.permute.xlu2 %1157 }
 0x33b   :  { %v1043_v22 = vsel %vm734_vm6, %v1020_v19, 0  ;;  %v1166_v53 = vpop.permute.xlu1 %1165  ;;  %v1177_v12 = vsel %vm734_vm6, %v1158_v4, 0 }
 0x33c   :  { %911 = vmatpush.bf16.xpose.msrb.mxu1 %v897_v21  ;;  %1057 = vmatpush.bf16.xpose.msrb.mxu2 %v1043_v22  ;;  %v1189_v49 = vsel %vm734_vm6, %v1166_v53, 0 }
 0x342   :  { %v1018_v57 = vpop.permute.xlu0 %1017  ;;  %v838_v15 = vpop.permute.xlu2 %837 }
 0x343   :  { %v1040_v9 = vsel %vm734_vm6, %v1018_v57, 0  ;;  %v1164_v45 = vpop.permute.xlu1 %1163 }
 0x344   :  { %912 = vmatpush.bf16.xpose.msrb.mxu1 %v894_v11  ;;  %1058 = vmatpush.bf16.xpose.msrb.mxu2 %v1040_v9  ;;  %v1186_v35 = vsel %vm734_vm6, %v1164_v45, 0 }
 0x34a   :  { %v1016_v44 = vpop.permute.xlu0 %1015  ;;  %v826_v19 = vpop.permute.xlu2 %825 }
 0x34b   :  { %v1037_v32 = vsel %vm734_vm6, %v1016_v44, 0  ;;  %v1010_v56 = vpop.permute.xlu1 %1009 }
 0x34c   :  { %913 = vmatpush.bf16.xpose.msrb.mxu1 %v891_v14  ;;  %1059 = vmatpush.bf16.xpose.msrb.mxu2 %v1037_v32 }
 0x352   :  { %v1014_v6 = vpop.permute.xlu0 %1013  ;;  %v980_v22 = vpop.permute.xlu2 %979 }
 0x353   :  { %v1034_v41 = vsel %vm734_vm6, %v1014_v6, 0  ;;  %v1156_v33 = vpop.permute.xlu1 %1155 }
 0x354   :  { %914 = vmatpush.bf16.xpose.msrb.mxu1 %v888_v47  ;;  %1060 = vmatpush.bf16.xpose.msrb.mxu2 %v1034_v41 }
 0x35a   :  { %v1012_v16 = vpop.permute.xlu0 %1011  ;;  %v978_v11 = vpop.permute.xlu2 %977 }
 0x35b   :  { %v1031_v28 = vsel %vm734_vm6, %v1012_v16, 0  ;;  %v832_v18 = vpop.permute.xlu1 %831 }
 0x35c   :  { %915 = vmatpush.bf16.xpose.msrb.mxu1 %v885_v29  ;;  %1061 = vmatpush.bf16.xpose.msrb.mxu2 %v1031_v28 }
 0x362   :  { %v1160_v54 = vpop.permute.xlu0 %1159  ;;  %v976_v9 = vpop.permute.xlu2 %975 }
 0x363   :  { %3742 = vmatmul.msk.bf16.vlgmr.msrb.gmra.mxu1 %vm734_vm6, %v864_v48  ;;  %3743 = vmatmul.msk.bf16.vlgmr.msrb.gmra.mxu2 %vm734_vm6, %v1010_v56  ;;  %v1180_v31 = vsel %vm734_vm6, %v1160_v54, 0  ;;  %v828_v21 = vpop.permute.xlu1 %827 }
 0x364   :  { %1200 = vmatpush.bf16.xpose.msra.mxu1 %v1198_v30 }
 0x36a   :  { %v836_v51 = vpop.permute.xlu0 %835 }
 0x36c   :  { %1201 = vmatpush.bf16.xpose.msra.mxu1 %v1195_v61 }
 0x372   :  { %v834_v59 = vpop.permute.xlu0 %833 }
 0x374   :  { %1202 = vmatpush.bf16.xpose.msra.mxu1 %v1192_v37  ;;  %v771_v43 = vpop.f32.mrf.mxu2 }
 0x375   :  { %v776_v60 = vmul.f32 0.35355338, %v771_v43  ;;  %v5045_v43 = vpop.permute.xlu1 %1131 }
 0x377   :  { %v4995_v26 = vadd.f32 %v776_v60, %v4991_v7 }
 0x379   :  { %780 = vmax.xlane.f32.xlu0 %v4995_v26 }
 0x37a   :  { %v830_v27 = vpop.permute.xlu0 %829 }
 0x37c   :  { %1203 = vmatpush.bf16.xpose.msra.mxu1 %v1189_v49  ;;  %v773_v62 = vpop.f32.mrf.mxu2 }
 0x37d   :  { %v777_v50 = vmul.f32 0.35355338, %v773_v62 }
 0x37f   :  { %v5005_v1 = vadd.f32 %v777_v50, %v5001_v0 }
 0x381   :  { %782 = vmax.xlane.f32.xlu2 %v5005_v1 }
 0x382   :  { %v984_v3 = vpop.permute.xlu0 %983 }
 0x384   :  { %1204 = vmatpush.bf16.xpose.msra.mxu1 %v1186_v35 }
 0x38a   :  { %v982_v8 = vpop.permute.xlu0 %981 }
 0x38c   :  { %1205 = vmatpush.bf16.xpose.msra.mxu1 %v1183_v42 }
 0x392   :  { %v840_v17 = vpop.permute.xlu0 %839 }
 0x393   :  { %849 = vmatpush.bf16.msra.mxu3 %v840_v17 }
 0x394   :  { %1206 = vmatpush.bf16.xpose.msra.mxu1 %v1180_v31 }
 0x397   :  { %850 = vmatpush.bf16.msra.mxu3 %v838_v15 }
 0x39a   :  { %v986_v57 = vpop.permute.xlu0 %985 }
 0x39b   :  { %851 = vmatpush.bf16.msra.mxu3 %v836_v51 }
 0x39c   :  { %1207 = vmatpush.bf16.xpose.msra.mxu1 %v1177_v12 }
 0x39f   :  { %852 = vmatpush.bf16.msra.mxu3 %v834_v59 }
 0x3a3   :  { %3744 = vmatmul.msk.bf16.vlgmr.msra.gmra.mxu1 %vm734_vm6, %v1156_v33  ;;  %853 = vmatpush.bf16.msra.mxu3 %v832_v18 }
 0x3a4   :  { %1617 = vmatpush.bf16.msrb.mxu1 %v1610_v55 }
 0x3a7   :  { %854 = vmatpush.bf16.msra.mxu3 %v830_v27 }
 0x3ab   :  { %855 = vmatpush.bf16.msra.mxu3 %v828_v21 }
 0x3af   :  { %856 = vmatpush.bf16.msra.mxu3 %v826_v19 }
 0x3b3   :  { %995 = vmatpush.bf16.msrb.mxu3 %v986_v57 }
 0x3b7   :  { %996 = vmatpush.bf16.msrb.mxu3 %v984_v3 }
 0x3bb   :  { %997 = vmatpush.bf16.msrb.mxu3 %v982_v8 }
 0x3bf   :  { %998 = vmatpush.bf16.msrb.mxu3 %v980_v22 }
 0x3c3   :  { %999 = vmatpush.bf16.msrb.mxu3 %v978_v11 }
 0x3c7   :  { %1000 = vmatpush.bf16.msrb.mxu3 %v976_v9 }
 0x3e0   :  { %v917_v23 = vpop.f32.mrf.mxu1 }
 0x3e1   :  { %v922_v44 = vmul.f32 0.35355338, %v917_v23 }
 0x3e3   :  { %v924_v14 = vadd.f32 %v922_v44, %v4991_v7 }
 0x3e5   :  { %926 = vmax.xlane.f32.xlu1 %v924_v14 }
 0x3e6   :  { %v1063_v32 = vpop.f32.mrf.mxu2 }
 0x3e7   :  { %v1068_v13 = vmul.f32 0.35355338, %v1063_v32 }
 0x3e8   :  { %v919_v53 = vpop.f32.mrf.mxu1 }
 0x3e9   :  { %v923_v6 = vmul.f32 0.35355338, %v919_v53  ;;  %v1070_v47 = vadd.f32 %v1068_v13, %v4991_v7 }
 0x3eb   :  { %1072 = vmax.xlane.f32.xlu2 %v1070_v47  ;;  %v925_v41 = vadd.f32 %v923_v6, %v5001_v0 }
 0x3ec   :  { %v781_v16 = vpop.xlane.xlu0 %780 }
 0x3ed   :  { %928 = vmax.xlane.f32.xlu0 %v925_v41  ;;  %v784_v28 = vsub.f32 %v4995_v26, %v781_v16 }
 0x3ee   :  { %v1065_v34 = vpop.f32.mrf.mxu2 }
 0x3ef   :  { %v1069_v45 = vmul.f32 0.35355338, %v1065_v34  ;;  %v786_v48 = vmul.f32 1.442695, %v784_v28 }
 0x3f1   :  { %4080 = vpow2.f32 %v786_v48 }
 0x3f7   :  { %v5037_v54 = vpop.eup %4080 }
 0x3fe   :  { %1275 = vrot.lane.b32.xlu1 %v4836_v38, %s4308_s2 }
 0x401   :  { %1129 = vrot.lane.b32.xlu0 %v4836_v38, %s4307_s14  ;;  %v1071_v38 = vadd.f32 %v1069_v45, %v5001_v0 }
 0x403   :  { %973 = vrot.lane.b32.xlu2 %v4880_v46, %s4306_s13 }
 0x40b   :  { %1127 = vrot.lane.b32.xlu2 %v4882_v58, %s4307_s14 }
 0x413   :  { %971 = vrot.lane.b32.xlu2 %v4892_v52, %s4306_s13 }
 0x41b   :  { %1125 = vrot.lane.b32.xlu2 %v4848_v39, %s4307_s14 }
 0x420   :  { %v1209_v29 = vpop.f32.mrf.mxu1 }
 0x421   :  { %v1214_v30 = vmul.f32 0.35355338, %v1209_v29 }
 0x423   :  { %1123 = vrot.lane.b32.xlu2 %v4846_v10, %s4307_s14  ;;  %v1216_v56 = vadd.f32 %v1214_v30, %v4991_v7 }
 0x428   :  { %1074 = vmax.xlane.f32.xlu1 %v1071_v38  ;;  %v1211_v61 = vpop.f32.mrf.mxu1 }
 0x429   :  { %v1215_v51 = vmul.f32 0.35355338, %v1211_v61 }
 0x42b   :  { %1277 = vrot.lane.b32.xlu2 %v4866_v24, %s4308_s2  ;;  %v5041_v37 = vadd.f32 %v1215_v51, %v5001_v0  ;;  %v783_v24 = vpop.xlane.xlu2 %782 }
 0x42c   :  { %v785_v59 = vsub.f32 %v5005_v1, %v783_v24 }
 0x42e   :  { %v788_v7 = vmul.f32 1.442695, %v785_v59 }
 0x430   :  { %1218 = vmax.xlane.f32.xlu1 %v1216_v56  ;;  %4082 = vpow2.f32 %v788_v7 }
 0x433   :  { %1121 = vrot.lane.b32.xlu2 %v4854_v63, %s4307_s14 }
 0x436   :  { %v5047_v26 = vpop.eup %4082 }
 0x438   :  { %790 = vadd.xlane.f32.xlu1 %v5037_v54 }
 0x440   :  { %1220 = vmax.xlane.f32.xlu1 %v5041_v37 }
 0x458   :  { %v927_v60 = vpop.xlane.xlu1 %926 }
 0x459   :  { %v930_v49 = vsub.f32 %v924_v14, %v927_v60 }
 0x45b   :  { %v932_v27 = vmul.f32 1.442695, %v930_v49 }
 0x45c   :  { %792 = vadd.xlane.f32.xlu2 %v5047_v26 }
 0x45d   :  { %4084 = vpow2.f32 %v932_v27 }
 0x45e   :  { %v1073_v62 = vpop.xlane.xlu2 %1072 }
 0x45f   :  { %v1076_v0 = vsub.f32 %v1070_v47, %v1073_v62 }
 0x460   :  { %v929_v50 = vpop.xlane.xlu0 %928 }
 0x461   :  { %v1078_v35 = vmul.f32 1.442695, %v1076_v0  ;;  %v931_v2 = vsub.f32 %v925_v41, %v929_v50 }
 0x463   :  { %v5050_v3 = vpop.eup %4084  ;;  %v934_v1 = vmul.f32 1.442695, %v931_v2  ;;  %4086 = vpow2.f32 %v1078_v35 }
 0x464   :  { %936 = vadd.xlane.f32.xlu1 %v5050_v3 }
 0x465   :  { %4088 = vpow2.f32 %v934_v1 }
 0x466   :  { %v974_v42 = vpop.permute.xlu2 %973 }
 0x467   :  { %1001 = vmatpush.bf16.msrb.mxu3 %v974_v42 }
 0x469   :  { %v5053_v5 = vpop.eup %4086 }
 0x46b   :  { %v5055_v8 = vpop.eup %4088 }
 0x46c   :  { %938 = vadd.xlane.f32.xlu0 %v5055_v8  ;;  %1082 = vadd.xlane.f32.xlu1 %v5053_v5 }
 0x46e   :  { %v5059_v36 = vpop.permute.xlu2 %1127 }
 0x470   :  { %v5067_v31 = vpop.permute.xlu1 %1275 }
 0x473   :  { %v1130_v32 = vpop.permute.xlu0 %1129 }
 0x474   :  { %1273 = vrot.lane.b32.xlu2 %v4882_v58, %s4308_s2 }
 0x476   :  { %v972_v4 = vpop.permute.xlu2 %971 }
 0x477   :  { %1002 = vmatpush.bf16.msrb.mxu3 %v972_v4 }
 0x47e   :  { %v5078_v33 = vpop.permute.xlu2 %1125 }
 0x485   :  { %1117 = vrot.lane.b32.xlu1 %v4892_v52, %s4307_s14 }
 0x48d   :  { %1271 = vrot.lane.b32.xlu1 %v4848_v39, %s4308_s2 }
 0x495   :  { %1269 = vrot.lane.b32.xlu1 %v4846_v10, %s4308_s2 }
 0x49b   :  { %v1075_v40 = vpop.xlane.xlu1 %1074 }
 0x49c   :  { %v1077_v17 = vsub.f32 %v1071_v38, %v1075_v40 }
 0x49d   :  { %1267 = vrot.lane.b32.xlu1 %v4854_v63, %s4308_s2  ;;  %v5083_v63 = vpop.permute.xlu2 %1123 }
 0x49e   :  { %v1080_v55 = vmul.f32 1.442695, %v1077_v17 }
 0x4a0   :  { %4090 = vpow2.f32 %v1080_v55 }
 0x4a3   :  { %v1219_v58 = vpop.xlane.xlu1 %1218 }
 0x4a4   :  { %v1222_v12 = vsub.f32 %v1216_v56, %v1219_v58 }
 0x4a5   :  { %1263 = vrot.lane.b32.xlu1 %v4892_v52, %s4308_s2  ;;  %v5087_v18 = vpop.permute.xlu2 %1277 }
 0x4a6   :  { %v5075_v15 = vpop.eup %4090  ;;  %v1224_v39 = vmul.f32 1.442695, %v1222_v12 }
 0x4a7   :  { %1084 = vadd.xlane.f32.xlu0 %v5075_v15 }
 0x4a8   :  { %4092 = vpow2.f32 %v1224_v39 }
 0x4ab   :  { %v791_v52 = vpop.xlane.xlu1 %790 }
 0x4ac   :  { %4094 = vrcp.f32 %v791_v52  ;;  %v805_v41 = vand.u32 2147483648, %v791_v52  ;;  %vm799_vm7 = vweird.f32 %v791_v52  ;;  %v803_v45 = vand.u32 2147483647, %v791_v52 }
 0x4ad   :  { %v5089_v19 = vpop.permute.xlu2 %1121 }
 0x4ae   :  { %v5080_v10 = vpop.eup %4092  ;;  %v806_v48 = vor.u32 1.1754944e-38, %v805_v41  ;;  %vm804_vm12 = vcmp.eq.f32.partialorder %v803_v45, 8.507059e+37 }
 0x4af   :  { %1228 = vadd.xlane.f32.xlu2 %v5080_v10 }
 0x4b2   :  { %v4095_v21 = vpop.eup %4094 }
 0x4b3   :  { %v795_v22 = vmul.f32 %v4095_v21, %v791_v52  ;;  %v1221_v57 = vpop.xlane.xlu1 %1220  ;;  %vm800_vm2 = vweird.f32 %v4095_v21 }
 0x4b4   :  { %v1223_v14 = vsub.f32 %v5041_v37, %v1221_v57  ;;  %vm801_vm9 = vmor %vm799_vm7, %vm800_vm2 }
 0x4b5   :  { %v796_v9 = vsub.f32 1.0, %v795_v22 }
 0x4b6   :  { %v1226_v34 = vmul.f32 1.442695, %v1223_v14 }
 0x4b7   :  { %v797_v23 = vmul.f32 %v4095_v21, %v796_v9 }
 0x4b9   :  { %v798_v47 = vadd.f32 %v4095_v21, %v797_v23 }
 0x4bb   :  { %1119 = vrot.lane.b32.xlu0 %v4880_v46, %s4307_s14  ;;  %v802_v38 = vsel %vm801_vm9, %v4095_v21, %v798_v47 }
 0x4bc   :  { %v807_v37 = vsel %vm804_vm12, %v806_v48, %v802_v38 }
 0x4bd   :  { %v808_v49 = vmul.f32 %v5037_v54, %v807_v37 }
 0x4c7   :  { %1265 = vrot.lane.b32.xlu2 %v4880_v46, %s4308_s2 }
 0x4cf   :  { %v793_v11 = vpop.xlane.xlu2 %792 }
 0x4d0   :  { %4096 = vrcp.f32 %v793_v11  ;;  %v820_v16 = vand.u32 2147483648, %v793_v11  ;;  %vm814_vm10 = vweird.f32 %v793_v11  ;;  %v818_v28 = vand.u32 2147483647, %v793_v11 }
 0x4d2   :  { %v821_v24 = vor.u32 1.1754944e-38, %v820_v16  ;;  %vm819_vm13 = vcmp.eq.f32.partialorder %v818_v28, 8.507059e+37 }
 0x4d6   :  { %v4097_v44 = vpop.eup %4096 }
 0x4d7   :  { %v810_v13 = vmul.f32 %v4097_v44, %v793_v11  ;;  %v937_v53 = vpop.xlane.xlu1 %936  ;;  %vm815_vm8 = vweird.f32 %v4097_v44 }
 0x4d8   :  { %4098 = vrcp.f32 %v937_v53  ;;  %vm816_vm11 = vmor %vm814_vm10, %vm815_vm8  ;;  %v951_v1 = vand.u32 2147483648, %v937_v53  ;;  %vm945_vm15 = vweird.f32 %v937_v53  ;;  %v949_v42 = vand.u32 2147483647, %v937_v53 }
 0x4d9   :  { %v811_v6 = vsub.f32 1.0, %v810_v13  ;;  %4100 = vpow2.f32 %v1226_v34 }
 0x4da   :  { %v952_v55 = vor.u32 1.1754944e-38, %v951_v1  ;;  %vm950_vm4 = vcmp.eq.f32.partialorder %v949_v42, 8.507059e+37 }
 0x4db   :  { %v812_v46 = vmul.f32 %v4097_v44, %v811_v6 }
 0x4dd   :  { %v813_v29 = vadd.f32 %v4097_v44, %v812_v46 }
 0x4de   :  { %v4099_v30 = vpop.eup %4098 }
 0x4df   :  { %v941_v56 = vmul.f32 %v4099_v30, %v937_v53  ;;  %v939_v61 = vpop.xlane.xlu0 %938  ;;  %v817_v51 = vsel %vm816_vm11, %v4097_v44, %v813_v29  ;;  %v5096_v62 = vpop.eup %4100  ;;  %vm946_vm14 = vweird.f32 %v4099_v30 }
 0x4e0   :  { %4102 = vrcp.f32 %v939_v61  ;;  %v822_v7 = vsel %vm819_vm13, %v821_v24, %v817_v51  ;;  %vm947_vm1 = vmor %vm945_vm15, %vm946_vm14  ;;  %v966_v54 = vand.u32 2147483648, %v939_v61  ;;  %vm960_vm2 = vweird.f32 %v939_v61  ;;  %v1083_v11 = vpop.xlane.xlu1 %1082  ;;  %v1274_v51 = vpop.permute.xlu2 %1273 }
 0x4e1   :  { %v942_v59 = vsub.f32 1.0, %v941_v56  ;;  %v823_v27 = vmul.f32 %v5047_v26, %v822_v7  ;;  %v964_v26 = vand.u32 2147483647, %v939_v61  ;;  %4104 = vrcp.f32 %v1083_v11 }
 0x4e2   :  { %v967_v12 = vor.u32 1.1754944e-38, %v966_v54  ;;  %v1097_v47 = vand.u32 2147483648, %v1083_v11  ;;  %vm1091_vm12 = vweird.f32 %v1083_v11  ;;  %v1095_v41 = vand.u32 2147483647, %v1083_v11 }
 0x4e3   :  { %v943_v60 = vmul.f32 %v4099_v30, %v942_v59  ;;  %v824_v0 = vpack.c.bf16 %v823_v27, %v808_v49  ;;  %vm965_vm8 = vcmp.eq.f32.partialorder %v964_v26, 8.507059e+37 }
 0x4e4   :  { %v1098_v16 = vor.u32 1.1754944e-38, %v1097_v47 }
 0x4e5   :  { %1230 = vadd.xlane.f32.xlu0 %v5096_v62  ;;  %v944_v35 = vadd.f32 %v4099_v30, %v943_v60  ;;  %857 = vmatmul.bf16.vlgmr.msra.gmra.mxu3 %v824_v0 }
 0x4e6   :  { %v4103_v50 = vpop.eup %4102  ;;  %1141 = vmatpush.bf16.msra.mxu3 %v5045_v43 }
 0x4e7   :  { %v956_v2 = vmul.f32 %v4103_v50, %v939_v61  ;;  %vm961_vm3 = vweird.f32 %v4103_v50  ;;  %v948_v17 = vsel %vm947_vm1, %v4099_v30, %v944_v35  ;;  %v4105_v9 = vpop.eup %4104  ;;  %vm1096_vm1 = vcmp.eq.f32.partialorder %v1095_v41, 8.507059e+37 }
 0x4e8   :  { %vm962_vm7 = vmor %vm960_vm2, %vm961_vm3  ;;  %v953_v39 = vsel %vm950_vm4, %v952_v55, %v948_v17  ;;  %v1087_v44 = vmul.f32 %v4105_v9, %v1083_v11  ;;  %vm1092_vm10 = vweird.f32 %v4105_v9 }
 0x4e9   :  { %v957_v4 = vsub.f32 1.0, %v956_v2  ;;  %v954_v21 = vmul.f32 %v5050_v3, %v953_v39  ;;  %vm1093_vm14 = vmor %vm1091_vm12, %vm1092_vm10  ;;  %vm1327_vm12 = vcmask 130048  }
 0x4ea   :  { %1142 = vmatpush.bf16.msra.mxu3 %v1130_v32 }
 0x4eb   :  { %v958_v40 = vmul.f32 %v4103_v50, %v957_v4 }
 0x4ed   :  { %v959_v58 = vadd.f32 %v4103_v50, %v958_v40 }
 0x4ee   :  { %1143 = vmatpush.bf16.msra.mxu3 %v5059_v36  ;;  %v1088_v36 = vsub.f32 1.0, %v1087_v44 }
 0x4ef   :  { %v963_v52 = vsel %vm962_vm7, %v4103_v50, %v959_v58 }
 0x4f0   :  { %v968_v43 = vsel %vm965_vm8, %v967_v12, %v963_v52  ;;  %v1089_v3 = vmul.f32 %v4105_v9, %v1088_v36 }
 0x4f1   :  { %v969_v22 = vmul.f32 %v5055_v8, %v968_v43 }
 0x4f2   :  { %1144 = vmatpush.bf16.msra.mxu3 %v5078_v33  ;;  %v1090_v6 = vadd.f32 %v4105_v9, %v1089_v3 }
 0x4f3   :  { %v970_v57 = vpack.c.bf16 %v969_v22, %v954_v21 }
 0x4f4   :  { %v1094_v45 = vsel %vm1093_vm14, %v4105_v9, %v1090_v6 }
 0x4f5   :  { %1003 = vmatmul.bf16.vlgmr.msrb.gmra.mxu3 %v970_v57  ;;  %v1099_v28 = vsel %vm1096_vm1, %v1098_v16, %v1094_v45 }
 0x4f6   :  { %1145 = vmatpush.bf16.msra.mxu3 %v5083_v63  ;;  %v1100_v56 = vmul.f32 %v5053_v5, %v1099_v28 }
 0x4f7   :  { %v1118_v8 = vpop.permute.xlu1 %1117 }
 0x4fa   :  { %1146 = vmatpush.bf16.msra.mxu3 %v5089_v19 }
 0x4ff   :  { %v1272_v48 = vpop.permute.xlu1 %1271 }
 0x507   :  { %v1270_v37 = vpop.permute.xlu1 %1269 }
 0x50f   :  { %v1268_v59 = vpop.permute.xlu1 %1267 }
 0x51a   :  { %v1085_v23 = vpop.xlane.xlu0 %1084 }
 0x51b   :  { %4106 = vrcp.f32 %v1085_v23  ;;  %v1112_v33 = vand.u32 2147483648, %v1085_v23  ;;  %v1110_v63 = vand.u32 2147483647, %v1085_v23  ;;  %vm1106_vm11 = vweird.f32 %v1085_v23 }
 0x51d   :  { %v1113_v46 = vor.u32 1.1754944e-38, %v1112_v33  ;;  %vm1111_vm15 = vcmp.eq.f32.partialorder %v1110_v63, 8.507059e+37 }
 0x521   :  { %v4107_v14 = vpop.eup %4106 }
 0x522   :  { %v1102_v32 = vmul.f32 %v4107_v14, %v1085_v23  ;;  %vm1107_vm9 = vweird.f32 %v4107_v14  ;;  %v1229_v24 = vpop.xlane.xlu2 %1228 }
 0x523   :  { %vm1108_vm13 = vmor %vm1106_vm11, %vm1107_vm9  ;;  %4108 = vrcp.f32 %v1229_v24  ;;  %v1243_v35 = vand.u32 2147483648, %v1229_v24  ;;  %vm1237_vm4 = vweird.f32 %v1229_v24  ;;  %v1241_v2 = vand.u32 2147483647, %v1229_v24 }
 0x524   :  { %v1103_v13 = vsub.f32 1.0, %v1102_v32  ;;  %v3932_v32 = vld [vmem:[#allocation2 + $0x48] sm:$0xff] }
 0x525   :  { %v1244_v26 = vor.u32 1.1754944e-38, %v1243_v35  ;;  %vm1242_vm8 = vcmp.eq.f32.partialorder %v1241_v2, 8.507059e+37  ;;  %1361 = vmatpush.bf16.msrb.mxu0 %v3932_v32 }
 0x526   :  { %v1104_v53 = vmul.f32 %v4107_v14, %v1103_v13  ;;  %v3931_v13 = vld [vmem:[#allocation2 + $0x40] sm:$0xff] }
 0x528   :  { %v1105_v19 = vadd.f32 %v4107_v14, %v1104_v53 }
 0x529   :  { %v4109_v5 = vpop.eup %4108  ;;  %1362 = vmatpush.bf16.msrb.mxu0 %v3931_v13 }
 0x52a   :  { %v1109_v34 = vsel %vm1108_vm13, %v4107_v14, %v1105_v19  ;;  %v1266_v7 = vpop.permute.xlu2 %1265  ;;  %v1233_v60 = vmul.f32 %v4109_v5, %v1229_v24  ;;  %vm1238_vm3 = vweird.f32 %v4109_v5  ;;  %vm1330_vm13 = vcmask 195584  }
 0x52b   :  { %v1114_v38 = vsel %vm1111_vm15, %v1113_v46, %v1109_v34  ;;  %vm1239_vm2 = vmor %vm1237_vm4, %vm1238_vm3 }
 0x52c   :  { %v1115_v30 = vmul.f32 %v5075_v15, %v1114_v38  ;;  %v1264_v15 = vpop.permute.xlu1 %1263 }
 0x52d   :  { %v1120_v29 = vpop.permute.xlu0 %1119 }
 0x52e   :  { %1147 = vmatpush.bf16.msra.mxu3 %v1120_v29  ;;  %v1116_v61 = vpack.c.bf16 %v1115_v30, %v1100_v56 }
 0x532   :  { %1148 = vmatpush.bf16.msra.mxu3 %v1118_v8 }
 0x535   :  { %1149 = vmatmul.bf16.vlgmr.msra.gmra.mxu3 %v1116_v61 }
 0x536   :  { %1287 = vmatpush.bf16.msrb.mxu3 %v5087_v18  ;;  %v1234_v18 = vsub.f32 1.0, %v1233_v60 }
 0x538   :  { %v1235_v27 = vmul.f32 %v4109_v5, %v1234_v18 }
 0x53a   :  { %1288 = vmatpush.bf16.msrb.mxu3 %v5067_v31  ;;  %v1236_v0 = vadd.f32 %v4109_v5, %v1235_v27 }
 0x53c   :  { %v1240_v4 = vsel %vm1239_vm2, %v4109_v5, %v1236_v0  ;;  %v4257_v5 = vld [vmem:[%s5988_s0 + $0x8] sm:$0xff] }
 0x53d   :  { %v1245_v58 = vsel %vm1242_vm8, %v1244_v26, %v1240_v4  ;;  %v3934_v26 = vld [vmem:[#allocation2 + $0x68] sm:$0xff] }
 0x53e   :  { %1289 = vmatpush.bf16.msrb.mxu3 %v1274_v51  ;;  %v1246_v43 = vmul.f32 %v5080_v10, %v1245_v58  ;;  %1449 = vmatpush.bf16.msra.mxu2 %v3934_v26 }
 0x542   :  { %1290 = vmatpush.bf16.msrb.mxu3 %v1272_v48  ;;  %v5125_v48 = vld [vmem:[%s5995_s7 + $0x8] sm:$0xff] }
 0x543   :  { %v1339_v56 = vperm.slane %v5125_v48, 0 }
 0x546   :  { %1291 = vmatpush.bf16.msrb.mxu3 %v1270_v37  ;;  %v4256_v37 = vld [vmem:[%s5988_s0] sm:$0xff] }
 0x54a   :  { %1292 = vmatpush.bf16.msrb.mxu3 %v1268_v59 }
 0x54e   :  { %1293 = vmatpush.bf16.msrb.mxu3 %v1266_v7 }
 0x552   :  { %1294 = vmatpush.bf16.msrb.mxu3 %v1264_v15 }
 0x558   :  { %v1231_v49 = vpop.xlane.xlu0 %1230 }
 0x559   :  { %4110 = vrcp.f32 %v1231_v49  ;;  %v1258_v42 = vand.u32 2147483648, %v1231_v49  ;;  %v1256_v40 = vand.u32 2147483647, %v1231_v49  ;;  %vm1252_vm9 = vweird.f32 %v1231_v49 }
 0x55b   :  { %v1259_v55 = vor.u32 1.1754944e-38, %v1258_v42  ;;  %vm1257_vm11 = vcmp.eq.f32.partialorder %v1256_v40, 8.507059e+37 }
 0x55f   :  { %v4111_v31 = vpop.eup %4110 }
 0x560   :  { %v1248_v50 = vmul.f32 %v4111_v31, %v1231_v49  ;;  %vm1253_vm7 = vweird.f32 %v4111_v31 }
 0x561   :  { %vm1254_vm10 = vmor %vm1252_vm9, %vm1253_vm7  ;;  %vm1510_vm7 = vcmask 523264  }
 0x562   :  { %v1249_v1 = vsub.f32 1.0, %v1248_v50 }
 0x564   :  { %v1250_v54 = vmul.f32 %v4111_v31, %v1249_v1 }
 0x566   :  { %v1251_v17 = vadd.f32 %v4111_v31, %v1250_v54 }
 0x568   :  { %v1255_v12 = vsel %vm1254_vm10, %v4111_v31, %v1251_v17  ;;  %v858_v52 = vpop.f32.mrf.mxu3 }
 0x569   :  { %v1260_v39 = vsel %vm1257_vm11, %v1259_v55, %v1255_v12  ;;  %v3933_v55 = vld [vmem:[#allocation2 + $0x60] sm:$0xff] }
 0x56a   :  { %v1261_v21 = vmul.f32 %v5096_v62, %v1260_v39  ;;  %1450 = vmatpush.bf16.msra.mxu2 %v3933_v55 }
 0x56c   :  { %v1262_v22 = vpack.c.bf16 %v1261_v21, %v1246_v43 }
 0x56e   :  { %1295 = vmatmul.bf16.vlgmr.msrb.gmra.mxu3 %v1262_v22 }
 0x570   :  { %v860_v57 = vpop.f32.mrf.mxu3 }
 0x578   :  { %v1004_v11 = vpop.f32.mrf.mxu3 }
 0x580   :  { %v1006_v9 = vpop.f32.mrf.mxu3 }
 0x581   :  { %v3980_v23 = vpack.i.bf16 %v1006_v9, %v1004_v11 }
 0x583   :  { %3981 = vrot.lane.b32.xlu0 %v3980_v23, %s4309_s19 }
 0x5b8   :  { %v1150_v44 = vpop.f32.mrf.mxu3 }
 0x5c0   :  { %v1152_v36 = vpop.f32.mrf.mxu3 }
 0x5c1   :  { %v3985_v14 = vpack.i.bf16 %v1152_v36, %v1150_v44 }
 0x5c3   :  { %3986 = vrot.lane.b32.xlu1 %v3985_v14, %s4310_s6 }
 0x5f1   :  { %v1296_v10 = vpop.f32.mrf.mxu3 }
 0x5f5   :  { %v3982_v53 = vpop.permute.xlu0 %3981 }
 0x5f6   :  { %v3984_v33 = vunpack.i.h.bf16 %v3982_v53  ;;  %v3983_v6 = vunpack.i.l.bf16 %v3982_v53 }
 0x5f8   :  { %v1326_v41 = vsel %vm734_vm6, %v860_v57, %v3984_v33  ;;  %v1325_v34 = vsel %vm734_vm6, %v858_v52, %v3983_v6 }
 0x5f9   :  { %v1298_v3 = vpop.f32.mrf.mxu3 }
 0x5fa   :  { %v3990_v62 = vpack.i.bf16 %v1298_v3, %v1296_v10  ;;  %v4258_v10 = vld [vmem:[%s5995_s7] sm:$0xff] }
 0x5fb   :  { %v1415_v3 = vperm.slane %v4258_v10, 4  ;;  %v1418_v53 = vperm.slane %v4258_v10, 5 }
 0x5fc   :  { %3991 = vrot.lane.b32.xlu1 %v3990_v62, %s4311_s20 }
 0x635   :  { %v3987_v8 = vpop.permute.xlu1 %3986 }
 0x636   :  { %v3989_v63 = vunpack.i.h.bf16 %v3987_v8  ;;  %v3988_v47 = vunpack.i.l.bf16 %v3987_v8 }
 0x638   :  { %v1329_v16 = vsel %vm1327_vm12, %v1326_v41, %v3989_v63  ;;  %v1328_v38 = vsel %vm1327_vm12, %v1325_v34, %v3988_v47  ;;  %v3938_v34 = vld [vmem:[#allocation2 + $0x98] sm:$0xff] }
 0x639   :  { %1518 = vmatpush.bf16.msra.mxu3 %v3938_v34 }
 0x66e   :  { %v3992_v19 = vpop.permute.xlu1 %3991 }
 0x66f   :  { %v3994_v46 = vunpack.i.h.bf16 %v3992_v19  ;;  %v3993_v45 = vunpack.i.l.bf16 %v3992_v19 }
 0x671   :  { %v1332_v29 = vsel %vm1330_vm13, %v1329_v16, %v3994_v46  ;;  %v1331_v28 = vsel %vm1330_vm13, %v1328_v38, %v3993_v45  ;;  %v3937_v46 = vld [vmem:[#allocation2 + $0x90] sm:$0xff]  ;;  %v1427_v45 = vperm.slane %v5125_v48, 1  ;;  %v3936_v16 = vld [vmem:[#allocation2 + $0x88] sm:$0xff] }
 0x672   :  { %v1333_v30 = vpack.c.bf16 %v1332_v29, %v1331_v28  ;;  %1519 = vmatpush.bf16.msra.mxu3 %v3937_v46  ;;  %v67_v28 = vld [vmem:[%s5991_s3] sm:$0xff] }
 0x674   :  { %3753 = vmatmul.msk.bf16.vlgmr.msrb.gmra.mxu0 %vm594_vm5, %v1333_v30  ;;  %v1533_v30 = vsel %vm77_vm0, %v67_v28, 0.0 }
 0x676   :  { %1520 = vmatpush.bf16.msra.mxu3 %v3936_v16 }
 0x6f1   :  { %v1364_v61 = vpop.f32.mrf.mxu0 }
 0x6f2   :  { %v1365_v51 = vadd.f32 %v1364_v61, %v1339_v56 }
 0x6f4   :  { %v5131_v24 = vadd.f32 %v4256_v37, %v1365_v51  ;;  %v68_v51 = vld [vmem:[%s5991_s3 + $0x8] sm:$0xff] }
 0x6f6   :  { %v1371_v59 = vsel %vm594_vm5, %v5131_v24, 0.0 }
 0x6f7   :  { %1372 = vadd.xlane.f32.xlu2 %v1371_v59  ;;  %v1536_v59 = vsel %vm77_vm0, %v68_v51, 0.0 }
 0x6f9   :  { %v1366_v7 = vpop.f32.mrf.mxu0 }
 0x6fa   :  { %v1367_v15 = vadd.f32 %v1366_v7, %v1339_v56  ;;  %v3935_v56 = vld [vmem:[#allocation2 + $0x80] sm:$0xff] }
 0x6fb   :  { %1521 = vmatpush.bf16.msra.mxu3 %v3935_v56 }
 0x6fc   :  { %v5138_v60 = vadd.f32 %v4257_v5, %v1367_v15 }
 0x6fe   :  { %v1374_v18 = vsel %vm594_vm5, %v5138_v60, 0.0 }
 0x6ff   :  { %1375 = vadd.xlane.f32.xlu1 %v1374_v18 }
 0x707   :  { %1534 = vadd.xlane.f32.xlu1 %v1533_v30 }
 0x76a   :  { %v1373_v49 = vpop.xlane.xlu2 %1372 }
 0x76b   :  { %v1377_v27 = vmul.f32 %v1373_v49, %v4745_v25 }
 0x76d   :  { %v1379_v31 = vsub.f32 %v5131_v24, %v1377_v27 }
 0x76f   :  { %v1381_v0 = vmul.f32 %v1379_v31, %v1379_v31 }
 0x771   :  { %v1383_v50 = vsel %vm594_vm5, %v1381_v0, 0.0 }
 0x772   :  { %v1376_v35 = vpop.xlane.xlu1 %1375  ;;  %1384 = vadd.xlane.f32.xlu0 %v1383_v50 }
 0x773   :  { %v1378_v2 = vmul.f32 %v1376_v35, %v4745_v25 }
 0x775   :  { %v1380_v1 = vsub.f32 %v5138_v60, %v1378_v2 }
 0x777   :  { %v1382_v42 = vmul.f32 %v1380_v1, %v1380_v1 }
 0x779   :  { %v1386_v4 = vsel %vm594_vm5, %v1382_v42, 0.0 }
 0x77a   :  { %1387 = vadd.xlane.f32.xlu2 %v1386_v4 }
 0x782   :  { %1537 = vadd.xlane.f32.xlu2 %v1536_v59 }
 0x7e5   :  { %v1385_v54 = vpop.xlane.xlu0 %1384 }
 0x7e6   :  { %v1389_v40 = vmul.f32 %v1385_v54, %v4745_v25 }
 0x7e8   :  { %v1391_v17 = vadd.f32 1e-05, %v1389_v40 }
 0x7ea   :  { %4112 = vrsqrt.f32 %v1391_v17  ;;  %vm1399_vm15 = vweird.f32 %v1391_v17 }
 0x7ed   :  { %v1388_v58 = vpop.xlane.xlu2 %1387 }
 0x7ee   :  { %v1390_v12 = vmul.f32 %v1388_v58, %v4745_v25  ;;  %v1535_v58 = vpop.xlane.xlu1 %1534 }
 0x7f0   :  { %v4113_v39 = vpop.eup %4112  ;;  %v1392_v52 = vadd.f32 1e-05, %v1390_v12  ;;  %v1539_v12 = vmul.f32 %v1535_v58, %v4393_v20  ;;  %v3942_v58 = vld [vmem:[#allocation2 + $0xa8] sm:$0xff] }
 0x7f1   :  { %v1394_v43 = vmul.f32 %v4113_v39, %v1391_v17  ;;  %vm1400_vm14 = vweird.f32 %v4113_v39  ;;  %1706 = vmatpush.bf16.msra.mxu0 %v3942_v58  ;;  %v71_v58 = vld [vmem:[%s5992_s4] sm:$0xff] }
 0x7f2   :  { %4114 = vrsqrt.f32 %v1392_v52  ;;  %vm1401_vm1 = vmor %vm1399_vm15, %vm1400_vm14  ;;  %vm1409_vm4 = vweird.f32 %v1392_v52 }
 0x7f3   :  { %v1395_v21 = vmul.f32 %v4113_v39, %v1394_v43 }
 0x7f5   :  { %v1396_v22 = vmul.f32 0.5, %v1395_v21  ;;  %v1538_v21 = vpop.xlane.xlu2 %1537 }
 0x7f7   :  { %v1397_v57 = vsub.f32 1.5, %v1396_v22  ;;  %v1485_v22 = vperm.slane %v5125_v48, 2 }
 0x7f8   :  { %v4115_v11 = vpop.eup %4114 }
 0x7f9   :  { %v1398_v9 = vmul.f32 %v4113_v39, %v1397_v57  ;;  %v1404_v23 = vmul.f32 %v4115_v11, %v1392_v52  ;;  %vm1410_vm3 = vweird.f32 %v4115_v11  ;;  %v1540_v57 = vmul.f32 %v1538_v21, %v4393_v20 }
 0x7fa   :  { %vm1411_vm2 = vmor %vm1409_vm4, %vm1410_vm3 }
 0x7fb   :  { %v1405_v44 = vmul.f32 %v4115_v11, %v1404_v23  ;;  %v1402_v36 = vsel %vm1401_vm1, %v4113_v39, %v1398_v9  ;;  %v5165_v39 = vsub.f32 %v67_v28, %v1539_v12 }
 0x7fc   :  { %v1413_v62 = vmul.f32 %v1402_v36, %v1379_v31 }
 0x7fd   :  { %v1406_v14 = vmul.f32 0.5, %v1405_v44  ;;  %v1543_v52 = vmul.f32 %v5165_v39, %v5165_v39  ;;  %v1542_v44 = vsub.f32 %v68_v51, %v1540_v57 }
 0x7fe   :  { %v1416_v33 = vmul.f32 %v1415_v3, %v1413_v62 }
 0x7ff   :  { %v1407_v32 = vsub.f32 1.5, %v1406_v14  ;;  %v1545_v43 = vsel %vm77_vm0, %v1543_v52, 0.0  ;;  %v1544_v14 = vmul.f32 %v1542_v44, %v1542_v44 }
 0x800   :  { %v1419_v47 = vadd.f32 %v1418_v53, %v1416_v33  ;;  %1546 = vadd.xlane.f32.xlu2 %v1545_v43 }
 0x801   :  { %v1408_v13 = vmul.f32 %v4115_v11, %v1407_v32  ;;  %v1548_v48 = vsel %vm77_vm0, %v1544_v14, 0.0 }
 0x803   :  { %v1412_v8 = vsel %vm1411_vm2, %v4115_v11, %v1408_v13 }
 0x804   :  { %v1414_v6 = vmul.f32 %v1412_v8, %v1380_v1 }
 0x806   :  { %v1417_v63 = vmul.f32 %v1415_v3, %v1414_v6 }
 0x808   :  { %v1420_v19 = vadd.f32 %v1418_v53, %v1417_v63  ;;  %v3940_v63 = vld [vmem:[#allocation2 + $0xc8] sm:$0xff] }
 0x809   :  { %1618 = vmatpush.bf16.msrb.mxu1 %v3940_v63 }
 0x80a   :  { %v1421_v41 = vpack.c.bf16 %v1420_v19, %v1419_v47  ;;  %v3939_v47 = vld [vmem:[#allocation2 + $0xc0] sm:$0xff] }
 0x80c   :  { %3762 = vmatmul.msk.bf16.vlgmr.msra.gmra.mxu2 %vm594_vm5, %v1421_v41 }
 0x80d   :  { %1619 = vmatpush.bf16.msrb.mxu1 %v3939_v47 }
 0x88f   :  { %v1452_v38 = vpop.f32.mrf.mxu2 }
 0x890   :  { %v1453_v29 = vadd.f32 %v1452_v38, %v1427_v45 }
 0x892   :  { %v1457_v61 = vmul.f32 %v1453_v29, %v1453_v29 }
 0x894   :  { %v1459_v37 = vmul.f32 %v1457_v61, %v1453_v29 }
 0x896   :  { %v1461_v7 = vmul.f32 0.044715, %v1459_v37 }
 0x897   :  { %v1454_v15 = vpop.f32.mrf.mxu2 }
 0x898   :  { %v1463_v5 = vadd.f32 %v1461_v7, %v1453_v29  ;;  %v1455_v18 = vadd.f32 %v1454_v15, %v1427_v45 }
 0x89a   :  { %v1465_v49 = vmul.f32 0.7978846, %v1463_v5  ;;  %v1458_v27 = vmul.f32 %v1455_v18, %v1455_v18  ;;  %v5202_v5 = vld [vmem:[%s5995_s7 + $0x10] sm:$0xff] }
 0x89c   :  { %v1460_v31 = vmul.f32 %v1458_v27, %v1455_v18  ;;  %4116 = vtanh.f32 %v1465_v49 }
 0x89e   :  { %v1462_v0 = vmul.f32 0.044715, %v1460_v31  ;;  %v1577_v31 = vperm.slane %v5202_v5, 2 }
 0x8a0   :  { %v1464_v50 = vadd.f32 %v1462_v0, %v1455_v18 }
 0x8a2   :  { %v1466_v35 = vmul.f32 0.7978846, %v1464_v50  ;;  %v4117_v2 = vpop.eup %4116 }
 0x8a3   :  { %v1469_v1 = vadd.f32 1.0, %v4117_v2  ;;  %v1580_v2 = vperm.slane %v5202_v5, 3 }
 0x8a4   :  { %4118 = vtanh.f32 %v1466_v35 }
 0x8a5   :  { %v1471_v4 = vmul.f32 0.5, %v1469_v1 }
 0x8a7   :  { %v1473_v26 = vmul.f32 %v1471_v4, %v1453_v29 }
 0x8aa   :  { %v4119_v42 = vpop.eup %4118 }
 0x8ab   :  { %v1470_v54 = vadd.f32 1.0, %v4119_v42 }
 0x8ad   :  { %v1472_v40 = vmul.f32 0.5, %v1470_v54 }
 0x8af   :  { %v1474_v17 = vmul.f32 %v1472_v40, %v1455_v18 }
 0x8b1   :  { %v1475_v55 = vpack.c.bf16 %v1474_v17, %v1473_v26 }
 0x8b3   :  { %3779 = vmatmul.msk.bf16.vlgmr.msra.gmra.mxu3 %vm1510_vm7, %v1475_v55 }
 0x936   :  { %v1523_v11 = vpop.f32.mrf.mxu3 }
 0x937   :  { %v1524_v9 = vadd.f32 %v1523_v11, %v1485_v22 }
 0x939   :  { %v5173_v23 = vadd.f32 %v1524_v9, %v5131_v24  ;;  %v1547_v24 = vpop.xlane.xlu2 %1546 }
 0x93a   :  { %v1551_v13 = vmul.f32 %v1547_v24, %v4393_v20 }
 0x93b   :  { %v1628_v36 = vsel %vm594_vm5, %v5173_v23, 0.0 }
 0x93c   :  { %1629 = vadd.xlane.f32.xlu0 %v1628_v36  ;;  %v1553_v8 = vadd.f32 1e-05, %v1551_v13  ;;  %v5211_v13 = vperm.slane %v5202_v5, 0 }
 0x93e   :  { %v1525_v32 = vpop.f32.mrf.mxu3  ;;  %4120 = vrsqrt.f32 %v1553_v8  ;;  %vm1561_vm8 = vweird.f32 %v1553_v8 }
 0x93f   :  { %v1526_v10 = vadd.f32 %v1525_v32, %v1485_v22 }
 0x941   :  { %v5178_v3 = vadd.f32 %v1526_v10, %v5138_v60 }
 0x943   :  { %v1631_v62 = vsel %vm594_vm5, %v5178_v3, 0.0 }
 0x944   :  { %1632 = vadd.xlane.f32.xlu1 %v1631_v62  ;;  %1549 = vadd.xlane.f32.xlu0 %v1548_v48  ;;  %v4121_v33 = vpop.eup %4120 }
 0x945   :  { %v1556_v19 = vmul.f32 %v4121_v33, %v1553_v8  ;;  %vm1562_vm9 = vweird.f32 %v4121_v33 }
 0x946   :  { %vm1563_vm10 = vmor %vm1561_vm8, %vm1562_vm9 }
 0x947   :  { %v1557_v46 = vmul.f32 %v4121_v33, %v1556_v19 }
 0x949   :  { %v1558_v56 = vmul.f32 0.5, %v1557_v46 }
 0x94b   :  { %v1559_v37 = vsub.f32 1.5, %v1558_v56 }
 0x94d   :  { %v1560_v7 = vmul.f32 %v4121_v33, %v1559_v37 }
 0x94f   :  { %v1564_v18 = vsel %vm1563_vm10, %v4121_v33, %v1560_v7  ;;  %v5236_v7 = vperm.slane %v5202_v5, 6 }
 0x950   :  { %v1575_v0 = vmul.f32 %v1564_v18, %v5165_v39  ;;  %v3941_v39 = vld [vmem:[#allocation2 + $0xa0] sm:$0xff] }
 0x951   :  { %1707 = vmatpush.bf16.msra.mxu0 %v3941_v39 }
 0x952   :  { %v1578_v1 = vmul.f32 %v1577_v31, %v1575_v0 }
 0x954   :  { %v1581_v54 = vadd.f32 %v1580_v2, %v1578_v1 }
 0x9af   :  { %v1630_v53 = vpop.xlane.xlu0 %1629 }
 0x9b0   :  { %v1634_v6 = vmul.f32 %v1630_v53, %v4745_v25 }
 0x9b2   :  { %v5186_v60 = vsub.f32 %v5173_v23, %v1634_v6  ;;  %v5215_v6 = vperm.slane %v5202_v5, 1 }
 0x9b4   :  { %v1638_v41 = vmul.f32 %v5186_v60, %v5186_v60 }
 0x9b6   :  { %v1640_v34 = vsel %vm594_vm5, %v1638_v41, 0.0 }
 0x9b7   :  { %v1633_v45 = vpop.xlane.xlu1 %1632  ;;  %1641 = vadd.xlane.f32.xlu1 %v1640_v34  ;;  %v1550_v16 = vpop.xlane.xlu0 %1549 }
 0x9b8   :  { %v1635_v38 = vmul.f32 %v1633_v45, %v4745_v25  ;;  %v1552_v29 = vmul.f32 %v1550_v16, %v4393_v20  ;;  %v1590_v45 = vperm.slane %v5202_v5, 7 }
 0x9ba   :  { %v5194_v28 = vsub.f32 %v5178_v3, %v1635_v38  ;;  %v1554_v30 = vadd.f32 1e-05, %v1552_v29 }
 0x9bc   :  { %4122 = vrsqrt.f32 %v1554_v30  ;;  %v1639_v61 = vmul.f32 %v5194_v28, %v5194_v28  ;;  %vm1571_vm11 = vweird.f32 %v1554_v30 }
 0x9be   :  { %v1643_v51 = vsel %vm594_vm5, %v1639_v61, 0.0 }
 0x9bf   :  { %1644 = vadd.xlane.f32.xlu2 %v1643_v51 }
 0x9c2   :  { %v4123_v59 = vpop.eup %4122 }
 0x9c3   :  { %v1566_v15 = vmul.f32 %v4123_v59, %v1554_v30  ;;  %vm1572_vm14 = vweird.f32 %v4123_v59 }
 0x9c4   :  { %vm1573_vm15 = vmor %vm1571_vm11, %vm1572_vm14 }
 0x9c5   :  { %v1567_v20 = vmul.f32 %v4123_v59, %v1566_v15 }
 0x9c7   :  { %v1568_v49 = vmul.f32 0.5, %v1567_v20 }
 0x9c9   :  { %v1569_v27 = vsub.f32 1.5, %v1568_v49 }
 0x9cb   :  { %v1570_v50 = vmul.f32 %v4123_v59, %v1569_v27 }
 0x9cd   :  { %v1574_v35 = vsel %vm1573_vm15, %v4123_v59, %v1570_v50 }
 0x9ce   :  { %v1576_v42 = vmul.f32 %v1574_v35, %v1542_v44 }
 0x9d0   :  { %v1579_v4 = vmul.f32 %v1577_v31, %v1576_v42 }
 0x9d2   :  { %v1582_v40 = vadd.f32 %v1580_v2, %v1579_v4 }
 0x9d4   :  { %v1589_v26 = vpack.c.bf16 %v1582_v40, %v1581_v54 }
 0x9d6   :  { %3790 = vmatmul.msk.bf16.vlgmr.msrb.gmra.mxu1 %vm77_vm0, %v1589_v26 }
 0xa2a   :  { %v1642_v17 = vpop.xlane.xlu1 %1641 }
 0xa2b   :  { %v1646_v55 = vmul.f32 %v1642_v17, %v4745_v25 }
 0xa2d   :  { %v1648_v12 = vadd.f32 1e-05, %v1646_v55 }
 0xa2f   :  { %4124 = vrsqrt.f32 %v1648_v12  ;;  %vm1656_vm1 = vweird.f32 %v1648_v12 }
 0xa32   :  { %v1645_v52 = vpop.xlane.xlu2 %1644 }
 0xa33   :  { %v1647_v43 = vmul.f32 %v1645_v52, %v4745_v25 }
 0xa35   :  { %v4125_v21 = vpop.eup %4124  ;;  %v1649_v22 = vadd.f32 1e-05, %v1647_v43 }
 0xa36   :  { %v1651_v57 = vmul.f32 %v4125_v21, %v1648_v12  ;;  %vm1657_vm0 = vweird.f32 %v4125_v21 }
 0xa37   :  { %4126 = vrsqrt.f32 %v1649_v22  ;;  %vm1658_vm3 = vmor %vm1656_vm1, %vm1657_vm0  ;;  %vm1666_vm2 = vweird.f32 %v1649_v22 }
 0xa38   :  { %v1652_v11 = vmul.f32 %v4125_v21, %v1651_v57 }
 0xa3a   :  { %v1653_v9 = vmul.f32 0.5, %v1652_v11 }
 0xa3c   :  { %v1654_v44 = vsub.f32 1.5, %v1653_v9 }
 0xa3d   :  { %v4127_v36 = vpop.eup %4126 }
 0xa3e   :  { %v1655_v14 = vmul.f32 %v4125_v21, %v1654_v44  ;;  %v1661_v32 = vmul.f32 %v4127_v36, %v1649_v22  ;;  %vm1667_vm4 = vweird.f32 %v4127_v36 }
 0xa3f   :  { %vm1668_vm8 = vmor %vm1666_vm2, %vm1667_vm4 }
 0xa40   :  { %v1662_v10 = vmul.f32 %v4127_v36, %v1661_v32  ;;  %v1659_v48 = vsel %vm1658_vm3, %v4125_v21, %v1655_v14  ;;  %v72_v21 = vld [vmem:[%s5992_s4 + $0x8] sm:$0xff] }
 0xa41   :  { %v1670_v8 = vmul.f32 %v1659_v48, %v5186_v60 }
 0xa42   :  { %v1663_v62 = vmul.f32 0.5, %v1662_v10 }
 0xa43   :  { %v1673_v63 = vmul.f32 %v5211_v13, %v1670_v8 }
 0xa44   :  { %v1664_v24 = vsub.f32 1.5, %v1663_v62 }
 0xa45   :  { %v1676_v41 = vadd.f32 %v5215_v6, %v1673_v63 }
 0xa46   :  { %v1665_v53 = vmul.f32 %v4127_v36, %v1664_v24 }
 0xa48   :  { %v1669_v33 = vsel %vm1668_vm8, %v4127_v36, %v1665_v53 }
 0xa49   :  { %v1671_v47 = vmul.f32 %v1669_v33, %v5194_v28 }
 0xa4b   :  { %v1674_v19 = vmul.f32 %v5211_v13, %v1671_v47 }
 0xa4d   :  { %v1677_v34 = vadd.f32 %v5215_v6, %v1674_v19 }
 0xa4f   :  { %v1678_v46 = vpack.c.bf16 %v1677_v34, %v1676_v41 }
 0xa51   :  { %3799 = vmatmul.msk.bf16.vlgmr.msra.gmra.mxu0 %vm594_vm5, %v1678_v46 }
 0xa53   :  { %v1621_v60 = vpop.f32.mrf.mxu1 }
 0xa54   :  { %v1622_v16 = vadd.f32 %v1621_v60, %v1590_v45 }
 0xa56   :  { %v1626_v29 = vpack.c.bf16 %v1622_v16, %v1622_v16 }
 0xa58   :  { %v1723_v61 = vunpack.c.l.b16 %v1626_v29 }
 0xa5b   :  { %v1623_v38 = vpop.f32.mrf.mxu1 }
 0xa5c   :  { %v1624_v30 = vadd.f32 %v1623_v38, %v1590_v45 }
 0xa5e   :  { %v1627_v56 = vpack.c.bf16 %v1624_v30, %v1624_v30 }
 0xa60   :  { %v1724_v51 = vunpack.c.l.b16 %v1627_v56 }
 0xa62   :  { %v5224_v28 = vpack.c.b16 %v1724_v51, %v1723_v61 }
 0xa64   :  { %1918 = vrot.lane.b32.xlu1 %v5224_v28, %s4302_s30  ;;  %1821 = vrot.lane.b32.xlu0 %v5224_v28, %s4303_s10  ;;  %v5232_v37 = vsel %vm734_vm6, %v5224_v28, 0 }
 0xa65   :  { %1739 = vmatpush.bf16.xpose.msrb.mxu2 %v5232_v37 }
 0xace   :  { %v1709_v59 = vpop.f32.mrf.mxu0 }
 0xacf   :  { %v1710_v15 = vadd.f32 %v1709_v59, %v5236_v7 }
 0xad1   :  { %v1714_v0 = vpack.c.bf16 %v1710_v15, %v1710_v15 }
 0xad3   :  { %v1718_v2 = vunpack.c.l.b16 %v1714_v0 }
 0xad6   :  { %v1919_v20 = vpop.permute.xlu1 %1918  ;;  %v1822_v18 = vpop.permute.xlu0 %1821 }
 0xad7   :  { %v5240_v49 = vsel %vm734_vm6, %v1919_v20, 0  ;;  %v5243_v27 = vsel %vm734_vm6, %v1822_v18, 0  ;;  %v1711_v31 = vpop.f32.mrf.mxu0 }
 0xad8   :  { %v1712_v50 = vadd.f32 %v1711_v31, %v5236_v7  ;;  %1836 = vmatpush.bf16.xpose.msra.mxu1 %v5243_v27  ;;  %1933 = vmatpush.bf16.xpose.msra.mxu2 %v5240_v49 }
 0xada   :  { %v1715_v35 = vpack.c.bf16 %v1712_v50, %v1712_v50 }
 0xadc   :  { %v1719_v1 = vunpack.c.l.b16 %v1715_v35 }
 0xade   :  { %v1720_v42 = vpack.c.b16 %v1719_v1, %v1718_v2 }
 0xae0   :  { %1916 = vrot.lane.b32.xlu0 %v1720_v42, %s4302_s30  ;;  %1819 = vrot.lane.b32.xlu2 %v1720_v42, %s4303_s10 }
 0xae1   :  { %3800 = vmatmul.msk.bf16.vlgmr.msrb.gmra.mxu2 %vm734_vm6, %v1720_v42 }
 0xae8   :  { %2015 = vrot.lane.b32.xlu0 %v5224_v28, %s4304_s11  ;;  %2013 = vrot.lane.b32.xlu2 %v1720_v42, %s4304_s11 }
 0xb3a   :  { %v1820_v4 = vpop.permute.xlu2 %1819 }
 0xb3b   :  { %3802 = vmatmul.msk.bf16.vlgmr.msra.gmra.mxu1 %vm734_vm6, %v1820_v4 }
 0xb42   :  { %v2014_v17 = vpop.permute.xlu2 %2013 }
 0xb52   :  { %v1917_v54 = vpop.permute.xlu0 %1916 }
 0xb53   :  { %3804 = vmatmul.msk.bf16.vlgmr.msra.gmra.mxu2 %vm734_vm6, %v1917_v54 }
 0xb5a   :  { %v2016_v40 = vpop.permute.xlu0 %2015 }
 0xb5b   :  { %v5257_v26 = vsel %vm734_vm6, %v2016_v40, 0 }
 0xb5c   :  { %2030 = vmatpush.bf16.xpose.msrb.mxu1 %v5257_v26 }
 0xb63   :  { %3806 = vmatmul.msk.bf16.vlgmr.msrb.gmra.mxu1 %vm734_vm6, %v2014_v17 }
 0xb64   :  { %v1741_v55 = vpop.f32.mrf.mxu2 }
 0xb65   :  { %v1746_v12 = vmul.f32 0.35355338, %v1741_v55 }
 0xb67   :  { %v1748_v39 = vadd.f32 %v1746_v12, %v71_v58 }
 0xb69   :  { %v1750_v52 = vsel %vm1327_vm12, %v1748_v39, -inf }
 0xb6a   :  { %1751 = vmax.xlane.f32.xlu1 %v1750_v52 }
 0xb6c   :  { %v1743_v43 = vpop.f32.mrf.mxu2 }
 0xb6d   :  { %v1747_v22 = vmul.f32 0.35355338, %v1743_v43 }
 0xb6f   :  { %v1749_v57 = vadd.f32 %v1747_v22, %v72_v21 }
 0xb71   :  { %v1753_v11 = vsel %vm1327_vm12, %v1749_v57, -inf }
 0xb72   :  { %1754 = vmax.xlane.f32.xlu0 %v1753_v11 }
 0xbb8   :  { %v1838_v9 = vpop.f32.mrf.mxu1 }
 0xbb9   :  { %v1843_v44 = vmul.f32 0.35355338, %v1838_v9 }
 0xbbb   :  { %v1845_v36 = vadd.f32 %v1843_v44, %v71_v58 }
 0xbbd   :  { %v1847_v14 = vsel %vm1327_vm12, %v1845_v36, -inf }
 0xbbe   :  { %1848 = vmax.xlane.f32.xlu2 %v1847_v14 }
 0xbc0   :  { %v1840_v32 = vpop.f32.mrf.mxu1 }
 0xbc1   :  { %v1844_v10 = vmul.f32 0.35355338, %v1840_v32 }
 0xbc3   :  { %v1846_v48 = vadd.f32 %v1844_v10, %v72_v21 }
 0xbc5   :  { %v1850_v62 = vsel %vm1327_vm12, %v1846_v48, -inf }
 0xbc6   :  { %1851 = vmax.xlane.f32.xlu1 %v1850_v62 }
 0xbd6   :  { %v1935_v24 = vpop.f32.mrf.mxu2 }
 0xbd7   :  { %v1940_v8 = vmul.f32 0.35355338, %v1935_v24 }
 0xbd9   :  { %v1942_v53 = vadd.f32 %v1940_v8, %v71_v58 }
 0xbdb   :  { %v1944_v33 = vsel %vm1327_vm12, %v1942_v53, -inf }
 0xbdc   :  { %1945 = vmax.xlane.f32.xlu0 %v1944_v33 }
 0xbdd   :  { %v1752_v20 = vpop.xlane.xlu1 %1751 }
 0xbde   :  { %v1937_v63 = vpop.f32.mrf.mxu2  ;;  %v1756_v18 = vsub.f32 %v1748_v39, %v1752_v20 }
 0xbdf   :  { %v1941_v47 = vmul.f32 0.35355338, %v1937_v63 }
 0xbe0   :  { %v2032_v19 = vpop.f32.mrf.mxu1  ;;  %v1758_v31 = vmul.f32 1.442695, %v1756_v18 }
 0xbe1   :  { %v2037_v41 = vmul.f32 0.35355338, %v2032_v19  ;;  %v1943_v34 = vadd.f32 %v1941_v47, %v72_v21 }
 0xbe3   :  { %v1947_v46 = vsel %vm1327_vm12, %v1943_v34, -inf  ;;  %v2039_v60 = vadd.f32 %v2037_v41, %v71_v58 }
 0xbe4   :  { %1948 = vmax.xlane.f32.xlu2 %v1947_v46 }
 0xbe5   :  { %v1755_v45 = vpop.xlane.xlu0 %1754  ;;  %v2041_v16 = vsel %vm1327_vm12, %v2039_v60, -inf }
 0xbe6   :  { %v1757_v38 = vsub.f32 %v1749_v57, %v1755_v45  ;;  %2042 = vmax.xlane.f32.xlu1 %v2041_v16 }
 0xbe8   :  { %v1760_v29 = vmul.f32 1.442695, %v1757_v38  ;;  %v2034_v30 = vpop.f32.mrf.mxu1 }
 0xbe9   :  { %v2038_v56 = vmul.f32 0.35355338, %v2034_v30 }
 0xbea   :  { %4128 = vpow2.f32 %v1760_v29 }
 0xbeb   :  { %v2040_v61 = vadd.f32 %v2038_v56, %v72_v21  ;;  %4130 = vpow2.f32 %v1758_v31 }
 0xbed   :  { %v2044_v51 = vsel %vm1327_vm12, %v2040_v61, -inf }
 0xbee   :  { %2045 = vmax.xlane.f32.xlu0 %v2044_v51 }
 0xbf0   :  { %v5275_v59 = vpop.eup %4128 }
 0xbf1   :  { %v1765_v15 = vsel %vm1327_vm12, %v5275_v59, 0.0  ;;  %v5281_v0 = vpop.eup %4130 }
 0xbf2   :  { %1766 = vadd.xlane.f32.xlu1 %v1765_v15  ;;  %v1762_v50 = vsel %vm1327_vm12, %v5281_v0, 0.0 }
 0xbfc   :  { %1799 = vrot.lane.b32.xlu2 %v5224_v28, %s4305_s12 }
 0xc25   :  { %1763 = vadd.xlane.f32.xlu2 %v1762_v50 }
 0xc31   :  { %v1849_v35 = vpop.xlane.xlu2 %1848 }
 0xc32   :  { %v1853_v2 = vsub.f32 %v1845_v36, %v1849_v35 }
 0xc34   :  { %v1855_v1 = vmul.f32 1.442695, %v1853_v2 }
 0xc36   :  { %4132 = vpow2.f32 %v1855_v1 }
 0xc39   :  { %v1852_v42 = vpop.xlane.xlu1 %1851 }
 0xc3a   :  { %v1854_v4 = vsub.f32 %v1846_v48, %v1852_v42 }
 0xc3c   :  { %v5285_v54 = vpop.eup %4132  ;;  %v1857_v40 = vmul.f32 1.442695, %v1854_v4 }
 0xc3d   :  { %v1859_v17 = vsel %vm1327_vm12, %v5285_v54, 0.0 }
 0xc3e   :  { %4134 = vpow2.f32 %v1857_v40  ;;  %1860 = vadd.xlane.f32.xlu0 %v1859_v17 }
 0xc44   :  { %v5289_v55 = vpop.eup %4134 }
 0xc45   :  { %v1862_v58 = vsel %vm1327_vm12, %v5289_v55, 0.0 }
 0xc46   :  { %1863 = vadd.xlane.f32.xlu2 %v1862_v58 }
 0xc4f   :  { %v1946_v12 = vpop.xlane.xlu0 %1945 }
 0xc50   :  { %v1950_v39 = vsub.f32 %v1942_v53, %v1946_v12 }
 0xc52   :  { %v1952_v52 = vmul.f32 1.442695, %v1950_v39 }
 0xc54   :  { %4136 = vpow2.f32 %v1952_v52 }
 0xc57   :  { %v1949_v43 = vpop.xlane.xlu2 %1948 }
 0xc58   :  { %v1951_v21 = vsub.f32 %v1943_v34, %v1949_v43 }
 0xc59   :  { %v2043_v22 = vpop.xlane.xlu1 %2042 }
 0xc5a   :  { %v5293_v57 = vpop.eup %4136  ;;  %v1954_v11 = vmul.f32 1.442695, %v1951_v21  ;;  %v2047_v9 = vsub.f32 %v2039_v60, %v2043_v22 }
 0xc5b   :  { %v1956_v44 = vsel %vm1327_vm12, %v5293_v57, 0.0 }
 0xc5c   :  { %4138 = vpow2.f32 %v1954_v11  ;;  %v2049_v36 = vmul.f32 1.442695, %v2047_v9  ;;  %1957 = vadd.xlane.f32.xlu1 %v1956_v44 }
 0xc5e   :  { %4140 = vpow2.f32 %v2049_v36  ;;  %2090 = vrot.lane.b32.xlu2 %v5224_v28, %s4308_s2 }
 0xc5f   :  { %v5299_v14 = vpop.permute.xlu2 %1799 }
 0xc60   :  { %1812 = vmatpush.bf16.msrb.mxu3 %v5299_v14 }
 0xc61   :  { %v2046_v32 = vpop.xlane.xlu0 %2045 }
 0xc62   :  { %v5302_v10 = vpop.eup %4138  ;;  %v2048_v48 = vsub.f32 %v2040_v61, %v2046_v32 }
 0xc63   :  { %v1959_v62 = vsel %vm1327_vm12, %v5302_v10, 0.0 }
 0xc64   :  { %v5306_v24 = vpop.eup %4140  ;;  %v2051_v8 = vmul.f32 1.442695, %v2048_v48  ;;  %1960 = vadd.xlane.f32.xlu0 %v1959_v62 }
 0xc65   :  { %v2053_v53 = vsel %vm1327_vm12, %v5306_v24, 0.0  ;;  %v1767_v47 = vpop.xlane.xlu1 %1766 }
 0xc66   :  { %4142 = vpow2.f32 %v2051_v8  ;;  %2054 = vadd.xlane.f32.xlu1 %v2053_v53  ;;  %v1794_v29 = vand.u32 2147483648, %v1767_v47  ;;  %vm1788_vm10 = vweird.f32 %v1767_v47  ;;  %v1792_v30 = vand.u32 2147483647, %v1767_v47 }
 0xc67   :  { %4144 = vrcp.f32 %v1767_v47 }
 0xc68   :  { %v1795_v20 = vor.u32 1.1754944e-38, %v1794_v29  ;;  %vm1793_vm15 = vcmp.eq.f32.partialorder %v1792_v30, 8.507059e+37 }
 0xc6c   :  { %v5310_v33 = vpop.eup %4142 }
 0xc6d   :  { %v2056_v63 = vsel %vm1327_vm12, %v5310_v33, 0.0  ;;  %v4145_v19 = vpop.eup %4144 }
 0xc6e   :  { %2057 = vadd.xlane.f32.xlu0 %v2056_v63  ;;  %v1784_v41 = vmul.f32 %v4145_v19, %v1767_v47  ;;  %vm1789_vm9 = vweird.f32 %v4145_v19 }
 0xc6f   :  { %vm1790_vm11 = vmor %vm1788_vm10, %vm1789_vm9 }
 0xc70   :  { %v1785_v34 = vsub.f32 1.0, %v1784_v41 }
 0xc72   :  { %v1786_v60 = vmul.f32 %v4145_v19, %v1785_v34 }
 0xc74   :  { %v1787_v16 = vadd.f32 %v4145_v19, %v1786_v60 }
 0xc76   :  { %v1791_v51 = vsel %vm1790_vm11, %v4145_v19, %v1787_v16 }
 0xc77   :  { %v1796_v31 = vsel %vm1793_vm15, %v1795_v20, %v1791_v51 }
 0xc78   :  { %v1797_v1 = vmul.f32 %v5275_v59, %v1796_v31 }
 0xc7f   :  { %1896 = vrot.lane.b32.xlu1 %v5224_v28, %s4306_s13 }
 0xc82   :  { %1993 = vrot.lane.b32.xlu0 %v5224_v28, %s4307_s14 }
 0xc98   :  { %v1764_v46 = vpop.xlane.xlu2 %1763 }
 0xc99   :  { %4146 = vrcp.f32 %v1764_v46  ;;  %v1779_v61 = vand.u32 2147483648, %v1764_v46  ;;  %v1777_v15 = vand.u32 2147483647, %v1764_v46  ;;  %vm1773_vm0 = vweird.f32 %v1764_v46 }
 0xc9b   :  { %v1780_v50 = vor.u32 1.1754944e-38, %v1779_v61  ;;  %vm1778_vm3 = vcmp.eq.f32.partialorder %v1777_v15, 8.507059e+37 }
 0xc9f   :  { %v4147_v45 = vpop.eup %4146 }
 0xca0   :  { %v1769_v38 = vmul.f32 %v4147_v45, %v1764_v46  ;;  %vm1774_vm14 = vweird.f32 %v4147_v45 }
 0xca1   :  { %vm1775_vm1 = vmor %vm1773_vm0, %vm1774_vm14 }
 0xca2   :  { %v1770_v56 = vsub.f32 1.0, %v1769_v38 }
 0xca4   :  { %v1771_v28 = vmul.f32 %v4147_v45, %v1770_v56 }
 0xca6   :  { %v1772_v18 = vadd.f32 %v4147_v45, %v1771_v28 }
 0xca8   :  { %v1776_v35 = vsel %vm1775_vm1, %v4147_v45, %v1772_v18 }
 0xca9   :  { %v1781_v2 = vsel %vm1778_vm3, %v1780_v50, %v1776_v35 }
 0xcaa   :  { %v1782_v42 = vmul.f32 %v5281_v0, %v1781_v2 }
 0xcac   :  { %v1798_v4 = vpack.c.bf16 %v1797_v1, %v1782_v42 }
 0xcae   :  { %3801 = vmatmul.msk.bf16.vlgmr.msrb.gmra.mxu3 %vm1327_vm12, %v1798_v4 }
 0xcb1   :  { %v1861_v17 = vpop.xlane.xlu0 %1860 }
 0xcb2   :  { %v1876_v63 = vand.u32 2147483648, %v1861_v17  ;;  %vm1870_vm2 = vweird.f32 %v1861_v17  ;;  %v1874_v38 = vand.u32 2147483647, %v1861_v17 }
 0xcb4   :  { %v1877_v29 = vor.u32 1.1754944e-38, %v1876_v63 }
 0xcb9   :  { %v1864_v40 = vpop.xlane.xlu2 %1863 }
 0xcba   :  { %4148 = vrcp.f32 %v1864_v40  ;;  %v1891_v41 = vand.u32 2147483648, %v1864_v40  ;;  %vm1885_vm9 = vweird.f32 %v1864_v40  ;;  %v1889_v45 = vand.u32 2147483647, %v1864_v40 }
 0xcbb   :  { %4150 = vrcp.f32 %v1861_v17 }
 0xcbc   :  { %v1892_v51 = vor.u32 1.1754944e-38, %v1891_v41  ;;  %vm1890_vm1 = vcmp.eq.f32.partialorder %v1889_v45, 8.507059e+37 }
 0xcc0   :  { %v4149_v12 = vpop.eup %4148 }
 0xcc1   :  { %v4151_v52 = vpop.eup %4150  ;;  %v1881_v43 = vmul.f32 %v4149_v12, %v1864_v40  ;;  %vm1886_vm4 = vweird.f32 %v4149_v12 }
 0xcc2   :  { %v1866_v59 = vmul.f32 %v4151_v52, %v1861_v17  ;;  %vm1871_vm8 = vweird.f32 %v4151_v52  ;;  %vm5339_vm10 = vmor %vm1885_vm9, %vm1886_vm4 }
 0xcc3   :  { %v1882_v0 = vsub.f32 1.0, %v1881_v43  ;;  %vm5348_vm14 = vmor %vm1870_vm2, %vm1871_vm8  ;;  %vm1875_vm2 = vcmp.eq.f32.partialorder %v1874_v38, 8.507059e+37 }
 0xcc4   :  { %v1867_v44 = vsub.f32 1.0, %v1866_v59 }
 0xcc5   :  { %v1883_v32 = vmul.f32 %v4149_v12, %v1882_v0 }
 0xcc6   :  { %v1868_v53 = vmul.f32 %v4151_v52, %v1867_v44 }
 0xcc7   :  { %v1884_v19 = vadd.f32 %v4149_v12, %v1883_v32  ;;  %v5373_v32 = vpop.permute.xlu2 %2090 }
 0xcc8   :  { %v1869_v60 = vadd.f32 %v4151_v52, %v1868_v53 }
 0xcc9   :  { %v1888_v61 = vsel %vm5339_vm10, %v4149_v12, %v1884_v19 }
 0xcca   :  { %v1873_v50 = vsel %vm5348_vm14, %v4151_v52, %v1869_v60  ;;  %v1893_v42 = vsel %vm1890_vm1, %v1892_v51, %v1888_v61 }
 0xccb   :  { %v1894_v43 = vmul.f32 %v5289_v55, %v1893_v42 }
 0xccf   :  { %v5321_v58 = vpop.xlane.xlu1 %1957 }
 0xcd0   :  { %4152 = vrcp.f32 %v5321_v58  ;;  %v1973_v35 = vand.u32 2147483648, %v5321_v58  ;;  %vm1967_vm4 = vweird.f32 %v5321_v58  ;;  %v1971_v4 = vand.u32 2147483647, %v5321_v58 }
 0xcd2   :  { %v1974_v59 = vor.u32 1.1754944e-38, %v1973_v35  ;;  %vm1972_vm10 = vcmp.eq.f32.partialorder %v1971_v4, 8.507059e+37  ;;  %v3943_v35 = vld [vmem:[#allocation2 + $0xe0] sm:$0xff] }
 0xcd6   :  { %v5324_v21 = vpop.eup %4152 }
 0xcd7   :  { %v1961_v39 = vpop.xlane.xlu0 %1960  ;;  %v1963_v11 = vmul.f32 %v5324_v21, %v5321_v58  ;;  %vm1968_vm15 = vweird.f32 %v5324_v21 }
 0xcd8   :  { %4154 = vrcp.f32 %v1961_v39  ;;  %v1988_v28 = vand.u32 2147483648, %v1961_v39  ;;  %vm1982_vm0 = vweird.f32 %v1961_v39  ;;  %v1986_v31 = vand.u32 2147483647, %v1961_v39  ;;  %vm1969_vm8 = vmor %vm1967_vm4, %vm1968_vm15 }
 0xcd9   :  { %v5328_v9 = vpop.xlane.xlu1 %2054  ;;  %v1964_v8 = vsub.f32 1.0, %v1963_v11 }
 0xcda   :  { %4156 = vrcp.f32 %v5328_v9  ;;  %v1989_v17 = vor.u32 1.1754944e-38, %v1988_v28  ;;  %vm1987_vm9 = vcmp.eq.f32.partialorder %v1986_v31, 8.507059e+37  ;;  %v2070_v19 = vand.u32 2147483648, %v5328_v9 }
 0xcdb   :  { %v1965_v34 = vmul.f32 %v5324_v21, %v1964_v8  ;;  %vm2064_vm1 = vweird.f32 %v5328_v9  ;;  %v2068_v41 = vand.u32 2147483647, %v5328_v9 }
 0xcdc   :  { %v2071_v38 = vor.u32 1.1754944e-38, %v2070_v19 }
 0xcdd   :  { %v1966_v18 = vadd.f32 %v5324_v21, %v1965_v34 }
 0xcde   :  { %v4155_v22 = vpop.eup %4154 }
 0xcdf   :  { %v1978_v36 = vmul.f32 %v4155_v22, %v1961_v39  ;;  %vm1983_vm11 = vweird.f32 %v4155_v22  ;;  %v1878_v39 = vsel %vm1875_vm2, %v1877_v29, %v1873_v50  ;;  %v1970_v52 = vsel %vm1969_vm8, %v5324_v21, %v1966_v18 }
 0xce0   :  { %v5335_v46 = vpop.eup %4156  ;;  %vm5357_vm3 = vmor %vm1982_vm0, %vm1983_vm11  ;;  %v1879_v44 = vmul.f32 %v5285_v54, %v1878_v39  ;;  %v1975_v58 = vsel %vm1972_vm10, %v1974_v59, %v1970_v52  ;;  %vm2069_vm2 = vcmp.eq.f32.partialorder %v2068_v41, 8.507059e+37 }
 0xce1   :  { %v1979_v48 = vsub.f32 1.0, %v1978_v36  ;;  %v5331_v62 = vpop.xlane.xlu0 %2057  ;;  %v2060_v1 = vmul.f32 %v5335_v46, %v5328_v9  ;;  %v1976_v8 = vmul.f32 %v5293_v57, %v1975_v58  ;;  %vm2065_vm14 = vweird.f32 %v5335_v46 }
 0xce2   :  { %4158 = vrcp.f32 %v5331_v62  ;;  %v1895_v55 = vpack.c.bf16 %v1894_v43, %v1879_v44  ;;  %vm2079_vm15 = vweird.f32 %v5331_v62  ;;  %v2083_v57 = vand.u32 2147483647, %v5331_v62 }
 0xce3   :  { %v1980_v47 = vmul.f32 %v4155_v22, %v1979_v48  ;;  %v2061_v11 = vsub.f32 1.0, %v2060_v1 }
 0xce4   :  { %vm2084_vm4 = vcmp.eq.f32.partialorder %v2083_v57, 8.507059e+37 }
 0xce5   :  { %v1981_v56 = vadd.f32 %v4155_v22, %v1980_v47  ;;  %v2062_v21 = vmul.f32 %v5335_v46, %v2061_v11 }
 0xce7   :  { %v1985_v40 = vsel %vm5357_vm3, %v4155_v22, %v1981_v56  ;;  %v2063_v47 = vadd.f32 %v5335_v46, %v2062_v21  ;;  %vm2066_vm3 = vmor %vm2064_vm1, %vm2065_vm14 }
 0xce8   :  { %v5337_v16 = vpop.eup %4158  ;;  %v1990_v0 = vsel %vm1987_vm9, %v1989_v17, %v1985_v40 }
 0xce9   :  { %v2075_v15 = vmul.f32 %v5337_v16, %v5331_v62  ;;  %v1991_v48 = vmul.f32 %v5302_v10, %v1990_v0  ;;  %vm2080_vm11 = vweird.f32 %v5337_v16  ;;  %v2085_v10 = vand.u32 2147483648, %v5331_v62 }
 0xcea   :  { %vm2081_vm0 = vmor %vm2079_vm15, %vm2080_vm11  ;;  %v2067_v45 = vsel %vm2066_vm3, %v5335_v46, %v2063_v47 }
 0xceb   :  { %v2076_v12 = vsub.f32 1.0, %v2075_v15  ;;  %v1992_v63 = vpack.c.bf16 %v1991_v48, %v1976_v8  ;;  %v2086_v60 = vor.u32 1.1754944e-38, %v2085_v10  ;;  %v2072_v62 = vsel %vm2069_vm2, %v2071_v38, %v2067_v45  ;;  %v5413_v48 = vld [vmem:[%s5995_s7 + $0x18] sm:$0xff] }
 0xcec   :  { %v2073_v56 = vmul.f32 %v5306_v24, %v2072_v62  ;;  %v3944_v24 = vld [vmem:[#allocation2 + $0xe8] sm:$0xff]  ;;  %v5416_v21 = vperm.slane %v5413_v48, 0 }
 0xced   :  { %v2077_v36 = vmul.f32 %v5337_v16, %v2076_v12  ;;  %2168 = vmatpush.bf16.msrb.mxu2 %v3944_v24 }
 0xcef   :  { %v2078_v54 = vadd.f32 %v5337_v16, %v2077_v36 }
 0xcf1   :  { %v5371_v22 = vpop.permute.xlu1 %1896  ;;  %v2082_v34 = vsel %vm2081_vm0, %v5337_v16, %v2078_v54  ;;  %2169 = vmatpush.bf16.msrb.mxu2 %v3943_v35 }
 0xcf2   :  { %1909 = vmatpush.bf16.msrb.mxu0 %v5371_v22  ;;  %v2087_v29 = vsel %vm2084_vm4, %v2086_v60, %v2082_v34 }
 0xcf3   :  { %v2088_v30 = vmul.f32 %v5310_v33, %v2087_v29 }
 0xcf4   :  { %v5380_v53 = vpop.permute.xlu0 %1993 }
 0xcf5   :  { %3803 = vmatmul.msk.bf16.vlgmr.msrb.gmra.mxu0 %vm1327_vm12, %v1895_v55  ;;  %2006 = vmatpush.bf16.msra.mxu3 %v5380_v53  ;;  %v2089_v61 = vpack.c.bf16 %v2088_v30, %v2073_v56 }
 0xcf6   :  { %2103 = vmatpush.bf16.msra.mxu0 %v5373_v32 }
 0xcf8   :  { %3805 = vmatmul.msk.bf16.vlgmr.msra.gmra.mxu3 %vm1327_vm12, %v1992_v63 }
 0xd05   :  { %3807 = vmatmul.msk.bf16.vlgmr.msra.gmra.mxu0 %vm1327_vm12, %v2089_v61  ;;  %v3946_v61 = vld [vmem:[#allocation2 + $0x108] sm:$0xff] }
 0xd06   :  { %2256 = vmatpush.bf16.msrb.mxu3 %v3946_v61 }
 0xd31   :  { %v1814_v51 = vpop.f32.mrf.mxu3 }
 0xd39   :  { %v1816_v28 = vpop.f32.mrf.mxu3 }
 0xd72   :  { %v1911_v9 = vpop.f32.mrf.mxu0 }
 0xd7a   :  { %v1913_v16 = vpop.f32.mrf.mxu0 }
 0xd7b   :  { %v3995_v15 = vpack.i.bf16 %v1913_v16, %v1911_v9  ;;  %v2008_v20 = vpop.f32.mrf.mxu3 }
 0xd7d   :  { %3996 = vrot.lane.b32.xlu2 %v3995_v15, %s4309_s19 }
 0xd82   :  { %v2105_v46 = vpop.f32.mrf.mxu0 }
 0xd83   :  { %v2010_v18 = vpop.f32.mrf.mxu3 }
 0xd84   :  { %v4000_v31 = vpack.i.bf16 %v2010_v18, %v2008_v20 }
 0xd86   :  { %4001 = vrot.lane.b32.xlu0 %v4000_v31, %s4310_s6 }
 0xd8a   :  { %v2107_v50 = vpop.f32.mrf.mxu0 }
 0xd8b   :  { %v4005_v33 = vpack.i.bf16 %v2107_v50, %v2105_v46 }
 0xd8d   :  { %4006 = vrot.lane.b32.xlu1 %v4005_v33, %s4311_s20 }
 0xdd7   :  { %v3997_v2 = vpop.permute.xlu2 %3996 }
 0xdd8   :  { %v3999_v42 = vunpack.i.h.bf16 %v3997_v2  ;;  %v3998_v4 = vunpack.i.l.bf16 %v3997_v2 }
 0xdda   :  { %v2135_v39 = vsel %vm734_vm6, %v1816_v28, %v3999_v42  ;;  %v2134_v52 = vsel %vm734_vm6, %v1814_v51, %v3998_v4  ;;  %v3945_v28 = vld [vmem:[#allocation2 + $0x100] sm:$0xff] }
 0xddb   :  { %2257 = vmatpush.bf16.msrb.mxu3 %v3945_v28 }
 0xdf8   :  { %v4002_v1 = vpop.permute.xlu0 %4001 }
 0xdf9   :  { %v4004_v40 = vunpack.i.h.bf16 %v4002_v1  ;;  %v4003_v17 = vunpack.i.l.bf16 %v4002_v1 }
 0xdfb   :  { %v2137_v0 = vsel %vm1327_vm12, %v2135_v39, %v4004_v40  ;;  %v2136_v11 = vsel %vm1327_vm12, %v2134_v52, %v4003_v17  ;;  %v5439_v17 = vperm.slane %v5202_v5, 4 }
 0xdff   :  { %v4007_v12 = vpop.permute.xlu1 %4006 }
 0xe00   :  { %v4009_v43 = vunpack.i.h.bf16 %v4007_v12  ;;  %v4008_v59 = vunpack.i.l.bf16 %v4007_v12 }
 0xe02   :  { %v2138_v44 = vsel %vm1330_vm13, %v2136_v11, %v4008_v59  ;;  %v2139_v58 = vsel %vm1330_vm13, %v2137_v0, %v4009_v43  ;;  %v5442_v43 = vperm.slane %v5202_v5, 5  ;;  %v3948_v5 = vld [vmem:[#allocation2 + $0x128] sm:$0xff] }
 0xe03   :  { %v2140_v36 = vpack.c.bf16 %v2139_v58, %v2138_v44 }
 0xe05   :  { %3816 = vmatmul.msk.bf16.vlgmr.msrb.gmra.mxu2 %vm594_vm5, %v2140_v36 }
 0xe88   :  { %v2171_v55 = vpop.f32.mrf.mxu2 }
 0xe89   :  { %v2172_v8 = vadd.f32 %v2171_v55, %v5416_v21  ;;  %v3950_v55 = vld [vmem:[#allocation2 + $0x138] sm:$0xff] }
 0xe8a   :  { %2324 = vmatpush.bf16.msra.mxu1 %v3950_v55  ;;  %v3954_v55 = vld [vmem:[#allocation2 + $0x148] sm:$0xff] }
 0xe8b   :  { %v5420_v54 = vadd.f32 %v2172_v8, %v5173_v23  ;;  %v3949_v8 = vld [vmem:[#allocation2 + $0x130] sm:$0xff]  ;;  %2461 = vmatpush.bf16.msra.mxu2 %v3954_v55 }
 0xe8d   :  { %v2178_v10 = vsel %vm594_vm5, %v5420_v54, 0.0 }
 0xe8e   :  { %2179 = vadd.xlane.f32.xlu2 %v2178_v10  ;;  %2325 = vmatpush.bf16.msra.mxu1 %v3949_v8  ;;  %v5450_v10 = vperm.slane %v5413_v48, 1 }
 0xe90   :  { %v2173_v63 = vpop.f32.mrf.mxu2 }
 0xe91   :  { %v2174_v47 = vadd.f32 %v2173_v63, %v5416_v21 }
 0xe92   :  { %2326 = vmatpush.bf16.msra.mxu1 %v3948_v5 }
 0xe93   :  { %v5426_v57 = vadd.f32 %v2174_v47, %v5178_v3 }
 0xe95   :  { %v2181_v19 = vsel %vm594_vm5, %v5426_v57, 0.0 }
 0xe96   :  { %2182 = vadd.xlane.f32.xlu0 %v2181_v19  ;;  %v3947_v19 = vld [vmem:[#allocation2 + $0x120] sm:$0xff] }
 0xe97   :  { %2327 = vmatpush.bf16.msra.mxu1 %v3947_v19 }
 0xf01   :  { %v2180_v41 = vpop.xlane.xlu2 %2179 }
 0xf02   :  { %v2184_v34 = vmul.f32 %v2180_v41, %v4745_v25 }
 0xf04   :  { %v2186_v23 = vsub.f32 %v5420_v54, %v2184_v34 }
 0xf06   :  { %v2188_v60 = vmul.f32 %v2186_v23, %v2186_v23 }
 0xf08   :  { %v2190_v45 = vsel %vm594_vm5, %v2188_v60, 0.0 }
 0xf09   :  { %v2183_v38 = vpop.xlane.xlu0 %2182  ;;  %2191 = vadd.xlane.f32.xlu1 %v2190_v45 }
 0xf0a   :  { %v2185_v29 = vmul.f32 %v2183_v38, %v4745_v25 }
 0xf0c   :  { %v2187_v62 = vsub.f32 %v5426_v57, %v2185_v29 }
 0xf0e   :  { %v2189_v3 = vmul.f32 %v2187_v62, %v2187_v62 }
 0xf10   :  { %v2193_v30 = vsel %vm594_vm5, %v2189_v3, 0.0 }
 0xf11   :  { %2194 = vadd.xlane.f32.xlu2 %v2193_v30 }
 0xf7c   :  { %v2192_v56 = vpop.xlane.xlu1 %2191 }
 0xf7d   :  { %v2196_v51 = vmul.f32 %v2192_v56, %v4745_v25 }
 0xf7f   :  { %v2198_v9 = vadd.f32 1e-05, %v2196_v51 }
 0xf81   :  { %4160 = vrsqrt.f32 %v2198_v9  ;;  %vm2206_vm9 = vweird.f32 %v2198_v9 }
 0xf84   :  { %v2195_v16 = vpop.xlane.xlu2 %2194 }
 0xf85   :  { %v2197_v15 = vmul.f32 %v2195_v16, %v4745_v25 }
 0xf87   :  { %v4161_v20 = vpop.eup %4160  ;;  %v2199_v46 = vadd.f32 1e-05, %v2197_v15 }
 0xf88   :  { %v2201_v18 = vmul.f32 %v4161_v20, %v2198_v9  ;;  %vm2207_vm8 = vweird.f32 %v4161_v20 }
 0xf89   :  { %4162 = vrsqrt.f32 %v2199_v46  ;;  %vm2208_vm10 = vmor %vm2206_vm9, %vm2207_vm8  ;;  %vm2216_vm14 = vweird.f32 %v2199_v46 }
 0xf8a   :  { %v2202_v31 = vmul.f32 %v4161_v20, %v2201_v18 }
 0xf8c   :  { %v2203_v50 = vmul.f32 0.5, %v2202_v31 }
 0xf8e   :  { %v2204_v33 = vsub.f32 1.5, %v2203_v50  ;;  %v5456_v50 = vperm.slane %v5413_v48, 2 }
 0xf8f   :  { %v4163_v24 = vpop.eup %4162 }
 0xf90   :  { %v2205_v35 = vmul.f32 %v4161_v20, %v2204_v33  ;;  %v2211_v2 = vmul.f32 %v4163_v24, %v2199_v46  ;;  %vm2217_vm11 = vweird.f32 %v4163_v24 }
 0xf91   :  { %vm2218_vm15 = vmor %vm2216_vm14, %vm2217_vm11 }
 0xf92   :  { %v2212_v1 = vmul.f32 %v4163_v24, %v2211_v2  ;;  %v2209_v42 = vsel %vm2208_vm10, %v4161_v20, %v2205_v35 }
 0xf93   :  { %v2220_v12 = vmul.f32 %v2209_v42, %v2186_v23 }
 0xf94   :  { %v2213_v4 = vmul.f32 0.5, %v2212_v1 }
 0xf95   :  { %v2223_v59 = vmul.f32 %v5439_v17, %v2220_v12 }
 0xf96   :  { %v2214_v40 = vsub.f32 1.5, %v2213_v4 }
 0xf97   :  { %v2226_v44 = vadd.f32 %v5442_v43, %v2223_v59 }
 0xf98   :  { %v2215_v39 = vmul.f32 %v4163_v24, %v2214_v40 }
 0xf9a   :  { %v2219_v52 = vsel %vm2218_vm15, %v4163_v24, %v2215_v39 }
 0xf9b   :  { %v2221_v0 = vmul.f32 %v2219_v52, %v2187_v62 }
 0xf9d   :  { %v2224_v11 = vmul.f32 %v5439_v17, %v2221_v0 }
 0xf9f   :  { %v2227_v58 = vadd.f32 %v5442_v43, %v2224_v11 }
 0xfa1   :  { %v2228_v36 = vpack.c.bf16 %v2227_v58, %v2226_v44 }
 0xfa3   :  { %3825 = vmatmul.msk.bf16.vlgmr.msrb.gmra.mxu3 %vm594_vm5, %v2228_v36  ;;  %v3952_v36 = vld [vmem:[#allocation2 + $0x168] sm:$0xff] }
 0xfa4   :  { %2417 = vmatpush.bf16.msrb.mxu0 %v3952_v36 }
0x1026   :  { %v2259_v63 = vpop.f32.mrf.mxu3 }
0x1027   :  { %v2260_v47 = vadd.f32 %v2259_v63, %v5450_v10  ;;  %v3951_v63 = vld [vmem:[#allocation2 + $0x160] sm:$0xff] }
0x1028   :  { %2418 = vmatpush.bf16.msrb.mxu0 %v3951_v63 }
0x1029   :  { %v2264_v41 = vmul.f32 %v2260_v47, %v2260_v47 }
0x102b   :  { %v2266_v34 = vmul.f32 %v2264_v41, %v2260_v47 }
0x102d   :  { %v2268_v23 = vmul.f32 0.044715, %v2266_v34 }
0x102e   :  { %v2261_v60 = vpop.f32.mrf.mxu3 }
0x102f   :  { %v2270_v45 = vadd.f32 %v2268_v23, %v2260_v47  ;;  %v2262_v38 = vadd.f32 %v2261_v60, %v5450_v10 }
0x1031   :  { %v2272_v29 = vmul.f32 0.7978846, %v2270_v45  ;;  %v2265_v62 = vmul.f32 %v2262_v38, %v2262_v38 }
0x1033   :  { %v2267_v3 = vmul.f32 %v2265_v62, %v2262_v38  ;;  %4164 = vtanh.f32 %v2272_v29 }
0x1035   :  { %v2269_v30 = vmul.f32 0.044715, %v2267_v3 }
0x1037   :  { %v2271_v56 = vadd.f32 %v2269_v30, %v2262_v38 }
0x1039   :  { %v2273_v61 = vmul.f32 0.7978846, %v2271_v56  ;;  %v4165_v51 = vpop.eup %4164 }
0x103a   :  { %v2276_v9 = vadd.f32 1.0, %v4165_v51 }
0x103b   :  { %4166 = vtanh.f32 %v2273_v61  ;;  %v5481_v61 = vld [vmem:[%s5995_s7 + $0x20] sm:$0xff] }
0x103c   :  { %v2278_v16 = vmul.f32 0.5, %v2276_v9  ;;  %v2439_v36 = vperm.slane %v5481_v61, 6 }
0x103e   :  { %v2280_v46 = vmul.f32 %v2278_v16, %v2260_v47  ;;  %v3953_v47 = vld [vmem:[#allocation2 + $0x140] sm:$0xff]  ;;  %v2383_v16 = vperm.slane %v5481_v61, 2 }
0x103f   :  { %2462 = vmatpush.bf16.msra.mxu2 %v3953_v47 }
0x1041   :  { %v4167_v28 = vpop.eup %4166 }
0x1042   :  { %v2277_v15 = vadd.f32 1.0, %v4167_v28 }
0x1044   :  { %v2279_v20 = vmul.f32 0.5, %v2277_v15  ;;  %v2427_v15 = vperm.slane %v5481_v61, 0 }
0x1046   :  { %v2281_v18 = vmul.f32 %v2279_v20, %v2262_v38 }
0x1048   :  { %v2282_v31 = vpack.c.bf16 %v2281_v18, %v2280_v46  ;;  %v2386_v18 = vperm.slane %v5481_v61, 3 }
0x104a   :  { %3842 = vmatmul.msk.bf16.vlgmr.msra.gmra.mxu1 %vm1510_vm7, %v2282_v31 }
0x10c7   :  { %v2329_v33 = vpop.f32.mrf.mxu1 }
0x10c8   :  { %v2330_v24 = vadd.f32 %v2329_v33, %v5456_v50  ;;  %v2430_v33 = vperm.slane %v5481_v61, 1 }
0x10ca   :  { %v5460_v35 = vadd.f32 %v2330_v24, %v5420_v54 }
0x10cc   :  { %v2339_v2 = vsel %vm594_vm5, %v5460_v35, 0.0 }
0x10cd   :  { %2340 = vadd.xlane.f32.xlu0 %v2339_v2 }
0x10cf   :  { %v2331_v1 = vpop.f32.mrf.mxu1 }
0x10d0   :  { %v2332_v42 = vadd.f32 %v2331_v1, %v5456_v50 }
0x10d2   :  { %v5466_v4 = vadd.f32 %v2332_v42, %v5426_v57 }
0x10d4   :  { %v2342_v48 = vsel %vm594_vm5, %v5466_v4, 0.0 }
0x10d5   :  { %2343 = vadd.xlane.f32.xlu1 %v2342_v48 }
0x1140   :  { %v2341_v40 = vpop.xlane.xlu0 %2340 }
0x1141   :  { %v2345_v12 = vmul.f32 %v2341_v40, %v4745_v25 }
0x1143   :  { %v2347_v54 = vsub.f32 %v5460_v35, %v2345_v12 }
0x1145   :  { %v2349_v39 = vmul.f32 %v2347_v54, %v2347_v54 }
0x1147   :  { %v2351_v52 = vsel %vm594_vm5, %v2349_v39, 0.0 }
0x1148   :  { %v2344_v59 = vpop.xlane.xlu1 %2343  ;;  %2352 = vadd.xlane.f32.xlu2 %v2351_v52 }
0x1149   :  { %v2346_v0 = vmul.f32 %v2344_v59, %v4745_v25 }
0x114b   :  { %v2348_v11 = vsub.f32 %v5466_v4, %v2346_v0 }
0x114d   :  { %v2350_v57 = vmul.f32 %v2348_v11, %v2348_v11 }
0x114f   :  { %v2354_v44 = vsel %vm594_vm5, %v2350_v57, 0.0  ;;  %v2395_v57 = vperm.slane %v5481_v61, 7 }
0x1150   :  { %2355 = vadd.xlane.f32.xlu0 %v2354_v44 }
0x11bb   :  { %v2353_v58 = vpop.xlane.xlu2 %2352 }
0x11bc   :  { %v2357_v8 = vmul.f32 %v2353_v58, %v4745_v25 }
0x11be   :  { %v2359_v5 = vadd.f32 1e-05, %v2357_v8 }
0x11c0   :  { %4168 = vrsqrt.f32 %v2359_v5  ;;  %vm2367_vm1 = vweird.f32 %v2359_v5 }
0x11c3   :  { %v2356_v19 = vpop.xlane.xlu0 %2355 }
0x11c4   :  { %v2358_v41 = vmul.f32 %v2356_v19, %v4745_v25 }
0x11c6   :  { %v4169_v34 = vpop.eup %4168  ;;  %v2360_v23 = vadd.f32 1e-05, %v2358_v41 }
0x11c7   :  { %v2362_v60 = vmul.f32 %v4169_v34, %v2359_v5  ;;  %vm2368_vm0 = vweird.f32 %v4169_v34 }
0x11c8   :  { %4170 = vrsqrt.f32 %v2360_v23  ;;  %vm2369_vm3 = vmor %vm2367_vm1, %vm2368_vm0  ;;  %vm2377_vm2 = vweird.f32 %v2360_v23 }
0x11c9   :  { %v2363_v45 = vmul.f32 %v4169_v34, %v2362_v60 }
0x11cb   :  { %v2364_v38 = vmul.f32 0.5, %v2363_v45 }
0x11cd   :  { %v2365_v29 = vsub.f32 1.5, %v2364_v38 }
0x11ce   :  { %v4171_v62 = vpop.eup %4170 }
0x11cf   :  { %v2366_v3 = vmul.f32 %v4169_v34, %v2365_v29  ;;  %v2372_v30 = vmul.f32 %v4171_v62, %v2360_v23  ;;  %vm2378_vm4 = vweird.f32 %v4171_v62 }
0x11d0   :  { %vm2379_vm8 = vmor %vm2377_vm2, %vm2378_vm4 }
0x11d1   :  { %v2373_v56 = vmul.f32 %v4171_v62, %v2372_v30  ;;  %v2370_v51 = vsel %vm2369_vm3, %v4169_v34, %v2366_v3  ;;  %v3956_v30 = vld [vmem:[#allocation2 + $0x188] sm:$0xff] }
0x11d2   :  { %v2381_v20 = vmul.f32 %v2370_v51, %v2347_v54 }
0x11d3   :  { %v2374_v9 = vmul.f32 0.5, %v2373_v56 }
0x11d4   :  { %v2384_v24 = vmul.f32 %v2383_v16, %v2381_v20  ;;  %v2428_v2 = vmul.f32 %v2427_v15, %v2381_v20  ;;  %v3962_v20 = vld [vmem:[#allocation2 + $0x1d8] sm:$0xff] }
0x11d5   :  { %v2375_v28 = vsub.f32 1.5, %v2374_v9 }
0x11d6   :  { %v2387_v40 = vadd.f32 %v2386_v18, %v2384_v24  ;;  %v2431_v12 = vadd.f32 %v2430_v33, %v2428_v2  ;;  %v3960_v24 = vld [vmem:[#allocation2 + $0x1c8] sm:$0xff]  ;;  %v3959_v2 = vld [vmem:[#allocation2 + $0x1c0] sm:$0xff] }
0x11d7   :  { %v2376_v46 = vmul.f32 %v4171_v62, %v2375_v28 }
0x11d9   :  { %v2380_v31 = vsel %vm2379_vm8, %v4171_v62, %v2376_v46 }
0x11da   :  { %v2382_v1 = vmul.f32 %v2380_v31, %v2348_v11 }
0x11dc   :  { %v2385_v42 = vmul.f32 %v2383_v16, %v2382_v1  ;;  %v2429_v48 = vmul.f32 %v2427_v15, %v2382_v1  ;;  %v3955_v16 = vld [vmem:[#allocation2 + $0x180] sm:$0xff] }
0x11de   :  { %v2388_v39 = vadd.f32 %v2386_v18, %v2385_v42  ;;  %v2432_v52 = vadd.f32 %v2430_v33, %v2429_v48  ;;  %v3961_v33 = vld [vmem:[#allocation2 + $0x1d0] sm:$0xff]  ;;  %v73_v42 = vld [vmem:[%s5993_s5] sm:$0xff] }
0x11e0   :  { %v2394_v59 = vpack.c.bf16 %v2388_v39, %v2387_v40  ;;  %v2433_v0 = vpack.c.bf16 %v2432_v52, %v2431_v12 }
0x11e2   :  { %3853 = vmatmul.msk.bf16.vlgmr.msrb.gmra.mxu0 %vm594_vm5, %v2394_v59  ;;  %3862 = vmatmul.msk.bf16.vlgmr.msra.gmra.mxu2 %vm594_vm5, %v2433_v0 }
0x125f   :  { %v2420_v54 = vpop.f32.mrf.mxu0 }
0x1260   :  { %v2421_v44 = vadd.f32 %v2420_v54, %v2395_v57 }
0x1262   :  { %v2425_v55 = vpack.c.bf16 %v2421_v44, %v2421_v44  ;;  %v74_v44 = vld [vmem:[%s5993_s5 + $0x8] sm:$0xff] }
0x1264   :  { %v2478_v47 = vunpack.c.l.b16 %v2425_v55 }
0x1265   :  { %v2464_v58 = vpop.f32.mrf.mxu2 }
0x1266   :  { %v2465_v5 = vadd.f32 %v2464_v58, %v2439_v36 }
0x1267   :  { %v2422_v11 = vpop.f32.mrf.mxu0 }
0x1268   :  { %v2423_v8 = vadd.f32 %v2422_v11, %v2395_v57  ;;  %v2469_v34 = vpack.c.bf16 %v2465_v5, %v2465_v5 }
0x126a   :  { %v2426_v63 = vpack.c.bf16 %v2423_v8, %v2423_v8  ;;  %v2473_v29 = vunpack.c.l.b16 %v2469_v34 }
0x126c   :  { %v2479_v19 = vunpack.c.l.b16 %v2426_v63 }
0x126d   :  { %v2466_v41 = vpop.f32.mrf.mxu2 }
0x126e   :  { %v5491_v23 = vpack.c.b16 %v2479_v19, %v2478_v47  ;;  %v2467_v60 = vadd.f32 %v2466_v41, %v2439_v36 }
0x1270   :  { %v2470_v45 = vpack.c.bf16 %v2467_v60, %v2467_v60  ;;  %2673 = vrot.lane.b32.xlu0 %v5491_v23, %s4302_s30  ;;  %2576 = vrot.lane.b32.xlu1 %v5491_v23, %s4303_s10  ;;  %v2485_v38 = vsel %vm734_vm6, %v5491_v23, 0 }
0x1271   :  { %2494 = vmatpush.bf16.xpose.msra.mxu3 %v2485_v38 }
0x1272   :  { %v2474_v62 = vunpack.c.l.b16 %v2470_v45 }
0x1274   :  { %v2475_v3 = vpack.c.b16 %v2474_v62, %v2473_v29 }
0x1276   :  { %2574 = vrot.lane.b32.xlu2 %v2475_v3, %s4303_s10 }
0x1278   :  { %2671 = vrot.lane.b32.xlu0 %v2475_v3, %s4302_s30  ;;  %2770 = vrot.lane.b32.xlu1 %v5491_v23, %s4304_s11 }
0x1279   :  { %3863 = vmatmul.msk.bf16.vlgmr.msra.gmra.mxu3 %vm734_vm6, %v2475_v3 }
0x127e   :  { %2768 = vrot.lane.b32.xlu2 %v2475_v3, %s4304_s11 }
0x12d0   :  { %v2575_v15 = vpop.permute.xlu2 %2574 }
0x12d8   :  { %v2769_v1 = vpop.permute.xlu2 %2768 }
0x12e2   :  { %v2674_v56 = vpop.permute.xlu0 %2673  ;;  %v2577_v51 = vpop.permute.xlu1 %2576 }
0x12e3   :  { %v2679_v9 = vsel %vm734_vm6, %v2674_v56, 0  ;;  %v2582_v28 = vsel %vm734_vm6, %v2577_v51, 0 }
0x12e4   :  { %2591 = vmatpush.bf16.xpose.msra.mxu0 %v2582_v28  ;;  %2688 = vmatpush.bf16.xpose.msrb.mxu3 %v2679_v9 }
0x12ea   :  { %v2672_v46 = vpop.permute.xlu0 %2671  ;;  %v2771_v18 = vpop.permute.xlu1 %2770 }
0x12eb   :  { %v2776_v31 = vsel %vm734_vm6, %v2771_v18, 0  ;;  %3865 = vmatmul.msk.bf16.vlgmr.msra.gmra.mxu0 %vm734_vm6, %v2575_v15  ;;  %3867 = vmatmul.msk.bf16.vlgmr.msrb.gmra.mxu3 %vm734_vm6, %v2672_v46 }
0x12ec   :  { %2923 = vmatpush.bf16.msra.mxu3 %v3956_v30  ;;  %2785 = vmatpush.bf16.xpose.msrb.mxu0 %v2776_v31 }
0x12f0   :  { %2924 = vmatpush.bf16.msra.mxu3 %v3955_v16 }
0x12f4   :  { %3174 = vmatpush.bf16.xpose.msrb.mxu3 %v5232_v37  ;;  %3079 = vmatpush.bf16.msra.mxu0 %v3962_v20 }
0x12f8   :  { %3080 = vmatpush.bf16.msra.mxu0 %v3961_v33 }
0x12fb   :  { %3869 = vmatmul.msk.bf16.vlgmr.msrb.gmra.mxu0 %vm734_vm6, %v2769_v1 }
0x12fc   :  { %3081 = vmatpush.bf16.msra.mxu0 %v3960_v24  ;;  %v2496_v48 = vpop.f32.mrf.mxu3 }
0x12fd   :  { %v2501_v40 = vmul.f32 0.35355338, %v2496_v48 }
0x12ff   :  { %v2503_v12 = vadd.f32 %v2501_v40, %v73_v42 }
0x1300   :  { %3082 = vmatpush.bf16.msra.mxu0 %v3959_v2 }
0x1301   :  { %v2505_v37 = vsel %vm1327_vm12, %v2503_v12, -inf }
0x1302   :  { %2506 = vmax.xlane.f32.xlu2 %v2505_v37 }
0x1304   :  { %3263 = vmatpush.bf16.xpose.msrb.mxu0 %v5243_v27  ;;  %v2498_v39 = vpop.f32.mrf.mxu3 }
0x1305   :  { %v2502_v54 = vmul.f32 0.35355338, %v2498_v39 }
0x1307   :  { %v2504_v27 = vadd.f32 %v2502_v54, %v74_v44 }
0x1309   :  { %v2508_v63 = vsel %vm1327_vm12, %v2504_v27, -inf }
0x1368   :  { %v2593_v52 = vpop.f32.mrf.mxu0 }
0x1369   :  { %v2598_v59 = vmul.f32 0.35355338, %v2593_v52 }
0x136b   :  { %v2600_v0 = vadd.f32 %v2598_v59, %v73_v42 }
0x136d   :  { %v2602_v57 = vsel %vm1327_vm12, %v2600_v0, -inf }
0x136e   :  { %2603 = vmax.xlane.f32.xlu1 %v2602_v57  ;;  %v2690_v58 = vpop.f32.mrf.mxu3 }
0x136f   :  { %v2695_v8 = vmul.f32 0.35355338, %v2690_v58 }
0x1370   :  { %v2595_v36 = vpop.f32.mrf.mxu0 }
0x1371   :  { %v2599_v11 = vmul.f32 0.35355338, %v2595_v36  ;;  %v2697_v19 = vadd.f32 %v2695_v8, %v73_v42 }
0x1373   :  { %v2601_v55 = vadd.f32 %v2599_v11, %v74_v44  ;;  %v2699_v3 = vsel %vm1327_vm12, %v2697_v19, -inf }
0x1375   :  { %v2605_v5 = vsel %vm1327_vm12, %v2601_v55, -inf  ;;  %v2507_v41 = vpop.xlane.xlu2 %2506 }
0x1376   :  { %2606 = vmax.xlane.f32.xlu0 %v2605_v5  ;;  %2509 = vmax.xlane.f32.xlu1 %v2508_v63  ;;  %v2692_v60 = vpop.f32.mrf.mxu3  ;;  %v2511_v38 = vsub.f32 %v2503_v12, %v2507_v41 }
0x1377   :  { %v2696_v29 = vmul.f32 0.35355338, %v2692_v60 }
0x1378   :  { %v2787_v47 = vpop.f32.mrf.mxu0  ;;  %v2513_v30 = vmul.f32 1.442695, %v2511_v38 }
0x1379   :  { %v2792_v34 = vmul.f32 0.35355338, %v2787_v47  ;;  %v2698_v51 = vadd.f32 %v2696_v29, %v74_v44 }
0x137a   :  { %4172 = vpow2.f32 %v2513_v30 }
0x137b   :  { %v2794_v45 = vadd.f32 %v2792_v34, %v73_v42  ;;  %v2702_v15 = vsel %vm1327_vm12, %v2698_v51, -inf }
0x137d   :  { %v2796_v62 = vsel %vm1327_vm12, %v2794_v45, -inf }
0x137e   :  { %2797 = vmax.xlane.f32.xlu2 %v2796_v62  ;;  %2700 = vmax.xlane.f32.xlu1 %v2699_v3 }
0x1380   :  { %v2789_v56 = vpop.f32.mrf.mxu0  ;;  %v5527_v20 = vpop.eup %4172 }
0x1381   :  { %v2793_v9 = vmul.f32 0.35355338, %v2789_v56  ;;  %v2517_v46 = vsel %vm1327_vm12, %v5527_v20, 0.0 }
0x1383   :  { %v2795_v28 = vadd.f32 %v2793_v9, %v74_v44 }
0x1385   :  { %v2799_v16 = vsel %vm1327_vm12, %v2795_v28, -inf }
0x1386   :  { %2800 = vmax.xlane.f32.xlu0 %v2799_v16  ;;  %2703 = vmax.xlane.f32.xlu2 %v2702_v15 }
0x138e   :  { %2518 = vadd.xlane.f32.xlu2 %v2517_v46 }
0x139a   :  { %2651 = vrot.lane.b32.xlu0 %v5491_v23, %s4306_s13 }
0x13e1   :  { %v2604_v18 = vpop.xlane.xlu1 %2603 }
0x13e2   :  { %v2608_v2 = vsub.f32 %v2600_v0, %v2604_v18 }
0x13e4   :  { %v2610_v1 = vmul.f32 1.442695, %v2608_v2 }
0x13e9   :  { %v2510_v31 = vpop.xlane.xlu1 %2509  ;;  %v2607_v40 = vpop.xlane.xlu0 %2606 }
0x13ea   :  { %v2512_v33 = vsub.f32 %v2504_v27, %v2510_v31  ;;  %v2609_v52 = vsub.f32 %v2601_v55, %v2607_v40 }
0x13ec   :  { %v2515_v24 = vmul.f32 1.442695, %v2512_v33  ;;  %v2612_v54 = vmul.f32 1.442695, %v2609_v52 }
0x13ee   :  { %4174 = vpow2.f32 %v2515_v24 }
0x13ef   :  { %4176 = vpow2.f32 %v2610_v1 }
0x13f1   :  { %v2798_v42 = vpop.xlane.xlu2 %2797  ;;  %v2701_v48 = vpop.xlane.xlu1 %2700 }
0x13f2   :  { %v2705_v12 = vsub.f32 %v2697_v19, %v2701_v48  ;;  %v2802_v36 = vsub.f32 %v2794_v45, %v2798_v42 }
0x13f4   :  { %v2707_v37 = vmul.f32 1.442695, %v2705_v12  ;;  %v5533_v39 = vpop.eup %4174  ;;  %v2804_v63 = vmul.f32 1.442695, %v2802_v36 }
0x13f5   :  { %v2520_v59 = vsel %vm1327_vm12, %v5533_v39, 0.0  ;;  %v5537_v58 = vpop.eup %4176 }
0x13f6   :  { %4178 = vpow2.f32 %v2707_v37  ;;  %2521 = vadd.xlane.f32.xlu0 %v2520_v59  ;;  %v2614_v55 = vsel %vm1327_vm12, %v5537_v58, 0.0 }
0x13f7   :  { %4180 = vpow2.f32 %v2612_v54 }
0x13f9   :  { %v2704_v57 = vpop.xlane.xlu2 %2703  ;;  %v2801_v44 = vpop.xlane.xlu0 %2800 }
0x13fa   :  { %v2706_v0 = vsub.f32 %v2698_v51, %v2704_v57  ;;  %v2803_v8 = vsub.f32 %v2795_v28, %v2801_v44 }
0x13fc   :  { %v2709_v27 = vmul.f32 1.442695, %v2706_v0  ;;  %v5539_v11 = vpop.eup %4178  ;;  %v2806_v47 = vmul.f32 1.442695, %v2803_v8 }
0x13fd   :  { %v2711_v5 = vsel %vm1327_vm12, %v5539_v11, 0.0  ;;  %v5545_v19 = vpop.eup %4180 }
0x13fe   :  { %4182 = vpow2.f32 %v2709_v27  ;;  %2615 = vadd.xlane.f32.xlu0 %v2614_v55  ;;  %2712 = vadd.xlane.f32.xlu1 %v2711_v5  ;;  %v2617_v60 = vsel %vm1327_vm12, %v5545_v19, 0.0 }
0x13ff   :  { %4184 = vpow2.f32 %v2804_v63 }
0x1400   :  { %4186 = vpow2.f32 %v2806_v47 }
0x1401   :  { %v5569_v56 = vpop.xlane.xlu2 %2518 }
0x1402   :  { %vm2528_vm11 = vweird.f32 %v5569_v56 }
0x1404   :  { %v5547_v41 = vpop.eup %4182 }
0x1405   :  { %v2714_v34 = vsel %vm1327_vm12, %v5547_v41, 0.0  ;;  %v5553_v45 = vpop.eup %4184 }
0x1406   :  { %2715 = vadd.xlane.f32.xlu2 %v2714_v34  ;;  %2618 = vadd.xlane.f32.xlu1 %v2617_v60  ;;  %v5555_v38 = vpop.eup %4186  ;;  %v2808_v3 = vsel %vm1327_vm12, %v5553_v45, 0.0 }
0x1407   :  { %v2811_v62 = vsel %vm1327_vm12, %v5555_v38, 0.0 }
0x140c   :  { %v2652_v29 = vpop.permute.xlu0 %2651 }
0x140d   :  { %2664 = vmatpush.bf16.msrb.mxu2 %v2652_v29 }
0x140e   :  { %2812 = vadd.xlane.f32.xlu2 %v2811_v62  ;;  %2809 = vadd.xlane.f32.xlu1 %v2808_v3 }
0x1412   :  { %2748 = vrot.lane.b32.xlu0 %v5491_v23, %s4307_s14 }
0x1426   :  { %2845 = vrot.lane.b32.xlu2 %v5491_v23, %s4308_s2 }
0x1427   :  { %2554 = vrot.lane.b32.xlu1 %v5491_v23, %s4305_s12 }
0x1469   :  { %v5567_v30 = vpop.xlane.xlu0 %2521 }
0x1471   :  { %v2616_v51 = vpop.xlane.xlu0 %2615  ;;  %v5571_v9 = vpop.xlane.xlu1 %2712 }
0x1472   :  { %4188 = vrcp.f32 %v2616_v51  ;;  %v2629_v52 = vand.u32 2147483647, %v2616_v51  ;;  %v2631_v59 = vand.u32 2147483648, %v2616_v51  ;;  %vm2625_vm10 = vweird.f32 %v2616_v51 }
0x1473   :  { %4190 = vrcp.f32 %v5569_v56 }
0x1474   :  { %4192 = vrcp.f32 %v5567_v30  ;;  %vm2630_vm1 = vcmp.eq.f32.partialorder %v2629_v52, 8.507059e+37  ;;  %v2632_v63 = vor.u32 1.1754944e-38, %v2631_v59 }
0x1478   :  { %v4189_v28 = vpop.eup %4188 }
0x1479   :  { %v2621_v16 = vmul.f32 %v4189_v28, %v2616_v51  ;;  %v5575_v15 = vpop.xlane.xlu2 %2715  ;;  %v2619_v46 = vpop.xlane.xlu1 %2618  ;;  %vm2626_vm9 = vweird.f32 %v4189_v28 }
0x147a   :  { %v5577_v18 = vpop.eup %4190  ;;  %4194 = vrcp.f32 %v2619_v46  ;;  %vm5593_vm14 = vmor %vm2625_vm10, %vm2626_vm9  ;;  %v2646_v36 = vand.u32 2147483648, %v2619_v46  ;;  %v2644_v55 = vand.u32 2147483647, %v2619_v46  ;;  %vm2640_vm3 = vweird.f32 %v2619_v46 }
0x147b   :  { %v2622_v23 = vsub.f32 1.0, %v2621_v16  ;;  %v5579_v31 = vpop.eup %4192  ;;  %v2524_v33 = vmul.f32 %v5577_v18, %v5569_v56  ;;  %vm2529_vm0 = vweird.f32 %v5577_v18  ;;  %v2547_v16 = vand.u32 2147483647, %v5567_v30 }
0x147c   :  { %v2539_v2 = vmul.f32 %v5579_v31, %v5567_v30  ;;  %v2647_v51 = vor.u32 1.1754944e-38, %v2646_v36  ;;  %vm2645_vm2 = vcmp.eq.f32.partialorder %v2644_v55, 8.507059e+37  ;;  %vm2544_vm8 = vweird.f32 %v5579_v31  ;;  %vm5623_vm9 = vmor %vm2528_vm11, %vm2529_vm0 }
0x147d   :  { %v2623_v24 = vmul.f32 %v4189_v28, %v2622_v23  ;;  %v2525_v48 = vsub.f32 1.0, %v2524_v33  ;;  %vm2543_vm10 = vweird.f32 %v5567_v30 }
0x147e   :  { %v2540_v54 = vsub.f32 1.0, %v2539_v2  ;;  %vm5637_vm11 = vmor %vm2543_vm10, %vm2544_vm8 }
0x147f   :  { %v2624_v12 = vadd.f32 %v4189_v28, %v2623_v24  ;;  %v2526_v44 = vmul.f32 %v5577_v18, %v2525_v48 }
0x1480   :  { %v4195_v42 = vpop.eup %4194  ;;  %v2541_v47 = vmul.f32 %v5579_v31, %v2540_v54  ;;  %v2532_v54 = vand.u32 2147483647, %v5569_v56 }
0x1481   :  { %v5585_v1 = vpop.xlane.xlu2 %2812  ;;  %v5588_v40 = vpop.xlane.xlu1 %2809  ;;  %v2636_v37 = vmul.f32 %v4195_v42, %v2619_v46  ;;  %v2628_v27 = vsel %vm5593_vm14, %v4189_v28, %v2624_v12  ;;  %vm2641_vm15 = vweird.f32 %v4195_v42  ;;  %v2527_v62 = vadd.f32 %v5577_v18, %v2526_v44 }
0x1482   :  { %4196 = vrcp.f32 %v5585_v1  ;;  %v2633_v3 = vsel %vm2630_vm1, %v2632_v63, %v2628_v27  ;;  %vm2642_vm4 = vmor %vm2640_vm3, %vm2641_vm15  ;;  %v2549_v46 = vand.u32 2147483648, %v5567_v30  ;;  %v2542_v48 = vadd.f32 %v5579_v31, %v2541_v47 }
0x1483   :  { %v2637_v57 = vsub.f32 1.0, %v2636_v37  ;;  %4198 = vrcp.f32 %v5588_v40  ;;  %v2634_v12 = vmul.f32 %v5537_v58, %v2633_v3  ;;  %v2531_v58 = vsel %vm5623_vm9, %v5577_v18, %v2527_v62 }
0x1484   :  { %4200 = vrcp.f32 %v5575_v15  ;;  %vm5641_vm14 = vcmp.eq.f32.partialorder %v2547_v16, 8.507059e+37  ;;  %v2546_v30 = vsel %vm5637_vm11, %v5579_v31, %v2542_v48  ;;  %vm2834_vm1 = vweird.f32 %v5585_v1  ;;  %v4260_v48 = vld [vmem:[#allocation2 + $0xa0] sm:$0xff] }
0x1485   :  { %v2638_v8 = vmul.f32 %v4195_v42, %v2637_v57  ;;  %4202 = vrcp.f32 %v5571_v9  ;;  %v2840_v63 = vand.u32 2147483648, %v5585_v1  ;;  %v2838_v62 = vand.u32 2147483647, %v5585_v1 }
0x1486   :  { %v2823_v3 = vand.u32 2147483647, %v5588_v40  ;;  %vm2533_vm8 = vcmp.eq.f32.partialorder %v2532_v54, 8.507059e+37 }
0x1487   :  { %v2639_v34 = vadd.f32 %v4195_v42, %v2638_v8  ;;  %v2550_v8 = vor.u32 1.1754944e-38, %v2549_v46  ;;  %vm2839_vm9 = vcmp.eq.f32.partialorder %v2838_v62, 8.507059e+37 }
0x1488   :  { %v5599_v5 = vpop.eup %4196  ;;  %vm2824_vm10 = vcmp.eq.f32.partialorder %v2823_v3, 8.507059e+37 }
0x1489   :  { %v2830_v60 = vmul.f32 %v5599_v5, %v5585_v1  ;;  %v2846_v29 = vpop.permute.xlu2 %2845  ;;  %v4199_v28 = vpop.eup %4198  ;;  %v2643_v23 = vsel %vm2642_vm4, %v4195_v42, %v2639_v34  ;;  %vm2835_vm15 = vweird.f32 %v5599_v5  ;;  %v2825_v34 = vand.u32 2147483648, %v5588_v40 }
0x148a   :  { %2858 = vmatpush.bf16.msra.mxu2 %v2846_v29  ;;  %v2648_v24 = vsel %vm2645_vm2, %v2647_v51, %v2643_v23  ;;  %v2815_v2 = vmul.f32 %v4199_v28, %v5588_v40  ;;  %v5617_v59 = vpop.eup %4200  ;;  %vm2820_vm0 = vweird.f32 %v4199_v28  ;;  %vm5658_vm3 = vmor %vm2834_vm1, %vm2835_vm15  ;;  %vm2819_vm4 = vweird.f32 %v5588_v40 }
0x148b   :  { %v2831_v33 = vsub.f32 1.0, %v2830_v60  ;;  %v2649_v37 = vmul.f32 %v5545_v19, %v2648_v24  ;;  %v2534_v19 = vand.u32 2147483648, %v5569_v56  ;;  %v5633_v0 = vpop.eup %4202  ;;  %v2733_v56 = vmul.f32 %v5617_v59, %v5575_v15  ;;  %v4259_v60 = vld [vmem:[#allocation2 + $0xa8] sm:$0xff]  ;;  %vm5668_vm2 = vmor %vm2819_vm4, %vm2820_vm0 }
0x148c   :  { %v2816_v57 = vsub.f32 1.0, %v2815_v2  ;;  %v2718_v31 = vmul.f32 %v5633_v0, %v5571_v9  ;;  %v2551_v16 = vsel %vm5641_vm14, %v2550_v8, %v2546_v30  ;;  %v2841_v40 = vor.u32 1.1754944e-38, %v2840_v63  ;;  %v3957_v8 = vld [vmem:[#allocation2 + $0x1a0] sm:$0xff] }
0x148d   :  { %v2832_v52 = vmul.f32 %v5599_v5, %v2831_v33  ;;  %v2650_v44 = vpack.c.bf16 %v2649_v37, %v2634_v12  ;;  %v2535_v51 = vor.u32 1.1754944e-38, %v2534_v19  ;;  %v2734_v33 = vsub.f32 1.0, %v2733_v56  ;;  %v2749_v19 = vpop.permute.xlu0 %2748 }
0x148e   :  { %v2817_v18 = vmul.f32 %v4199_v28, %v2816_v57  ;;  %v2826_v2 = vor.u32 1.1754944e-38, %v2825_v34  ;;  %v2552_v12 = vmul.f32 %v5533_v39, %v2551_v16  ;;  %v2719_v37 = vsub.f32 1.0, %v2718_v31 }
0x148f   :  { %v2833_v55 = vadd.f32 %v5599_v5, %v2832_v52  ;;  %3866 = vmatmul.msk.bf16.vlgmr.msrb.gmra.mxu2 %vm1327_vm12, %v2650_v44  ;;  %v2536_v24 = vsel %vm2533_vm8, %v2535_v51, %v2531_v58  ;;  %v2735_v57 = vmul.f32 %v5617_v59, %v2734_v33  ;;  %vm2738_vm11 = vweird.f32 %v5617_v59 }
0x1490   :  { %v2818_v47 = vadd.f32 %v4199_v28, %v2817_v18  ;;  %3149 = vmatpush.bf16.msrb.mxu2 %v4259_v60  ;;  %v2537_v54 = vmul.f32 %v5527_v20, %v2536_v24  ;;  %v2720_v58 = vmul.f32 %v5633_v0, %v2719_v37  ;;  %vm2723_vm14 = vweird.f32 %v5633_v0 }
0x1491   :  { %v2837_v46 = vsel %vm5658_vm3, %v5599_v5, %v2833_v55  ;;  %v2736_v27 = vadd.f32 %v5617_v59, %v2735_v57  ;;  %v2743_v20 = vand.u32 2147483648, %v5575_v15  ;;  %vm2737_vm15 = vweird.f32 %v5575_v15 }
0x1492   :  { %v2822_v1 = vsel %vm5668_vm2, %v4199_v28, %v2818_v47  ;;  %v2842_v52 = vsel %vm2839_vm9, %v2841_v40, %v2837_v46  ;;  %v3958_v28 = vld [vmem:[#allocation2 + $0x1a8] sm:$0xff]  ;;  %v2553_v39 = vpack.c.bf16 %v2552_v12, %v2537_v54  ;;  %v2721_v18 = vadd.f32 %v5633_v0, %v2720_v58  ;;  %vm2739_vm0 = vmor %vm2737_vm15, %vm2738_vm11 }
0x1493   :  { %v2827_v42 = vsel %vm2824_vm10, %v2826_v2, %v2822_v1  ;;  %v2843_v44 = vmul.f32 %v5555_v38, %v2842_v52  ;;  %v2728_v30 = vand.u32 2147483648, %v5571_v9  ;;  %vm2722_vm1 = vweird.f32 %v5571_v9  ;;  %v5716_v58 = vld [vmem:[%s5995_s7 + $0x28] sm:$0xff] }
0x1494   :  { %3150 = vmatpush.bf16.msrb.mxu2 %v4260_v48  ;;  %v2828_v36 = vmul.f32 %v5553_v45, %v2827_v42  ;;  %v2741_v45 = vand.u32 2147483647, %v5575_v15  ;;  %v2726_v56 = vand.u32 2147483647, %v5571_v9  ;;  %v2740_v55 = vsel %vm2739_vm0, %v5617_v59, %v2736_v27  ;;  %vm2724_vm3 = vmor %vm2722_vm1, %vm2723_vm14 }
0x1495   :  { %v2744_v63 = vor.u32 1.1754944e-38, %v2743_v20  ;;  %v2725_v47 = vsel %vm2724_vm3, %v5633_v0, %v2721_v18  ;;  %v2729_v15 = vor.u32 1.1754944e-38, %v2728_v30 }
0x1496   :  { %v2844_v38 = vpack.c.bf16 %v2843_v44, %v2828_v36  ;;  %vm2742_vm4 = vcmp.eq.f32.partialorder %v2741_v45, 8.507059e+37  ;;  %vm2727_vm2 = vcmp.eq.f32.partialorder %v2726_v56, 8.507059e+37  ;;  %v2901_v44 = vperm.slane %v5716_v58, 0 }
0x1497   :  { %v2745_v34 = vsel %vm2742_vm4, %v2744_v63, %v2740_v55  ;;  %v2730_v60 = vsel %vm2727_vm2, %v2729_v15, %v2725_v47 }
0x1498   :  { %v2746_v31 = vmul.f32 %v5547_v41, %v2745_v34  ;;  %v2731_v9 = vmul.f32 %v5539_v11, %v2730_v60 }
0x1499   :  { %v2555_v5 = vpop.permute.xlu1 %2554 }
0x149a   :  { %2567 = vmatpush.bf16.msrb.mxu1 %v2555_v5  ;;  %v2747_v29 = vpack.c.bf16 %v2746_v31, %v2731_v9 }
0x149d   :  { %3864 = vmatmul.msk.bf16.vlgmr.msrb.gmra.mxu1 %vm1327_vm12, %v2553_v39 }
0x149e   :  { %2761 = vmatpush.bf16.msra.mxu1 %v2749_v19 }
0x149f   :  { %3870 = vmatmul.msk.bf16.vlgmr.msra.gmra.mxu2 %vm1327_vm12, %v2844_v38 }
0x14a0   :  { %3333 = vmatpush.bf16.msra.mxu2 %v5371_v22 }
0x14a2   :  { %3011 = vmatpush.bf16.msrb.mxu1 %v3958_v28 }
0x14a6   :  { %3012 = vmatpush.bf16.msrb.mxu1 %v3957_v8 }
0x14ad   :  { %3868 = vmatmul.msk.bf16.vlgmr.msra.gmra.mxu1 %vm1327_vm12, %v2747_v29 }
0x14ae   :  { %3244 = vmatpush.bf16.msra.mxu1 %v5299_v14 }
0x1512   :  { %v2666_v59 = vpop.f32.mrf.mxu2 }
0x151a   :  { %v2569_v62 = vpop.f32.mrf.mxu1  ;;  %v2668_v22 = vpop.f32.mrf.mxu2 }
0x151b   :  { %v4010_v3 = vpack.i.bf16 %v2668_v22, %v2666_v59 }
0x151d   :  { %4011 = vrot.lane.b32.xlu0 %v4010_v3, %s4309_s19 }
0x1522   :  { %v2571_v0 = vpop.f32.mrf.mxu1  ;;  %v2860_v51 = vpop.f32.mrf.mxu2 }
0x152a   :  { %v2763_v16 = vpop.f32.mrf.mxu1  ;;  %v2862_v23 = vpop.f32.mrf.mxu2 }
0x152b   :  { %v4020_v33 = vpack.i.bf16 %v2862_v23, %v2860_v51 }
0x152d   :  { %4021 = vrot.lane.b32.xlu1 %v4020_v33, %s4311_s20 }
0x1532   :  { %v2765_v41 = vpop.f32.mrf.mxu1 }
0x1533   :  { %v4015_v11 = vpack.i.bf16 %v2765_v41, %v2763_v16 }
0x1535   :  { %4016 = vrot.lane.b32.xlu0 %v4015_v11, %s4310_s6 }
0x158f   :  { %v4012_v46 = vpop.permute.xlu0 %4011 }
0x1590   :  { %v4014_v1 = vunpack.i.h.bf16 %v4012_v46  ;;  %v4013_v14 = vunpack.i.l.bf16 %v4012_v46 }
0x1592   :  { %v2889_v12 = vsel %vm734_vm6, %v2569_v62, %v4013_v14  ;;  %v2890_v37 = vsel %vm734_vm6, %v2571_v0, %v4014_v1 }
0x159f   :  { %v4022_v24 = vpop.permute.xlu1 %4021 }
0x15a0   :  { %v4024_v52 = vunpack.i.h.bf16 %v4022_v24  ;;  %v4023_v42 = vunpack.i.l.bf16 %v4022_v24  ;;  %v2977_v24 = vperm.slane %v5481_v61, 4 }
0x15a7   :  { %v4017_v40 = vpop.permute.xlu0 %4016 }
0x15a8   :  { %v4019_v2 = vunpack.i.h.bf16 %v4017_v40  ;;  %v4018_v48 = vunpack.i.l.bf16 %v4017_v40 }
0x15aa   :  { %v2892_v54 = vsel %vm1327_vm12, %v2890_v37, %v4019_v2  ;;  %v2891_v57 = vsel %vm1327_vm12, %v2889_v12, %v4018_v48  ;;  %v2980_v12 = vperm.slane %v5481_v61, 5 }
0x15ab   :  { %v2893_v5 = vsel %vm1330_vm13, %v2891_v57, %v4023_v42  ;;  %v2894_v19 = vsel %vm1330_vm13, %v2892_v54, %v4024_v52 }
0x15ac   :  { %v2895_v28 = vpack.c.bf16 %v2894_v19, %v2893_v5  ;;  %v2989_v19 = vperm.slane %v5716_v58, 1 }
0x15ae   :  { %3879 = vmatmul.msk.bf16.vlgmr.msra.gmra.mxu3 %vm594_vm5, %v2895_v28 }
0x15af   :  { %3352 = vmatpush.bf16.xpose.msra.mxu3 %v5240_v49 }
0x1631   :  { %v2926_v36 = vpop.f32.mrf.mxu3 }
0x1632   :  { %v2927_v39 = vadd.f32 %v2926_v36, %v2901_v44 }
0x1634   :  { %v5720_v27 = vadd.f32 %v2927_v39, %v5460_v35 }
0x1636   :  { %v2933_v20 = vsel %vm594_vm5, %v5720_v27, 0.0 }
0x1637   :  { %2934 = vadd.xlane.f32.xlu2 %v2933_v20 }
0x1639   :  { %v2928_v8 = vpop.f32.mrf.mxu3 }
0x163a   :  { %v2929_v18 = vadd.f32 %v2928_v8, %v2901_v44 }
0x163c   :  { %v5725_v49 = vadd.f32 %v2929_v18, %v5466_v4 }
0x163e   :  { %v2936_v45 = vsel %vm594_vm5, %v5725_v49, 0.0 }
0x163f   :  { %2937 = vadd.xlane.f32.xlu0 %v2936_v45 }
0x16aa   :  { %v2935_v38 = vpop.xlane.xlu2 %2934 }
0x16ab   :  { %v2939_v30 = vmul.f32 %v2935_v38, %v4745_v25 }
0x16ad   :  { %v2941_v56 = vsub.f32 %v5720_v27, %v2939_v30 }
0x16af   :  { %v2943_v35 = vmul.f32 %v2941_v56, %v2941_v56 }
0x16b1   :  { %v2945_v55 = vsel %vm594_vm5, %v2943_v35, 0.0 }
0x16b2   :  { %v2938_v63 = vpop.xlane.xlu0 %2937  ;;  %2946 = vadd.xlane.f32.xlu1 %v2945_v55 }
0x16b3   :  { %v2940_v47 = vmul.f32 %v2938_v63, %v4745_v25 }
0x16b5   :  { %v2942_v15 = vsub.f32 %v5725_v49, %v2940_v47 }
0x16b7   :  { %v2944_v4 = vmul.f32 %v2942_v15, %v2942_v15 }
0x16b9   :  { %v2948_v34 = vsel %vm594_vm5, %v2944_v4, 0.0 }
0x16ba   :  { %2949 = vadd.xlane.f32.xlu2 %v2948_v34 }
0x1725   :  { %v2947_v60 = vpop.xlane.xlu1 %2946 }
0x1726   :  { %v2951_v31 = vmul.f32 %v2947_v60, %v4745_v25 }
0x1728   :  { %v2953_v9 = vadd.f32 1e-05, %v2951_v31 }
0x172a   :  { %4204 = vrsqrt.f32 %v2953_v9  ;;  %vm2961_vm9 = vweird.f32 %v2953_v9 }
0x172d   :  { %v2950_v29 = vpop.xlane.xlu2 %2949 }
0x172e   :  { %v2952_v59 = vmul.f32 %v2950_v29, %v4745_v25  ;;  %v3047_v29 = vperm.slane %v5716_v58, 2 }
0x1730   :  { %v4205_v62 = vpop.eup %4204  ;;  %v2954_v22 = vadd.f32 1e-05, %v2952_v59 }
0x1731   :  { %v2956_v3 = vmul.f32 %v4205_v62, %v2953_v9  ;;  %vm2962_vm8 = vweird.f32 %v4205_v62 }
0x1732   :  { %4206 = vrsqrt.f32 %v2954_v22  ;;  %vm2963_vm10 = vmor %vm2961_vm9, %vm2962_vm8  ;;  %vm2971_vm14 = vweird.f32 %v2954_v22 }
0x1733   :  { %v2957_v0 = vmul.f32 %v4205_v62, %v2956_v3 }
0x1735   :  { %v2958_v51 = vmul.f32 0.5, %v2957_v0 }
0x1737   :  { %v2959_v16 = vsub.f32 1.5, %v2958_v51 }
0x1738   :  { %v4207_v23 = vpop.eup %4206 }
0x1739   :  { %v2960_v33 = vmul.f32 %v4205_v62, %v2959_v16  ;;  %v2966_v41 = vmul.f32 %v4207_v23, %v2954_v22  ;;  %vm2972_vm11 = vweird.f32 %v4207_v23 }
0x173a   :  { %vm2973_vm15 = vmor %vm2971_vm14, %vm2972_vm11 }
0x173b   :  { %v2967_v11 = vmul.f32 %v4207_v23, %v2966_v41  ;;  %v2964_v46 = vsel %vm2963_vm10, %v4205_v62, %v2960_v33 }
0x173c   :  { %v2975_v40 = vmul.f32 %v2964_v46, %v2941_v56 }
0x173d   :  { %v2968_v1 = vmul.f32 0.5, %v2967_v11 }
0x173e   :  { %v2978_v37 = vmul.f32 %v2977_v24, %v2975_v40 }
0x173f   :  { %v2969_v14 = vsub.f32 1.5, %v2968_v1 }
0x1740   :  { %v2981_v54 = vadd.f32 %v2980_v12, %v2978_v37 }
0x1741   :  { %v2970_v2 = vmul.f32 %v4207_v23, %v2969_v14 }
0x1743   :  { %v2974_v48 = vsel %vm2973_vm15, %v4207_v23, %v2970_v2 }
0x1744   :  { %v2976_v52 = vmul.f32 %v2974_v48, %v2942_v15 }
0x1746   :  { %v2979_v42 = vmul.f32 %v2977_v24, %v2976_v52 }
0x1748   :  { %v2982_v57 = vadd.f32 %v2980_v12, %v2979_v42 }
0x174a   :  { %v2983_v5 = vpack.c.bf16 %v2982_v57, %v2981_v54 }
0x174c   :  { %3888 = vmatmul.msk.bf16.vlgmr.msrb.gmra.mxu1 %vm594_vm5, %v2983_v5 }
0x174d   :  { %3422 = vmatpush.bf16.msrb.mxu1 %v5380_v53 }
0x17c9   :  { %v3014_v28 = vpop.f32.mrf.mxu1 }
0x17ca   :  { %v3015_v44 = vadd.f32 %v3014_v28, %v2989_v19 }
0x17cc   :  { %v3019_v36 = vmul.f32 %v3015_v44, %v3015_v44 }
0x17ce   :  { %v3021_v39 = vmul.f32 %v3019_v36, %v3015_v44 }
0x17d0   :  { %v3023_v20 = vmul.f32 0.044715, %v3021_v39 }
0x17d1   :  { %v3016_v8 = vpop.f32.mrf.mxu1 }
0x17d2   :  { %v3025_v18 = vadd.f32 %v3023_v20, %v3015_v44  ;;  %v3017_v61 = vadd.f32 %v3016_v8, %v2989_v19 }
0x17d4   :  { %v3027_v45 = vmul.f32 0.7978846, %v3025_v18  ;;  %v3020_v38 = vmul.f32 %v3017_v61, %v3017_v61 }
0x17d6   :  { %v3022_v30 = vmul.f32 %v3020_v38, %v3017_v61  ;;  %4208 = vtanh.f32 %v3027_v45 }
0x17d8   :  { %v3024_v56 = vmul.f32 0.044715, %v3022_v30 }
0x17da   :  { %v3026_v35 = vadd.f32 %v3024_v56, %v3017_v61 }
0x17dc   :  { %v3028_v55 = vmul.f32 0.7978846, %v3026_v35  ;;  %v4209_v63 = vpop.eup %4208 }
0x17dd   :  { %v3031_v53 = vadd.f32 1.0, %v4209_v63 }
0x17de   :  { %4210 = vtanh.f32 %v3028_v55 }
0x17df   :  { %v3033_v15 = vmul.f32 0.5, %v3031_v53 }
0x17e1   :  { %v3035_v60 = vmul.f32 %v3033_v15, %v3015_v44 }
0x17e4   :  { %v4211_v47 = vpop.eup %4210 }
0x17e5   :  { %v3032_v4 = vadd.f32 1.0, %v4211_v47 }
0x17e7   :  { %v3034_v34 = vmul.f32 0.5, %v3032_v4 }
0x17e9   :  { %v3036_v31 = vmul.f32 %v3034_v34, %v3017_v61 }
0x17eb   :  { %v3037_v9 = vpack.c.bf16 %v3036_v31, %v3035_v60 }
0x17ed   :  { %3905 = vmatmul.msk.bf16.vlgmr.msra.gmra.mxu0 %vm1510_vm7, %v3037_v9 }
0x17ee   :  { %3441 = vmatpush.bf16.xpose.msra.mxu0 %v5257_v26 }
0x186a   :  { %v3084_v59 = vpop.f32.mrf.mxu0 }
0x186b   :  { %v3085_v62 = vadd.f32 %v3084_v59, %v3047_v29  ;;  %v4263_v59 = vld [vmem:[#allocation2 + $0x138] sm:$0xff] }
0x186d   :  { %v5746_v22 = vadd.f32 %v3085_v62, %v5720_v27  ;;  %v4264_v62 = vld [vmem:[#allocation2 + $0x130] sm:$0xff] }
0x186f   :  { %v3091_v3 = vsel %vm594_vm5, %v5746_v22, 0.0 }
0x1870   :  { %3092 = vadd.xlane.f32.xlu0 %v3091_v3  ;;  %v4265_v3 = vld [vmem:[#allocation2 + $0x128] sm:$0xff] }
0x1872   :  { %v3086_v0 = vpop.f32.mrf.mxu0 }
0x1873   :  { %v3087_v51 = vadd.f32 %v3086_v0, %v3047_v29  ;;  %v4266_v0 = vld [vmem:[#allocation2 + $0x120] sm:$0xff] }
0x1875   :  { %v5751_v16 = vadd.f32 %v3087_v51, %v5725_v49 }
0x1877   :  { %v3094_v23 = vsel %vm594_vm5, %v5751_v16, 0.0 }
0x1878   :  { %3095 = vadd.xlane.f32.xlu1 %v3094_v23 }
0x18e3   :  { %v3093_v26 = vpop.xlane.xlu0 %3092 }
0x18e4   :  { %v3097_v58 = vmul.f32 %v3093_v26, %v4745_v25 }
0x18e6   :  { %v3099_v33 = vsub.f32 %v5746_v22, %v3097_v58  ;;  %v4267_v58 = vld [vmem:[%s5992_s4] sm:$0xff] }
0x18e8   :  { %v3101_v27 = vmul.f32 %v3099_v33, %v3099_v33 }
0x18ea   :  { %v3103_v41 = vsel %vm594_vm5, %v3101_v27, 0.0 }
0x18eb   :  { %v3096_v11 = vpop.xlane.xlu1 %3095  ;;  %3104 = vadd.xlane.f32.xlu2 %v3103_v41 }
0x18ec   :  { %v3098_v46 = vmul.f32 %v3096_v11, %v4745_v25 }
0x18ee   :  { %v3100_v1 = vsub.f32 %v5751_v16, %v3098_v46 }
0x18f0   :  { %v3102_v49 = vmul.f32 %v3100_v1, %v3100_v1 }
0x18f2   :  { %v3106_v14 = vsel %vm594_vm5, %v3102_v49, 0.0 }
0x18f3   :  { %3107 = vadd.xlane.f32.xlu0 %v3106_v14 }
0x195e   :  { %v3105_v24 = vpop.xlane.xlu2 %3104 }
0x195f   :  { %v3109_v40 = vmul.f32 %v3105_v24, %v4745_v25 }
0x1961   :  { %v3111_v2 = vadd.f32 1e-05, %v3109_v40 }
0x1963   :  { %4212 = vrsqrt.f32 %v3111_v2  ;;  %vm3119_vm1 = vweird.f32 %v3111_v2 }
0x1966   :  { %v3108_v48 = vpop.xlane.xlu0 %3107 }
0x1967   :  { %v3110_v12 = vmul.f32 %v3108_v48, %v4745_v25 }
0x1969   :  { %v4213_v37 = vpop.eup %4212  ;;  %v3112_v52 = vadd.f32 1e-05, %v3110_v12 }
0x196a   :  { %v3114_v42 = vmul.f32 %v4213_v37, %v3111_v2  ;;  %vm3120_vm0 = vweird.f32 %v4213_v37  ;;  %v4268_v2 = vld [vmem:[%s5992_s4 + $0x8] sm:$0xff] }
0x196b   :  { %4214 = vrsqrt.f32 %v3112_v52  ;;  %vm3121_vm3 = vmor %vm3119_vm1, %vm3120_vm0  ;;  %vm3129_vm2 = vweird.f32 %v3112_v52 }
0x196c   :  { %v3115_v54 = vmul.f32 %v4213_v37, %v3114_v42 }
0x196e   :  { %v3116_v57 = vmul.f32 0.5, %v3115_v54 }
0x1970   :  { %v3117_v5 = vsub.f32 1.5, %v3116_v57 }
0x1971   :  { %v4215_v19 = vpop.eup %4214 }
0x1972   :  { %v3118_v28 = vmul.f32 %v4213_v37, %v3117_v5  ;;  %v3124_v44 = vmul.f32 %v4215_v19, %v3112_v52  ;;  %vm3130_vm4 = vweird.f32 %v4215_v19 }
0x1973   :  { %vm3131_vm8 = vmor %vm3129_vm2, %vm3130_vm4 }
0x1974   :  { %v3125_v36 = vmul.f32 %v4215_v19, %v3124_v44  ;;  %v3122_v39 = vsel %vm3121_vm3, %v4213_v37, %v3118_v28 }
0x1975   :  { %v3133_v18 = vmul.f32 %v3122_v39, %v3099_v33 }
0x1976   :  { %v3126_v20 = vmul.f32 0.5, %v3125_v36 }
0x1977   :  { %v3135_v38 = vmul.f32 %v3133_v18, %v5211_v13 }
0x1978   :  { %v3127_v8 = vsub.f32 1.5, %v3126_v20 }
0x1979   :  { %v3137_v35 = vadd.f32 %v3135_v38, %v5215_v6 }
0x197a   :  { %v3128_v61 = vmul.f32 %v4215_v19, %v3127_v8 }
0x197c   :  { %v3132_v45 = vsel %vm3131_vm8, %v4215_v19, %v3128_v61 }
0x197d   :  { %v3134_v30 = vmul.f32 %v3132_v45, %v3100_v1 }
0x197f   :  { %v3136_v56 = vmul.f32 %v3134_v30, %v5211_v13 }
0x1981   :  { %v3138_v55 = vadd.f32 %v3136_v56, %v5215_v6  ;;  %v4261_v6 = vld [vmem:[#allocation2 + $0xe8] sm:$0xff] }
0x1983   :  { %v3139_v63 = vpack.c.bf16 %v3138_v55, %v3137_v35 }
0x1985   :  { %3906 = vmatmul.msk.bf16.vlgmr.msrb.gmra.mxu2 %vm594_vm5, %v3139_v63 }
0x1986   :  { %3511 = vmatpush.bf16.msrb.mxu2 %v5373_v32  ;;  %v4262_v32 = vld [vmem:[#allocation2 + $0xe0] sm:$0xff] }
0x1a08   :  { %v3152_v53 = vpop.f32.mrf.mxu2 }
0x1a09   :  { %v3153_v47 = vadd.f32 %v3152_v53, %v5236_v7 }
0x1a0b   :  { %v3157_v4 = vpack.c.bf16 %v3153_v47, %v3153_v47 }
0x1a0d   :  { %v3161_v31 = vunpack.c.l.b16 %v3157_v4 }
0x1a10   :  { %v3154_v15 = vpop.f32.mrf.mxu2 }
0x1a11   :  { %v3155_v34 = vadd.f32 %v3154_v15, %v5236_v7 }
0x1a13   :  { %v3158_v60 = vpack.c.bf16 %v3155_v34, %v3155_v34 }
0x1a15   :  { %v3162_v9 = vunpack.c.l.b16 %v3158_v60 }
0x1a17   :  { %v3163_v13 = vpack.c.b16 %v3162_v9, %v3161_v31 }
0x1a19   :  { %3429 = vrot.lane.b32.xlu0 %v3163_v13, %s4304_s11  ;;  %3340 = vrot.lane.b32.xlu2 %v3163_v13, %s4302_s30 }
0x1a1a   :  { %3251 = vrot.lane.b32.xlu1 %v3163_v13, %s4303_s10  ;;  %3907 = vmatmul.msk.bf16.vlgmr.msrb.gmra.mxu3 %vm734_vm6, %v3163_v13 }
0x1a1b   :  { %3558 = vmatpush.bf16.msrb.mxu3 %v4261_v6 }
0x1a1f   :  { %3559 = vmatpush.bf16.msrb.mxu3 %v4262_v32 }
0x1a73   :  { %v3341_v29 = vpop.permute.xlu2 %3340 }
0x1a74   :  { %3911 = vmatmul.msk.bf16.vlgmr.msra.gmra.mxu3 %vm734_vm6, %v3341_v29 }
0x1a8b   :  { %v3430_v51 = vpop.permute.xlu0 %3429 }
0x1a8c   :  { %v3252_v7 = vpop.permute.xlu1 %3251 }
0x1a8d   :  { %3909 = vmatmul.msk.bf16.vlgmr.msrb.gmra.mxu0 %vm734_vm6, %v3252_v7 }
0x1a8e   :  { %3660 = vmatpush.bf16.msrb.mxu0 %v4263_v59 }
0x1a92   :  { %3661 = vmatpush.bf16.msrb.mxu0 %v4264_v62 }
0x1a96   :  { %3662 = vmatpush.bf16.msrb.mxu0 %v4265_v3 }
0x1a9a   :  { %3663 = vmatpush.bf16.msrb.mxu0 %v4266_v0 }
0x1a9d   :  { %v3176_v23 = vpop.f32.mrf.mxu3  ;;  %3913 = vmatmul.msk.bf16.vlgmr.msra.gmra.mxu0 %vm734_vm6, %v3430_v51 }
0x1a9e   :  { %v3181_v26 = vmul.f32 0.35355338, %v3176_v23 }
0x1aa0   :  { %v3183_v33 = vadd.f32 %v4267_v58, %v3181_v26 }
0x1aa2   :  { %v3185_v27 = vsel %vm1327_vm12, %v3183_v33, -inf }
0x1aa3   :  { %3186 = vmax.xlane.f32.xlu0 %v3185_v27 }
0x1aa5   :  { %v3178_v41 = vpop.f32.mrf.mxu3 }
0x1aa6   :  { %v3182_v49 = vmul.f32 0.35355338, %v3178_v41 }
0x1aa8   :  { %v3184_v48 = vadd.f32 %v4268_v2, %v3182_v49 }
0x1aaa   :  { %v3188_v54 = vsel %vm1327_vm12, %v3184_v48, -inf }
0x1af7   :  { %v3354_v24 = vpop.f32.mrf.mxu3 }
0x1af8   :  { %v3359_v52 = vmul.f32 0.35355338, %v3354_v24 }
0x1afa   :  { %v3361_v5 = vadd.f32 %v4267_v58, %v3359_v52 }
0x1afc   :  { %v3363_v18 = vsel %vm1327_vm12, %v3361_v5, -inf }
0x1aff   :  { %v3356_v44 = vpop.f32.mrf.mxu3 }
0x1b00   :  { %v3360_v20 = vmul.f32 0.35355338, %v3356_v44 }
0x1b02   :  { %v3362_v38 = vadd.f32 %v4268_v2, %v3360_v20 }
0x1b04   :  { %v3366_v55 = vsel %vm1327_vm12, %v3362_v38, -inf }
0x1b0a   :  { %v3265_v11 = vpop.f32.mrf.mxu0 }
0x1b0b   :  { %v3270_v46 = vmul.f32 0.35355338, %v3265_v11 }
0x1b0d   :  { %v3272_v1 = vadd.f32 %v4267_v58, %v3270_v46 }
0x1b0f   :  { %v3274_v14 = vsel %vm1327_vm12, %v3272_v1, -inf }
0x1b10   :  { %3275 = vmax.xlane.f32.xlu2 %v3274_v14 }
0x1b12   :  { %v3267_v40 = vpop.f32.mrf.mxu0 }
0x1b13   :  { %v3271_v12 = vmul.f32 0.35355338, %v3267_v40 }
0x1b15   :  { %v3273_v37 = vadd.f32 %v4268_v2, %v3271_v12 }
0x1b16   :  { %v3187_v19 = vpop.xlane.xlu0 %3186 }
0x1b17   :  { %v3277_v42 = vsel %vm1327_vm12, %v3273_v37, -inf  ;;  %v3191_v39 = vsub.f32 %v3183_v33, %v3187_v19 }
0x1b18   :  { %3278 = vmax.xlane.f32.xlu1 %v3277_v42  ;;  %3189 = vmax.xlane.f32.xlu2 %v3188_v54 }
0x1b19   :  { %v3193_v61 = vmul.f32 1.442695, %v3191_v39 }
0x1b1a   :  { %v3443_v57 = vpop.f32.mrf.mxu0 }
0x1b1b   :  { %v3448_v28 = vmul.f32 0.35355338, %v3443_v57  ;;  %4216 = vpow2.f32 %v3193_v61 }
0x1b1d   :  { %v3450_v36 = vadd.f32 %v4267_v58, %v3448_v28 }
0x1b1f   :  { %v3452_v8 = vsel %vm1327_vm12, %v3450_v36, -inf }
0x1b20   :  { %3453 = vmax.xlane.f32.xlu1 %v3452_v8  ;;  %3364 = vmax.xlane.f32.xlu2 %v3363_v18 }
0x1b21   :  { %v5792_v63 = vpop.eup %4216 }
0x1b22   :  { %v3445_v45 = vpop.f32.mrf.mxu0  ;;  %v3197_v53 = vsel %vm1327_vm12, %v5792_v63, 0.0 }
0x1b23   :  { %v3449_v30 = vmul.f32 0.35355338, %v3445_v45 }
0x1b25   :  { %v3451_v56 = vadd.f32 %v4268_v2, %v3449_v30 }
0x1b27   :  { %v3455_v35 = vsel %vm1327_vm12, %v3451_v56, -inf }
0x1b28   :  { %3456 = vmax.xlane.f32.xlu0 %v3455_v35  ;;  %3367 = vmax.xlane.f32.xlu1 %v3366_v55 }
0x1b30   :  { %3198 = vadd.xlane.f32.xlu1 %v3197_v53 }
0x1b83   :  { %v3276_v47 = vpop.xlane.xlu2 %3275 }
0x1b84   :  { %v3280_v15 = vsub.f32 %v3272_v1, %v3276_v47 }
0x1b86   :  { %v3282_v4 = vmul.f32 1.442695, %v3280_v15 }
0x1b88   :  { %4218 = vpow2.f32 %v3282_v4 }
0x1b8b   :  { %v3279_v34 = vpop.xlane.xlu1 %3278  ;;  %v3190_v60 = vpop.xlane.xlu2 %3189 }
0x1b8c   :  { %v3281_v31 = vsub.f32 %v3273_v37, %v3279_v34  ;;  %v3192_v9 = vsub.f32 %v3184_v48, %v3190_v60 }
0x1b8e   :  { %v5796_v13 = vpop.eup %4218  ;;  %v3284_v6 = vmul.f32 1.442695, %v3281_v31  ;;  %v3195_v32 = vmul.f32 1.442695, %v3192_v9 }
0x1b8f   :  { %v3286_v29 = vsel %vm1327_vm12, %v5796_v13, 0.0 }
0x1b90   :  { %4220 = vpow2.f32 %v3284_v6  ;;  %3287 = vadd.xlane.f32.xlu0 %v3286_v29 }
0x1b91   :  { %4222 = vpow2.f32 %v3195_v32 }
0x1b93   :  { %v3454_v7 = vpop.xlane.xlu1 %3453  ;;  %v3365_v59 = vpop.xlane.xlu2 %3364 }
0x1b94   :  { %v3458_v62 = vsub.f32 %v3450_v36, %v3454_v7  ;;  %v3369_v3 = vsub.f32 %v3361_v5, %v3365_v59 }
0x1b96   :  { %v5800_v0 = vpop.eup %4220  ;;  %v3460_v51 = vmul.f32 1.442695, %v3458_v62  ;;  %v3371_v23 = vmul.f32 1.442695, %v3369_v3 }
0x1b97   :  { %v5802_v26 = vpop.eup %4222  ;;  %v3289_v58 = vsel %vm1327_vm12, %v5800_v0, 0.0 }
0x1b98   :  { %4224 = vpow2.f32 %v3460_v51  ;;  %3290 = vadd.xlane.f32.xlu2 %v3289_v58  ;;  %v3200_v33 = vsel %vm1327_vm12, %v5802_v26, 0.0 }
0x1b99   :  { %4226 = vpow2.f32 %v3371_v23  ;;  %3201 = vadd.xlane.f32.xlu0 %v3200_v33 }
0x1b9b   :  { %v3457_v27 = vpop.xlane.xlu0 %3456  ;;  %v3368_v41 = vpop.xlane.xlu1 %3367 }
0x1b9c   :  { %v3459_v11 = vsub.f32 %v3451_v56, %v3457_v27  ;;  %v3370_v46 = vsub.f32 %v3362_v38, %v3368_v41 }
0x1b9e   :  { %v5808_v1 = vpop.eup %4224  ;;  %v3462_v49 = vmul.f32 1.442695, %v3459_v11  ;;  %v3373_v14 = vmul.f32 1.442695, %v3370_v46 }
0x1b9f   :  { %v5810_v24 = vpop.eup %4226  ;;  %v3464_v40 = vsel %vm1327_vm12, %v5808_v1, 0.0 }
0x1ba0   :  { %4228 = vpow2.f32 %v3462_v49  ;;  %3465 = vadd.xlane.f32.xlu2 %v3464_v40  ;;  %v3375_v2 = vsel %vm1327_vm12, %v5810_v24, 0.0 }
0x1ba1   :  { %4230 = vpow2.f32 %v3373_v14  ;;  %3376 = vadd.xlane.f32.xlu0 %v3375_v2 }
0x1ba3   :  { %v3199_v42 = vpop.xlane.xlu1 %3198 }
0x1ba4   :  { %4232 = vrcp.f32 %v3199_v42  ;;  %v3212_v61 = vand.u32 2147483647, %v3199_v42  ;;  %v3214_v45 = vand.u32 2147483648, %v3199_v42  ;;  %vm3208_vm10 = vweird.f32 %v3199_v42 }
0x1ba6   :  { %v5816_v48 = vpop.eup %4228  ;;  %vm5834_vm14 = vcmp.eq.f32.partialorder %v3212_v61, 8.507059e+37  ;;  %v3215_v47 = vor.u32 1.1754944e-38, %v3214_v45 }
0x1ba7   :  { %v5818_v12 = vpop.eup %4230  ;;  %v3467_v37 = vsel %vm1327_vm12, %v5816_v48, 0.0 }
0x1ba8   :  { %3468 = vadd.xlane.f32.xlu1 %v3467_v37  ;;  %v3378_v52 = vsel %vm1327_vm12, %v5818_v12, 0.0 }
0x1ba9   :  { %3379 = vadd.xlane.f32.xlu2 %v3378_v52 }
0x1baa   :  { %v4233_v54 = vpop.eup %4232 }
0x1bab   :  { %v3204_v57 = vmul.f32 %v4233_v54, %v3199_v42  ;;  %vm3209_vm9 = vweird.f32 %v4233_v54 }
0x1bac   :  { %vm5828_vm11 = vmor %vm3208_vm10, %vm3209_vm9 }
0x1bad   :  { %v3205_v19 = vsub.f32 1.0, %v3204_v57 }
0x1baf   :  { %v3206_v44 = vmul.f32 %v4233_v54, %v3205_v19 }
0x1bb1   :  { %v3207_v18 = vadd.f32 %v4233_v54, %v3206_v44 }
0x1bb3   :  { %v3211_v55 = vsel %vm5828_vm11, %v4233_v54, %v3207_v18 }
0x1bb4   :  { %v3216_v23 = vsel %vm5834_vm14, %v3215_v47, %v3211_v55 }
0x1bb5   :  { %v3217_v61 = vmul.f32 %v5792_v63, %v3216_v23 }
0x1c03   :  { %v3288_v5 = vpop.xlane.xlu0 %3287 }
0x1c04   :  { %4234 = vrcp.f32 %v3288_v5  ;;  %v3301_v34 = vand.u32 2147483647, %v3288_v5  ;;  %v3303_v60 = vand.u32 2147483648, %v3288_v5  ;;  %vm3297_vm0 = vweird.f32 %v3288_v5 }
0x1c06   :  { %vm5852_vm4 = vcmp.eq.f32.partialorder %v3301_v34, 8.507059e+37  ;;  %v3304_v11 = vor.u32 1.1754944e-38, %v3303_v60 }
0x1c0a   :  { %v5824_v28 = vpop.eup %4234 }
0x1c0b   :  { %v3293_v36 = vmul.f32 %v5824_v28, %v3288_v5  ;;  %v3291_v39 = vpop.xlane.xlu2 %3290  ;;  %vm3298_vm15 = vweird.f32 %v5824_v28 }
0x1c0c   :  { %v3202_v20 = vpop.xlane.xlu0 %3201  ;;  %4236 = vrcp.f32 %v3291_v39  ;;  %v3316_v7 = vand.u32 2147483647, %v3291_v39  ;;  %v3318_v59 = vand.u32 2147483648, %v3291_v39  ;;  %vm5848_vm3 = vmor %vm3297_vm0, %vm3298_vm15  ;;  %vm3312_vm8 = vweird.f32 %v3291_v39 }
0x1c0d   :  { %v3294_v8 = vsub.f32 1.0, %v3293_v36  ;;  %4238 = vrcp.f32 %v3202_v20  ;;  %v3227_v62 = vand.u32 2147483647, %v3202_v20  ;;  %v3229_v3 = vand.u32 2147483648, %v3202_v20 }
0x1c0e   :  { %vm3223_vm9 = vweird.f32 %v3202_v20  ;;  %vm3317_vm11 = vcmp.eq.f32.partialorder %v3316_v7, 8.507059e+37  ;;  %v3319_v40 = vor.u32 1.1754944e-38, %v3318_v59 }
0x1c0f   :  { %v3295_v38 = vmul.f32 %v5824_v28, %v3294_v8  ;;  %vm3228_vm15 = vcmp.eq.f32.partialorder %v3227_v62, 8.507059e+37  ;;  %v3230_v37 = vor.u32 1.1754944e-38, %v3229_v3 }
0x1c11   :  { %v3296_v6 = vadd.f32 %v5824_v28, %v3295_v38 }
0x1c12   :  { %v4237_v30 = vpop.eup %4236 }
0x1c13   :  { %v4239_v35 = vpop.eup %4238  ;;  %v3308_v15 = vmul.f32 %v4237_v30, %v3291_v39  ;;  %v5838_v4 = vpop.xlane.xlu2 %3465  ;;  %vm3313_vm1 = vweird.f32 %v4237_v30  ;;  %v3300_v41 = vsel %vm5848_vm3, %v5824_v28, %v3296_v6 }
0x1c14   :  { %v3219_v31 = vmul.f32 %v4239_v35, %v3202_v20  ;;  %v5840_v9 = vpop.xlane.xlu0 %3376  ;;  %4240 = vrcp.f32 %v5838_v4  ;;  %vm3224_vm2 = vweird.f32 %v4239_v35  ;;  %vm3314_vm10 = vmor %vm3312_vm8, %vm3313_vm1  ;;  %v3305_v57 = vsel %vm5852_vm4, %v3304_v11, %v3300_v41 }
0x1c15   :  { %v3309_v32 = vsub.f32 1.0, %v3308_v15  ;;  %4242 = vrcp.f32 %v5840_v9  ;;  %vm3225_vm14 = vmor %vm3223_vm9, %vm3224_vm2  ;;  %v3306_v45 = vmul.f32 %v5796_v13, %v3305_v57  ;;  %v4269_v13 = vld [vmem:[#allocation2 + $0x108] sm:$0xff]  ;;  %vm3386_vm1 = vweird.f32 %v5840_v9 }
0x1c16   :  { %v3220_v29 = vsub.f32 1.0, %v3219_v31  ;;  %v3390_v47 = vand.u32 2147483647, %v5840_v9  ;;  %vm3475_vm3 = vweird.f32 %v5838_v4  ;;  %v3481_v15 = vand.u32 2147483648, %v5838_v4 }
0x1c17   :  { %v3310_v51 = vmul.f32 %v4237_v30, %v3309_v32  ;;  %v3392_v6 = vand.u32 2147483648, %v5840_v9 }
0x1c18   :  { %v3221_v27 = vmul.f32 %v4239_v35, %v3220_v29  ;;  %v3482_v58 = vor.u32 1.1754944e-38, %v3481_v15 }
0x1c19   :  { %v3311_v46 = vadd.f32 %v4237_v30, %v3310_v51  ;;  %v4270_v51 = vld [vmem:[#allocation2 + $0x100] sm:$0xff] }
0x1c1a   :  { %v5859_v49 = vpop.eup %4240  ;;  %v3222_v14 = vadd.f32 %v4239_v35, %v3221_v27 }
0x1c1b   :  { %v5861_v2 = vpop.eup %4242  ;;  %v3315_v52 = vsel %vm3314_vm10, %v4237_v30, %v3311_v46  ;;  %v3471_v42 = vmul.f32 %v5859_v49, %v5838_v4  ;;  %v5865_v54 = vpop.xlane.xlu1 %3468  ;;  %vm3476_vm0 = vweird.f32 %v5859_v49 }
0x1c1c   :  { %v3226_v5 = vsel %vm3225_vm14, %v4239_v35, %v3222_v14  ;;  %v3320_v19 = vsel %vm3317_vm11, %v3319_v40, %v3315_v52  ;;  %v3382_v28 = vmul.f32 %v5861_v2, %v5840_v9  ;;  %v5871_v44 = vpop.xlane.xlu2 %3379  ;;  %4244 = vrcp.f32 %v5865_v54  ;;  %vm5895_vm2 = vmor %vm3475_vm3, %vm3476_vm0 }
0x1c1d   :  { %v3231_v36 = vsel %vm3228_vm15, %v3230_v37, %v3226_v5  ;;  %v3321_v39 = vmul.f32 %v5800_v0, %v3320_v19  ;;  %v3472_v20 = vsub.f32 1.0, %v3471_v42  ;;  %4246 = vrcp.f32 %v5871_v44 }
0x1c1e   :  { %v3232_v8 = vmul.f32 %v5802_v26, %v3231_v36  ;;  %v3383_v18 = vsub.f32 1.0, %v3382_v28  ;;  %v3479_v0 = vand.u32 2147483647, %v5838_v4  ;;  %vm3387_vm4 = vweird.f32 %v5861_v2 }
0x1c1f   :  { %v3473_v38 = vmul.f32 %v5859_v49, %v3472_v20  ;;  %v3322_v56 = vpack.c.bf16 %v3321_v39, %v3306_v45  ;;  %v3494_v7 = vand.u32 2147483647, %v5865_v54  ;;  %v3496_v4 = vand.u32 2147483648, %v5865_v54  ;;  %vm5910_vm10 = vmor %vm3386_vm1, %vm3387_vm4 }
0x1c20   :  { %v3233_v30 = vpack.c.bf16 %v3232_v8, %v3217_v61  ;;  %v3384_v35 = vmul.f32 %v5861_v2, %v3383_v18  ;;  %vm5899_vm8 = vcmp.eq.f32.partialorder %v3479_v0, 8.507059e+37  ;;  %vm3490_vm11 = vweird.f32 %v5865_v54 }
0x1c21   :  { %3910 = vmatmul.msk.bf16.vlgmr.msra.gmra.mxu2 %vm1327_vm12, %v3322_v56  ;;  %v3474_v26 = vadd.f32 %v5859_v49, %v3473_v38  ;;  %v3405_v33 = vand.u32 2147483647, %v5871_v44  ;;  %v3407_v27 = vand.u32 2147483648, %v5871_v44  ;;  %vm3391_vm15 = vcmp.eq.f32.partialorder %v3390_v47, 8.507059e+37 }
0x1c22   :  { %v4245_v55 = vpop.eup %4244  ;;  %3908 = vmatmul.msk.bf16.vlgmr.msra.gmra.mxu1 %vm1327_vm12, %v3233_v30  ;;  %v3385_v34 = vadd.f32 %v5861_v2, %v3384_v35  ;;  %v3393_v9 = vor.u32 1.1754944e-38, %v3392_v6  ;;  %v3497_v14 = vor.u32 1.1754944e-38, %v3496_v4  ;;  %vm3495_vm1 = vcmp.eq.f32.partialorder %v3494_v7, 8.507059e+37 }
0x1c23   :  { %v3486_v63 = vmul.f32 %v4245_v55, %v5865_v54  ;;  %3626 = vmatpush.bf16.msra.mxu1 %v4269_v13  ;;  %v4247_v53 = vpop.eup %4246  ;;  %v3478_v59 = vsel %vm5895_vm2, %v5859_v49, %v3474_v26  ;;  %vm3491_vm9 = vweird.f32 %v4245_v55  ;;  %vm3401_vm3 = vweird.f32 %v5871_v44 }
0x1c24   :  { %v3397_v31 = vmul.f32 %v4247_v53, %v5871_v44  ;;  %v3389_v41 = vsel %vm5910_vm10, %v5861_v2, %v3385_v34  ;;  %vm3402_vm14 = vweird.f32 %v4247_v53  ;;  %v3483_v49 = vsel %vm5899_vm8, %v3482_v58, %v3478_v59  ;;  %vm3492_vm0 = vmor %vm3490_vm11, %vm3491_vm9 }
0x1c25   :  { %v3487_v60 = vsub.f32 1.0, %v3486_v63  ;;  %v3394_v52 = vsel %vm3391_vm15, %v3393_v9, %v3389_v41  ;;  %vm3403_vm4 = vmor %vm3401_vm3, %vm3402_vm14  ;;  %v3408_v2 = vor.u32 1.1754944e-38, %v3407_v27  ;;  %v3484_v54 = vmul.f32 %v5808_v1, %v3483_v49 }
0x1c26   :  { %v3398_v3 = vsub.f32 1.0, %v3397_v31  ;;  %vm3406_vm2 = vcmp.eq.f32.partialorder %v3405_v33, 8.507059e+37  ;;  %v3395_v28 = vmul.f32 %v5810_v24, %v3394_v52 }
0x1c27   :  { %v3488_v62 = vmul.f32 %v4245_v55, %v3487_v60  ;;  %3627 = vmatpush.bf16.msra.mxu1 %v4270_v51 }
0x1c28   :  { %v3399_v46 = vmul.f32 %v4247_v53, %v3398_v3 }
0x1c29   :  { %v3489_v11 = vadd.f32 %v4245_v55, %v3488_v62 }
0x1c2a   :  { %v3400_v37 = vadd.f32 %v4247_v53, %v3399_v46 }
0x1c2b   :  { %v3493_v40 = vsel %vm3492_vm0, %v4245_v55, %v3489_v11 }
0x1c2c   :  { %v3498_v42 = vsel %vm3495_vm1, %v3497_v14, %v3493_v40  ;;  %v3404_v5 = vsel %vm3403_vm4, %v4247_v53, %v3400_v37 }
0x1c2d   :  { %v3499_v57 = vmul.f32 %v5816_v48, %v3498_v42  ;;  %v3409_v19 = vsel %vm3406_vm2, %v3408_v2, %v3404_v5 }
0x1c2e   :  { %v3410_v36 = vmul.f32 %v5818_v12, %v3409_v19 }
0x1c2f   :  { %v3500_v39 = vpack.c.bf16 %v3499_v57, %v3484_v54 }
0x1c30   :  { %v3411_v20 = vpack.c.bf16 %v3410_v36, %v3395_v28 }
0x1c31   :  { %3914 = vmatmul.msk.bf16.vlgmr.msrb.gmra.mxu2 %vm1327_vm12, %v3500_v39 }
0x1c32   :  { %3912 = vmatmul.msk.bf16.vlgmr.msrb.gmra.mxu1 %vm1327_vm12, %v3411_v20 }
0x1c9f   :  { %v3246_v44 = vpop.f32.mrf.mxu1 }
0x1ca4   :  { %v3335_v8 = vpop.f32.mrf.mxu2 }
0x1ca7   :  { %v3248_v18 = vpop.f32.mrf.mxu1 }
0x1cac   :  { %v3337_v61 = vpop.f32.mrf.mxu2 }
0x1cad   :  { %v4025_v1 = vpack.i.bf16 %v3337_v61, %v3335_v8 }
0x1caf   :  { %v3424_v45 = vpop.f32.mrf.mxu1  ;;  %4026 = vrot.lane.b32.xlu1 %v4025_v1, %s4309_s19 }
0x1cb4   :  { %v3513_v48 = vpop.f32.mrf.mxu2 }
0x1cb7   :  { %v3426_v38 = vpop.f32.mrf.mxu1 }
0x1cb8   :  { %v4030_v30 = vpack.i.bf16 %v3426_v38, %v3424_v45 }
0x1cba   :  { %4031 = vrot.lane.b32.xlu0 %v4030_v30, %s4310_s6 }
0x1cbc   :  { %v3515_v24 = vpop.f32.mrf.mxu2 }
0x1cbd   :  { %v4035_v12 = vpack.i.bf16 %v3515_v24, %v3513_v48 }
0x1cbf   :  { %4036 = vrot.lane.b32.xlu2 %v4035_v12, %s4311_s20 }
0x1d19   :  { %v4037_v0 = vpop.permute.xlu2 %4036 }
0x1d1a   :  { %v4039_v53 = vunpack.i.h.bf16 %v4037_v0  ;;  %v4038_v47 = vunpack.i.l.bf16 %v4037_v0 }
0x1d21   :  { %v4027_v56 = vpop.permute.xlu1 %4026 }
0x1d22   :  { %v4029_v35 = vunpack.i.h.bf16 %v4027_v56  ;;  %v4028_v55 = vunpack.i.l.bf16 %v4027_v56 }
0x1d24   :  { %v3543_v15 = vsel %vm734_vm6, %v3248_v18, %v4029_v35  ;;  %v3542_v34 = vsel %vm734_vm6, %v3246_v44, %v4028_v55 }
0x1d2c   :  { %v4032_v26 = vpop.permute.xlu0 %4031 }
0x1d2d   :  { %v4034_v63 = vunpack.i.h.bf16 %v4032_v26  ;;  %v4033_v13 = vunpack.i.l.bf16 %v4032_v26 }
0x1d2f   :  { %v3545_v60 = vsel %vm1327_vm12, %v3543_v15, %v4034_v63  ;;  %v3544_v31 = vsel %vm1327_vm12, %v3542_v34, %v4033_v13 }
0x1d30   :  { %v3546_v6 = vsel %vm1330_vm13, %v3544_v31, %v4038_v47  ;;  %v3547_v32 = vsel %vm1330_vm13, %v3545_v60, %v4039_v53 }
0x1d31   :  { %v3548_v29 = vpack.c.bf16 %v3547_v32, %v3546_v6 }
0x1d33   :  { %3915 = vmatmul.msk.bf16.vlgmr.msrb.gmra.mxu3 %vm594_vm5, %v3548_v29 }
0x1db6   :  { %v3561_v7 = vpop.f32.mrf.mxu3 }
0x1db7   :  { %v3562_v4 = vadd.f32 %v3561_v7, %v5416_v21 }
0x1db9   :  { %v5942_v59 = vadd.f32 %v3562_v4, %v5746_v22 }
0x1dbb   :  { %v3568_v62 = vsel %vm594_vm5, %v5942_v59, 0.0 }
0x1dbc   :  { %3569 = vadd.xlane.f32.xlu0 %v3568_v62 }
0x1dbe   :  { %v3563_v3 = vpop.f32.mrf.mxu3 }
0x1dbf   :  { %v3564_v51 = vadd.f32 %v3563_v3, %v5416_v21 }
0x1dc1   :  { %v5948_v23 = vadd.f32 %v3564_v51, %v5751_v16 }
0x1dc3   :  { %v3571_v58 = vsel %vm594_vm5, %v5948_v23, 0.0 }
0x1dc4   :  { %3572 = vadd.xlane.f32.xlu1 %v3571_v58 }
0x1e2f   :  { %v3570_v33 = vpop.xlane.xlu0 %3569 }
0x1e30   :  { %v3574_v27 = vmul.f32 %v3570_v33, %v4745_v25  ;;  %v3963_v33 = vld [vmem:[%s5996_s8] sm:$0xff] }
0x1e32   :  { %v3576_v22 = vsub.f32 %v5942_v59, %v3574_v27 }
0x1e34   :  { %v3578_v41 = vmul.f32 %v3576_v22, %v3576_v22 }
0x1e36   :  { %v3580_v11 = vsel %vm594_vm5, %v3578_v41, 0.0 }
0x1e37   :  { %v3573_v46 = vpop.xlane.xlu1 %3572  ;;  %3581 = vadd.xlane.f32.xlu2 %v3580_v11 }
0x1e38   :  { %v3575_v9 = vmul.f32 %v3573_v46, %v4745_v25 }
0x1e3a   :  { %v3577_v21 = vsub.f32 %v5948_v23, %v3575_v9 }
0x1e3c   :  { %v3579_v16 = vmul.f32 %v3577_v21, %v3577_v21 }
0x1e3e   :  { %v3583_v49 = vsel %vm594_vm5, %v3579_v16, 0.0  ;;  %v3676_v16 = vld [vmem:[%s5996_s8 + $0x10] sm:$0x1] }
0x1e3f   :  { %3584 = vadd.xlane.f32.xlu0 %v3583_v49  ;;  %v3677_v49 = vunpack.c.l.bf16 %v3676_v16 }
0x1eaa   :  { %v3582_v14 = vpop.xlane.xlu2 %3581 }
0x1eab   :  { %v3586_v40 = vmul.f32 %v3582_v14, %v4745_v25  ;;  %v3679_v14 = vperm.slane %v3677_v49, 0 }
0x1ead   :  { %v3588_v37 = vadd.f32 1e-05, %v3586_v40 }
0x1eaf   :  { %4248 = vrsqrt.f32 %v3588_v37  ;;  %vm3596_vm12 = vweird.f32 %v3588_v37 }
0x1eb2   :  { %v3585_v52 = vpop.xlane.xlu0 %3584 }
0x1eb3   :  { %v3587_v42 = vmul.f32 %v3585_v52, %v4745_v25 }
0x1eb5   :  { %v4249_v2 = vpop.eup %4248  ;;  %v3589_v54 = vadd.f32 1e-05, %v3587_v42 }
0x1eb6   :  { %v3591_v57 = vmul.f32 %v4249_v2, %v3588_v37  ;;  %vm3597_vm6 = vweird.f32 %v4249_v2 }
0x1eb7   :  { %4250 = vrsqrt.f32 %v3589_v54  ;;  %vm3598_vm13 = vmor %vm3596_vm12, %vm3597_vm6  ;;  %vm3606_vm9 = vweird.f32 %v3589_v54 }
0x1eb8   :  { %v3592_v5 = vmul.f32 %v4249_v2, %v3591_v57 }
0x1eba   :  { %v3593_v19 = vmul.f32 0.5, %v3592_v5 }
0x1ebc   :  { %v3594_v28 = vsub.f32 1.5, %v3593_v19 }
0x1ebd   :  { %v4251_v36 = vpop.eup %4250 }
0x1ebe   :  { %v3595_v39 = vmul.f32 %v4249_v2, %v3594_v28  ;;  %v3601_v20 = vmul.f32 %v4251_v36, %v3589_v54  ;;  %vm3607_vm8 = vweird.f32 %v4251_v36 }
0x1ebf   :  { %vm3608_vm10 = vmor %vm3606_vm9, %vm3607_vm8 }
0x1ec0   :  { %v3602_v44 = vmul.f32 %v4251_v36, %v3601_v20  ;;  %v3599_v8 = vsel %vm3598_vm13, %v4249_v2, %v3595_v39 }
0x1ec1   :  { %v3610_v1 = vmul.f32 %v3599_v8, %v3576_v22 }
0x1ec2   :  { %v3603_v18 = vmul.f32 0.5, %v3602_v44 }
0x1ec3   :  { %v3612_v48 = vmul.f32 %v3610_v1, %v5439_v17 }
0x1ec4   :  { %v3604_v61 = vsub.f32 1.5, %v3603_v18 }
0x1ec5   :  { %v3614_v24 = vadd.f32 %v3612_v48, %v5442_v43 }
0x1ec6   :  { %v3605_v25 = vmul.f32 %v4251_v36, %v3604_v61 }
0x1ec8   :  { %v3609_v45 = vsel %vm3608_vm10, %v4251_v36, %v3605_v25 }
0x1ec9   :  { %v3611_v38 = vmul.f32 %v3609_v45, %v3577_v21 }
0x1ecb   :  { %v3613_v30 = vmul.f32 %v3611_v38, %v5439_v17 }
0x1ecd   :  { %v3615_v12 = vadd.f32 %v3613_v30, %v5442_v43 }
0x1ecf   :  { %v3616_v56 = vpack.c.bf16 %v3615_v12, %v3614_v24 }
0x1ed1   :  { %3916 = vmatmul.msk.bf16.vlgmr.msra.gmra.mxu1 %vm594_vm5, %v3616_v56 }
0x1f4e   :  { %v3629_v35 = vpop.f32.mrf.mxu1 }
0x1f4f   :  { %v3630_v55 = vadd.f32 %v3629_v35, %v5450_v10 }
0x1f51   :  { %v3634_v0 = vmul.f32 %v3630_v55, %v3630_v55 }
0x1f53   :  { %v3636_v26 = vmul.f32 %v3634_v0, %v3630_v55 }
0x1f55   :  { %v3638_v63 = vmul.f32 0.044715, %v3636_v26 }
0x1f56   :  { %v3631_v13 = vpop.f32.mrf.mxu1 }
0x1f57   :  { %v3640_v53 = vadd.f32 %v3638_v63, %v3630_v55  ;;  %v3632_v47 = vadd.f32 %v3631_v13, %v5450_v10  ;;  %v3964_v10 = vld [vmem:[%s5996_s8 + $0x8] sm:$0xff] }
0x1f58   :  { %3701 = vmatpush.bf16.msra.mxu2 %v3964_v10 }
0x1f59   :  { %v3642_v15 = vmul.f32 0.7978846, %v3640_v53  ;;  %v3635_v34 = vmul.f32 %v3632_v47, %v3632_v47 }
0x1f5b   :  { %v3637_v17 = vmul.f32 %v3635_v34, %v3632_v47  ;;  %4252 = vtanh.f32 %v3642_v15 }
0x1f5c   :  { %3702 = vmatpush.bf16.msra.mxu2 %v3963_v33 }
0x1f5d   :  { %v3639_v60 = vmul.f32 0.044715, %v3637_v17 }
0x1f5f   :  { %v3641_v31 = vadd.f32 %v3639_v60, %v3632_v47 }
0x1f61   :  { %v3643_v43 = vmul.f32 0.7978846, %v3641_v31  ;;  %v4253_v6 = vpop.eup %4252 }
0x1f62   :  { %v3646_v32 = vadd.f32 1.0, %v4253_v6 }
0x1f63   :  { %4254 = vtanh.f32 %v3643_v43 }
0x1f64   :  { %v3648_v7 = vmul.f32 0.5, %v3646_v32 }
0x1f66   :  { %v3650_v3 = vmul.f32 %v3648_v7, %v3630_v55 }
0x1f69   :  { %v4255_v29 = vpop.eup %4254 }
0x1f6a   :  { %v3647_v4 = vadd.f32 1.0, %v4255_v29 }
0x1f6c   :  { %v3649_v62 = vmul.f32 0.5, %v3647_v4 }
0x1f6e   :  { %v3651_v51 = vmul.f32 %v3649_v62, %v3632_v47 }
0x1f70   :  { %v3652_v58 = vpack.c.bf16 %v3651_v51, %v3650_v3 }
0x1f72   :  { %3917 = vmatmul.msk.bf16.vlgmr.msrb.gmra.mxu0 %vm1510_vm7, %v3652_v58 }
0x1fef   :  { %v3665_v27 = vpop.f32.mrf.mxu0 }
0x1ff0   :  { %v3666_v22 = vadd.f32 %v3665_v27, %v5456_v50 }
0x1ff2   :  { %v3670_v46 = vadd.f32 %v3666_v22, %v5942_v59 }
0x1ff7   :  { %v3667_v41 = vpop.f32.mrf.mxu0 }
0x1ff8   :  { %v3668_v11 = vadd.f32 %v3667_v41, %v5456_v50 }
0x1ffa   :  { %v3671_v9 = vadd.f32 %v3668_v11, %v5948_v23 }
0x1ffc   :  { %v3678_v21 = vpack.c.bf16 %v3671_v9, %v3670_v46 }
0x1ffe   :  { %3926 = vmatmul.msk.bf16.vlgmr.msra.gmra.mxu2 %vm594_vm5, %v3678_v21 }
0x2081   :  { %v3704_v40 = vpop.f32.mrf.mxu2 }
0x2082   :  { %v3705_v37 = vadd.f32 %v3704_v40, %v3679_v14 }
0x2084   :  { %3709 = vst [vmem:[%s5997_s9] sm:$0xff] %v3705_v37 }
0x2089   :  { %v3706_v50 = vpop.f32.mrf.mxu2 }
0x208a   :  { %v3707_v52 = vadd.f32 %v3706_v50, %v3679_v14 }
0x208c   :  { %3710 = vst [vmem:[%s5997_s9 + $0x8] sm:$0xff] %v3707_v52 }
0x208d   :  { %3715 = vsyncpa [#allocation3], 1 }

</bundles_post_ra>
